<compile_context>
chip_gen: v7x
topology: tpu7x:2x2x1
jax: 0.10.0
libtpu: 0.0.40
codegen_flags: <defaults>
</compile_context>

<pallas_src>
import numpy as np
import jax
import jax.numpy as jnp
from jax import lax
from jax.experimental import pallas as pl
from jax.experimental.pallas import tpu as pltpu

# --------------------------------------------------------------------------------------
# Deterministic in-script "parameters"
# TODO(synk): the reference module loads torchani.neurochem.Constants(consts_file) from
# disk; no file I/O is allowed here, so a deterministic single-species AEV constant set
# is defined below (species = all ones -> one radial block, one angular block).
# --------------------------------------------------------------------------------------
RCR = 0.52                                                       # radial AEV cutoff
RCA = 0.35                                                       # angular AEV cutoff
ETA_R = 160.0
SHF_R = np.linspace(0.09, 0.50, 8).astype(np.float32)            # 8 radial shifts
ETA_A = 80.0
ZETA = 32                                                        # int -> integer_pow
SHF_A = np.linspace(0.09, 0.33, 4).astype(np.float32)            # 4 angular radial shifts
SHF_Z = ((np.arange(4) + 0.5) * (np.pi / 4)).astype(np.float32)  # 4 angle shifts
N_RADIAL = int(SHF_R.shape[0])
N_ANGULAR = int(SHF_A.shape[0] * SHF_Z.shape[0])
AEV_DIM = N_RADIAL + N_ANGULAR                                   # 24

# GSG hyper-parameters (AniGSG defaults)
MAX_WAVELET_SCALE = 4
RADIAL_CUTOFF = 0.52
SM_OPERATORS = (True, True, True)
# TODO(synk): sd_params=None default -> no feature standardization is applied.

LANE = 128                                                       # TPU lane width
TILE_I = 8                                                       # row tile (f32 sublane count)
NBLK = 1 + MAX_WAVELET_SCALE + MAX_WAVELET_SCALE * (MAX_WAVELET_SCALE - 1) // 2   # 11


def gsg_feature_dim(s_tot: int) -> int:
    return s_tot * NBLK


def _round_up(x: int, m: int) -> int:
    return ((x + m - 1) // m) * m


# --------------------------------------------------------------------------------------
# Fused kernel: exact pairwise dist -> row-tiled AEV into padded signal slab -> GSG
# --------------------------------------------------------------------------------------
def ani_gsg_kernel(coords_ref, sig_ref, out_ref, dist_ref, s_ref):
    n = coords_ref.shape[0]
    s_pad = s_ref.shape[1]
    tile = TILE_I
    n_tiles = n // tile

    # ---- exact pairwise distances (VPU only; no MXU gram, no cancellation) ----
    x = coords_ref[...].astype(jnp.float32)                               # (N, 3)
    xcols = [x[:, c:c + 1] for c in range(3)]                             # 3 x (N, 1)
    xrows = [jnp.transpose(xc) for xc in xcols]                           # 3 x (1, N)
    d2 = jnp.zeros((n, n), jnp.float32)
    for c in range(3):
        dd = xcols[c] - xrows[c]                                          # (N, N)
        d2 = d2 + dd * dd
    dist_ref[...] = jnp.sqrt(d2)                                          # diag exactly 0

    # shift constants as python literals -> no captured array constants
    shf_r = [float(v) for v in SHF_R]
    shf_a = [float(v) for v in SHF_A]
    az = [(float(np.cos(v)), float(np.sin(v))) for v in SHF_Z]

    # loop-invariant (N, N) index masks, hoisted out of the tile loop
    jj2 = lax.broadcasted_iota(jnp.int32, (n, n), 0)
    kk2 = lax.broadcasted_iota(jnp.int32, (n, n), 1)
    notdiag_jk = (jj2 != kk2).astype(jnp.float32)                         # j != k mask
    eye = (jj2 == kk2).astype(jnp.float32)

    # ---- AEV, one row tile at a time: (TILE, N, N) intermediates only ----
    def tile_body(t, carry):
        i0 = t * tile
        rows = pl.ds(i0, tile)
        x_t = coords_ref[rows, :].astype(jnp.float32)                     # (T, 3)
        dist_t = dist_ref[rows, :]                                        # (T, N)

        ii = lax.broadcasted_iota(jnp.int32, (tile, n), 0) + i0
        jj = lax.broadcasted_iota(jnp.int32, (tile, n), 1)
        offdiag = (ii != jj).astype(jnp.float32)                          # j != i (tile rows)

        # radial sub-AEV: 0.25 * exp(-eta_r (r - shf)^2) * fc(r, Rcr), summed over j != i
        fcr = jnp.where(dist_t < RCR,
                        0.5 * jnp.cos(dist_t * (np.pi / RCR)) + 0.5, 0.0) * offdiag
        cols = [0.25 * jnp.sum(jnp.exp(-ETA_R * (dist_t - s_) ** 2) * fcr,
                               axis=1, keepdims=True)
                for s_ in shf_r]                                          # 8 x (T, 1)

        # angular sub-AEV
        fca = jnp.where(dist_t < RCA,
                        0.5 * jnp.cos(dist_t * (np.pi / RCA)) + 0.5, 0.0) * offdiag

        # (x_j - x_i) . (x_k - x_i) from per-component differences (exact f32)
        dvec = [xrows[c] - x_t[:, c:c + 1] for c in range(3)]             # 3 x (T, N)
        dot3 = (dvec[0][:, :, None] * dvec[0][:, None, :]
                + dvec[1][:, :, None] * dvec[1][:, None, :]
                + dvec[2][:, :, None] * dvec[2][:, None, :])              # (T, N, N)
        rij = dist_t[:, :, None]
        rik = dist_t[:, None, :]
        # torchani scales cos by 0.95, so the valid range is exactly [-0.95, 0.95];
        # the clip keeps degenerate (j==i / k==i) entries finite before masking.
        # TODO(synk): pl.reciprocal(rij*rik + eps, approx=True) would move the divide
        # to the EUP slot; plain divide kept for interpreter portability.
        cosang = jnp.clip(0.95 * dot3 / (rij * rik + 1e-10), -0.95, 0.95)
        sinang = jnp.sqrt(jnp.maximum(1.0 - cosang * cosang, 0.0))
        davg = 0.5 * (rij + rik)
        base = fca[:, :, None] * fca[:, None, :] * notdiag_jk[None, :, :]

        # f1 depends only on the angle shift z -> hoisted out of the ShfA loop
        f1s = [jnp.maximum(0.5 * (1.0 + cosang * cz + sinang * sz), 0.0) ** ZETA
               for (cz, sz) in az]                                        # 4 x (T, N, N)

        for a_ in shf_a:
            bf2 = base * jnp.exp(-ETA_A * (davg - a_) ** 2)
            for f1 in f1s:
                red = jnp.sum(bf2 * f1, axis=2)                           # lane reduce (T, N)
                cols.append(jnp.sum(red, axis=1, keepdims=True))          # (T, 1)

        # write [radial | angular | raw signals | zero pad] as one dense (T, s_pad) slab
        sig_t = sig_ref[rows, :].astype(jnp.float32)                      # (T, s_pad - 24)
        s_ref[rows, :] = jnp.concatenate(cols + [sig_t], axis=1)
        return carry

    lax.fori_loop(0, n_tiles, tile_body, 0)

    # ---- GSG: cutoff graph, lazy random walk, streamed dyadic wavelets ----
    s = s_ref[...]                                                        # (N, s_pad) lane-dense
    dist = dist_ref[...]
    adj = jnp.where(dist < RADIAL_CUTOFF, 1.0, 0.0) * (1.0 - eye)
    deg = jnp.sum(adj, axis=0, keepdims=True)                             # (1, N)
    # guard isolated nodes (reference would divide by zero there)
    inv_deg = 1.0 / jnp.where(deg > 0.0, deg, 1.0)
    p = 0.5 * (eye + adj * inv_deg)                                       # P = 1/2 (I + A D^-1)

    if SM_OPERATORS[0]:
        out_ref[:, 0:s_pad] = s                                           # zero order block

    # streaming power chain: only prev / cur / current wavelet are live (N,N) buffers
    prev = p                                                              # P^(2^j)
    u1s = []
    for j in range(MAX_WAVELET_SCALE):
        cur = jnp.dot(prev, prev, preferred_element_type=jnp.float32)     # P^(2^(j+1))
        w = prev - cur                                                    # psi_j
        u = jnp.abs(jnp.dot(w, s, preferred_element_type=jnp.float32))    # |psi_j x|
        if SM_OPERATORS[1]:
            out_ref[:, (1 + j) * s_pad:(2 + j) * s_pad] = u               # lane-aligned store
        if SM_OPERATORS[2]:
            for j1 in range(j):                                           # second order, j1 < j
                so = jnp.abs(jnp.dot(w, u1s[j1], preferred_element_type=jnp.float32))
                b = 1 + MAX_WAVELET_SCALE + (j * (j - 1)) // 2 + j1
                out_ref[:, b * s_pad:(b + 1) * s_pad] = so
        u1s.append(u)
        prev = cur


# --------------------------------------------------------------------------------------
# Wrapper
# --------------------------------------------------------------------------------------
def _vmem():
    return pl.BlockSpec(memory_space=pltpu.MemorySpace.VMEM)


@jax.jit
def ani_gsg_forward(coordinates, signals):
    n = coordinates.shape[0]
    n_sig = signals.shape[1]
    s_tot = AEV_DIM + n_sig
    s_pad = _round_up(s_tot, LANE)
    n_pad = _round_up(n, TILE_I)

    coords = coordinates.astype(jnp.float32)
    sig = signals.astype(jnp.float32)
    if n_pad > n:
        # ghost atoms far outside both cutoffs -> contribute nothing to real rows
        ghost = (1.0e3 + 10.0 * jnp.arange(n_pad - n, dtype=jnp.float32))[:, None]
        coords = jnp.concatenate([coords, jnp.broadcast_to(ghost, (n_pad - n, 3))], axis=0)
        sig = jnp.concatenate([sig, jnp.zeros((n_pad - n, n_sig), jnp.float32)], axis=0)
    # channel-pad the raw signals so the in-kernel slab is a dense 128-lane multiple
    sig_slab = jnp.pad(sig, ((0, 0), (0, s_pad - AEV_DIM - n_sig)))

    # explicit scoped-VMEM budget from the live-buffer estimate, capped for v7x (64 MiB)
    est = 4 * (6 * n_pad * n_pad                       # dist scratch + adjacency/P/powers
               + 14 * TILE_I * n_pad * n_pad           # per-tile angular intermediates
               + 2 * n_pad * s_pad                     # signal slab (+ copy)
               + (NBLK + 5) * n_pad * s_pad)           # output + first-order stash
    vmem_limit = int(min(60 * 2 ** 20, max(32 * 2 ** 20, 2 * est)))

    out = pl.pallas_call(
        ani_gsg_kernel,
        out_shape=jax.ShapeDtypeStruct((n_pad, NBLK * s_pad), jnp.float32),
        in_specs=[_vmem(), _vmem()],
        out_specs=_vmem(),
        scratch_shapes=[pltpu.VMEM((n_pad, n_pad), jnp.float32),   # pairwise distances
                        pltpu.VMEM((n_pad, s_pad), jnp.float32)],  # padded signal slab
        compiler_params=pltpu.CompilerParams(vmem_limit_bytes=vmem_limit),
    )(coords, sig_slab)

    # drop lane padding / ghost rows; block order matches the reference concatenation
    feats = out.reshape(n_pad, NBLK, s_pad)[:n, :, :s_tot]
    return feats.reshape(n, NBLK * s_tot)


if __name__ == "__main__":
    key = jax.random.PRNGKey(0)
    k1, k2 = jax.random.split(key)
    n_atoms, n_sig = 8, 6
    # coordinates in a 0.3-sized box so the cutoff graph is connected (no zero degrees)
    coordinates = jax.random.uniform(k1, (n_atoms, 3), dtype=jnp.float32) * 0.3
    signals = jax.random.normal(k2, (n_atoms, n_sig), dtype=jnp.float32)

    feats = jax.block_until_ready(ani_gsg_forward(coordinates, signals))

    expected = (n_atoms, gsg_feature_dim(AEV_DIM + n_sig))
    assert feats.shape == expected, (feats.shape, expected)
    assert bool(jnp.all(jnp.isfinite(feats)))
    print("KERNEL_OK")
</pallas_src>

<mosaic_0001>
module attributes {stable_mosaic.version = 11 : i64} {
  func.func @ani_gsg_kernel(%arg0: memref<8x3xf32, #tpu.memory_space<vmem>>, %arg1: memref<8x104xf32, #tpu.memory_space<vmem>>, %arg2: memref<8x1408xf32, #tpu.memory_space<vmem>>, %arg3: memref<8x8xf32, #tpu.memory_space<vmem>>, %arg4: memref<8x128xf32, #tpu.memory_space<vmem>>) attributes {dimension_semantics = [], scalar_prefetch = 0 : i64, scratch_operands = 2 : i64, tpu.core_type = #tpu.core_type<tc>} {
    %c0 = arith.constant 0 : index
    %c0_0 = arith.constant 0 : index
    %0 = vector.load %arg0[%c0, %c0_0] : memref<8x3xf32, #tpu.memory_space<vmem>>, vector<8x3xf32>
    %1 = vector.extract_strided_slice %0 {offsets = [0, 0], sizes = [8, 1], strides = [1, 1]} : vector<8x3xf32> to vector<8x1xf32>
    %2 = vector.extract_strided_slice %0 {offsets = [0, 1], sizes = [8, 1], strides = [1, 1]} : vector<8x3xf32> to vector<8x1xf32>
    %3 = vector.extract_strided_slice %0 {offsets = [0, 2], sizes = [8, 1], strides = [1, 1]} : vector<8x3xf32> to vector<8x1xf32>
    %4 = tpu.transpose %1, [1, 0] : vector<8x1xf32> -> vector<1x8xf32>
    %5 = tpu.transpose %2, [1, 0] : vector<8x1xf32> -> vector<1x8xf32>
    %6 = tpu.transpose %3, [1, 0] : vector<8x1xf32> -> vector<1x8xf32>
    %cst = arith.constant 0.000000e+00 : f32
    %7 = vector.broadcast %cst : f32 to vector<8x8xf32>
    %8 = vector.broadcast %1 : vector<8x1xf32> to vector<8x8xf32>
    %9 = vector.broadcast %4 : vector<1x8xf32> to vector<8x8xf32>
    %10 = arith.subf %8, %9 : vector<8x8xf32>
    %11 = arith.mulf %10, %10 : vector<8x8xf32>
    %12 = arith.addf %7, %11 : vector<8x8xf32>
    %13 = vector.broadcast %2 : vector<8x1xf32> to vector<8x8xf32>
    %14 = vector.broadcast %5 : vector<1x8xf32> to vector<8x8xf32>
    %15 = arith.subf %13, %14 : vector<8x8xf32>
    %16 = arith.mulf %15, %15 : vector<8x8xf32>
    %17 = arith.addf %12, %16 : vector<8x8xf32>
    %18 = vector.broadcast %3 : vector<8x1xf32> to vector<8x8xf32>
    %19 = vector.broadcast %6 : vector<1x8xf32> to vector<8x8xf32>
    %20 = arith.subf %18, %19 : vector<8x8xf32>
    %21 = arith.mulf %20, %20 : vector<8x8xf32>
    %22 = arith.addf %17, %21 : vector<8x8xf32>
    %23 = math.sqrt %22 : vector<8x8xf32>
    %c0_1 = arith.constant 0 : index
    %c0_2 = arith.constant 0 : index
    %24 = vector.load %arg3[%c0_1, %c0_2] : memref<8x8xf32, #tpu.memory_space<vmem>>, vector<8x8xf32>
    tpu.vector_store %arg3[%c0_1, %c0_2], %23 {strides = array<i32>} : memref<8x8xf32, #tpu.memory_space<vmem>>, vector<8x8xf32>,
    %25 = tpu.iota {dimensions = array<i32: 0>} : vector<8x8xi32>
    %26 = tpu.iota {dimensions = array<i32: 1>} : vector<8x8xi32>
    %27 = arith.cmpi ne, %25, %26 : vector<8x8xi32>
    %28 = arith.extui %27 : vector<8x8xi1> to vector<8x8xi32>
    %29 = arith.sitofp %28 : vector<8x8xi32> to vector<8x8xf32>
    %30 = arith.cmpi eq, %25, %26 : vector<8x8xi32>
    %31 = arith.extui %30 : vector<8x8xi1> to vector<8x8xi32>
    %32 = arith.sitofp %31 : vector<8x8xi32> to vector<8x8xf32>
    %c0_i32 = arith.constant 0 : i32
    %c8_i32 = arith.constant 8 : i32
    %33 = arith.muli %c0_i32, %c8_i32 : i32
    %34 = arith.index_cast %33 : i32 to index
    %c0_3 = arith.constant 0 : index
    %35 = vector.load %arg0[%34, %c0_3] : memref<8x3xf32, #tpu.memory_space<vmem>>, vector<8x3xf32>
    %36 = arith.index_cast %33 : i32 to index
    %c0_4 = arith.constant 0 : index
    %37 = vector.load %arg3[%36, %c0_4] : memref<8x8xf32, #tpu.memory_space<vmem>>, vector<8x8xf32>
    %38 = tpu.iota {dimensions = array<i32: 0>} : vector<8x8xi32>
    %39 = vector.broadcast %33 : i32 to vector<8x8xi32>
    %40 = arith.addi %38, %39 : vector<8x8xi32>
    %41 = tpu.iota {dimensions = array<i32: 1>} : vector<8x8xi32>
    %42 = arith.cmpi ne, %40, %41 : vector<8x8xi32>
    %43 = arith.extui %42 : vector<8x8xi1> to vector<8x8xi32>
    %44 = arith.sitofp %43 : vector<8x8xi32> to vector<8x8xf32>
    %cst_5 = arith.constant 5.200000e-01 : f32
    %45 = vector.broadcast %cst_5 : f32 to vector<8x8xf32>
    %46 = arith.cmpf olt, %37, %45 : vector<8x8xf32>
    %cst_6 = arith.constant 6.04152441 : f32
    %47 = vector.broadcast %cst_6 : f32 to vector<8x8xf32>
    %48 = arith.mulf %37, %47 : vector<8x8xf32>
    %49 = math.cos %48 : vector<8x8xf32>
    %cst_7 = arith.constant 5.000000e-01 : f32
    %50 = vector.broadcast %cst_7 : f32 to vector<8x8xf32>
    %51 = arith.mulf %50, %49 : vector<8x8xf32>
    %cst_8 = arith.constant 5.000000e-01 : f32
    %52 = vector.broadcast %cst_8 : f32 to vector<8x8xf32>
    %53 = arith.addf %51, %52 : vector<8x8xf32>
    %cst_9 = arith.constant 0.000000e+00 : f32
    %54 = vector.broadcast %cst_9 : f32 to vector<8x8xf32>
    %55 = arith.select %46, %53, %54 : vector<8x8xi1>, vector<8x8xf32>
    %56 = arith.mulf %55, %44 : vector<8x8xf32>
    %cst_10 = arith.constant 9.000000e-02 : f32
    %57 = vector.broadcast %cst_10 : f32 to vector<8x8xf32>
    %58 = arith.subf %37, %57 : vector<8x8xf32>
    %59 = arith.mulf %58, %58 : vector<8x8xf32>
    %cst_11 = arith.constant -1.600000e+02 : f32
    %60 = vector.broadcast %cst_11 : f32 to vector<8x8xf32>
    %61 = arith.mulf %60, %59 : vector<8x8xf32>
    %62 = math.exp %61 : vector<8x8xf32>
    %63 = arith.mulf %62, %56 : vector<8x8xf32>
    %cst_12 = arith.constant dense<0.000000e+00> : vector<8xf32>
    %64 = vector.multi_reduction <add>, %63, %cst_12 [1] : vector<8x8xf32> to vector<8xf32>
    %65 = vector.shape_cast %64 : vector<8xf32> to vector<8x1xf32>
    %cst_13 = arith.constant 2.500000e-01 : f32
    %66 = vector.broadcast %cst_13 : f32 to vector<8x1xf32>
    %67 = arith.mulf %66, %65 : vector<8x1xf32>
    %cst_14 = arith.constant 0.148571432 : f32
    %68 = vector.broadcast %cst_14 : f32 to vector<8x8xf32>
    %69 = arith.subf %37, %68 : vector<8x8xf32>
    %70 = arith.mulf %69, %69 : vector<8x8xf32>
    %cst_15 = arith.constant -1.600000e+02 : f32
    %71 = vector.broadcast %cst_15 : f32 to vector<8x8xf32>
    %72 = arith.mulf %71, %70 : vector<8x8xf32>
    %73 = math.exp %72 : vector<8x8xf32>
    %74 = arith.mulf %73, %56 : vector<8x8xf32>
    %cst_16 = arith.constant dense<0.000000e+00> : vector<8xf32>
    %75 = vector.multi_reduction <add>, %74, %cst_16 [1] : vector<8x8xf32> to vector<8xf32>
    %76 = vector.shape_cast %75 : vector<8xf32> to vector<8x1xf32>
    %cst_17 = arith.constant 2.500000e-01 : f32
    %77 = vector.broadcast %cst_17 : f32 to vector<8x1xf32>
    %78 = arith.mulf %77, %76 : vector<8x1xf32>
    %cst_18 = arith.constant 0.20714286 : f32
    %79 = vector.broadcast %cst_18 : f32 to vector<8x8xf32>
    %80 = arith.subf %37, %79 : vector<8x8xf32>
    %81 = arith.mulf %80, %80 : vector<8x8xf32>
    %cst_19 = arith.constant -1.600000e+02 : f32
    %82 = vector.broadcast %cst_19 : f32 to vector<8x8xf32>
    %83 = arith.mulf %82, %81 : vector<8x8xf32>
    %84 = math.exp %83 : vector<8x8xf32>
    %85 = arith.mulf %84, %56 : vector<8x8xf32>
    %cst_20 = arith.constant dense<0.000000e+00> : vector<8xf32>
    %86 = vector.multi_reduction <add>, %85, %cst_20 [1] : vector<8x8xf32> to vector<8xf32>
    %87 = vector.shape_cast %86 : vector<8xf32> to vector<8x1xf32>
    %cst_21 = arith.constant 2.500000e-01 : f32
    %88 = vector.broadcast %cst_21 : f32 to vector<8x1xf32>
    %89 = arith.mulf %88, %87 : vector<8x1xf32>
    %cst_22 = arith.constant 0.265714288 : f32
    %90 = vector.broadcast %cst_22 : f32 to vector<8x8xf32>
    %91 = arith.subf %37, %90 : vector<8x8xf32>
    %92 = arith.mulf %91, %91 : vector<8x8xf32>
    %cst_23 = arith.constant -1.600000e+02 : f32
    %93 = vector.broadcast %cst_23 : f32 to vector<8x8xf32>
    %94 = arith.mulf %93, %92 : vector<8x8xf32>
    %95 = math.exp %94 : vector<8x8xf32>
    %96 = arith.mulf %95, %56 : vector<8x8xf32>
    %cst_24 = arith.constant dense<0.000000e+00> : vector<8xf32>
    %97 = vector.multi_reduction <add>, %96, %cst_24 [1] : vector<8x8xf32> to vector<8xf32>
    %98 = vector.shape_cast %97 : vector<8xf32> to vector<8x1xf32>
    %cst_25 = arith.constant 2.500000e-01 : f32
    %99 = vector.broadcast %cst_25 : f32 to vector<8x1xf32>
    %100 = arith.mulf %99, %98 : vector<8x1xf32>
    %cst_26 = arith.constant 0.324285716 : f32
    %101 = vector.broadcast %cst_26 : f32 to vector<8x8xf32>
    %102 = arith.subf %37, %101 : vector<8x8xf32>
    %103 = arith.mulf %102, %102 : vector<8x8xf32>
    %cst_27 = arith.constant -1.600000e+02 : f32
    %104 = vector.broadcast %cst_27 : f32 to vector<8x8xf32>
    %105 = arith.mulf %104, %103 : vector<8x8xf32>
    %106 = math.exp %105 : vector<8x8xf32>
    %107 = arith.mulf %106, %56 : vector<8x8xf32>
    %cst_28 = arith.constant dense<0.000000e+00> : vector<8xf32>
    %108 = vector.multi_reduction <add>, %107, %cst_28 [1] : vector<8x8xf32> to vector<8xf32>
    %109 = vector.shape_cast %108 : vector<8xf32> to vector<8x1xf32>
    %cst_29 = arith.constant 2.500000e-01 : f32
    %110 = vector.broadcast %cst_29 : f32 to vector<8x1xf32>
    %111 = arith.mulf %110, %109 : vector<8x1xf32>
    %cst_30 = arith.constant 0.382857144 : f32
    %112 = vector.broadcast %cst_30 : f32 to vector<8x8xf32>
    %113 = arith.subf %37, %112 : vector<8x8xf32>
    %114 = arith.mulf %113, %113 : vector<8x8xf32>
    %cst_31 = arith.constant -1.600000e+02 : f32
    %115 = vector.broadcast %cst_31 : f32 to vector<8x8xf32>
    %116 = arith.mulf %115, %114 : vector<8x8xf32>
    %117 = math.exp %116 : vector<8x8xf32>
    %118 = arith.mulf %117, %56 : vector<8x8xf32>
    %cst_32 = arith.constant dense<0.000000e+00> : vector<8xf32>
    %119 = vector.multi_reduction <add>, %118, %cst_32 [1] : vector<8x8xf32> to vector<8xf32>
    %120 = vector.shape_cast %119 : vector<8xf32> to vector<8x1xf32>
    %cst_33 = arith.constant 2.500000e-01 : f32
    %121 = vector.broadcast %cst_33 : f32 to vector<8x1xf32>
    %122 = arith.mulf %121, %120 : vector<8x1xf32>
    %cst_34 = arith.constant 0.441428572 : f32
    %123 = vector.broadcast %cst_34 : f32 to vector<8x8xf32>
    %124 = arith.subf %37, %123 : vector<8x8xf32>
    %125 = arith.mulf %124, %124 : vector<8x8xf32>
    %cst_35 = arith.constant -1.600000e+02 : f32
    %126 = vector.broadcast %cst_35 : f32 to vector<8x8xf32>
    %127 = arith.mulf %126, %125 : vector<8x8xf32>
    %128 = math.exp %127 : vector<8x8xf32>
    %129 = arith.mulf %128, %56 : vector<8x8xf32>
    %cst_36 = arith.constant dense<0.000000e+00> : vector<8xf32>
    %130 = vector.multi_reduction <add>, %129, %cst_36 [1] : vector<8x8xf32> to vector<8xf32>
    %131 = vector.shape_cast %130 : vector<8xf32> to vector<8x1xf32>
    %cst_37 = arith.constant 2.500000e-01 : f32
    %132 = vector.broadcast %cst_37 : f32 to vector<8x1xf32>
    %133 = arith.mulf %132, %131 : vector<8x1xf32>
    %cst_38 = arith.constant 5.000000e-01 : f32
    %134 = vector.broadcast %cst_38 : f32 to vector<8x8xf32>
    %135 = arith.subf %37, %134 : vector<8x8xf32>
    %136 = arith.mulf %135, %135 : vector<8x8xf32>
    %cst_39 = arith.constant -1.600000e+02 : f32
    %137 = vector.broadcast %cst_39 : f32 to vector<8x8xf32>
    %138 = arith.mulf %137, %136 : vector<8x8xf32>
    %139 = math.exp %138 : vector<8x8xf32>
    %140 = arith.mulf %139, %56 : vector<8x8xf32>
    %cst_40 = arith.constant dense<0.000000e+00> : vector<8xf32>
    %141 = vector.multi_reduction <add>, %140, %cst_40 [1] : vector<8x8xf32> to vector<8xf32>
    %142 = vector.shape_cast %141 : vector<8xf32> to vector<8x1xf32>
    %cst_41 = arith.constant 2.500000e-01 : f32
    %143 = vector.broadcast %cst_41 : f32 to vector<8x1xf32>
    %144 = arith.mulf %143, %142 : vector<8x1xf32>
    %cst_42 = arith.constant 3.500000e-01 : f32
    %145 = vector.broadcast %cst_42 : f32 to vector<8x8xf32>
    %146 = arith.cmpf olt, %37, %145 : vector<8x8xf32>
    %cst_43 = arith.constant 8.97597885 : f32
    %147 = vector.broadcast %cst_43 : f32 to vector<8x8xf32>
    %148 = arith.mulf %37, %147 : vector<8x8xf32>
    %149 = math.cos %148 : vector<8x8xf32>
    %cst_44 = arith.constant 5.000000e-01 : f32
    %150 = vector.broadcast %cst_44 : f32 to vector<8x8xf32>
    %151 = arith.mulf %150, %149 : vector<8x8xf32>
    %cst_45 = arith.constant 5.000000e-01 : f32
    %152 = vector.broadcast %cst_45 : f32 to vector<8x8xf32>
    %153 = arith.addf %151, %152 : vector<8x8xf32>
    %cst_46 = arith.constant 0.000000e+00 : f32
    %154 = vector.broadcast %cst_46 : f32 to vector<8x8xf32>
    %155 = arith.select %146, %153, %154 : vector<8x8xi1>, vector<8x8xf32>
    %156 = arith.mulf %155, %44 : vector<8x8xf32>
    %157 = vector.extract_strided_slice %35 {offsets = [0, 0], sizes = [8, 1], strides = [1, 1]} : vector<8x3xf32> to vector<8x1xf32>
    %158 = vector.broadcast %4 : vector<1x8xf32> to vector<8x8xf32>
    %159 = vector.broadcast %157 : vector<8x1xf32> to vector<8x8xf32>
    %160 = arith.subf %158, %159 : vector<8x8xf32>
    %161 = vector.extract_strided_slice %35 {offsets = [0, 1], sizes = [8, 1], strides = [1, 1]} : vector<8x3xf32> to vector<8x1xf32>
    %162 = vector.broadcast %5 : vector<1x8xf32> to vector<8x8xf32>
    %163 = vector.broadcast %161 : vector<8x1xf32> to vector<8x8xf32>
    %164 = arith.subf %162, %163 : vector<8x8xf32>
    %165 = vector.extract_strided_slice %35 {offsets = [0, 2], sizes = [8, 1], strides = [1, 1]} : vector<8x3xf32> to vector<8x1xf32>
    %166 = vector.broadcast %6 : vector<1x8xf32> to vector<8x8xf32>
    %167 = vector.broadcast %165 : vector<8x1xf32> to vector<8x8xf32>
    %168 = arith.subf %166, %167 : vector<8x8xf32>
    %169 = vector.shape_cast %160 : vector<8x8xf32> to vector<8x8x1xf32>
    %170 = vector.shape_cast %160 : vector<8x8xf32> to vector<8x1x8xf32>
    %171 = vector.broadcast %169 : vector<8x8x1xf32> to vector<8x8x8xf32>
    %172 = vector.broadcast %170 : vector<8x1x8xf32> to vector<8x8x8xf32>
    %173 = arith.mulf %171, %172 : vector<8x8x8xf32>
    %174 = vector.shape_cast %164 : vector<8x8xf32> to vector<8x8x1xf32>
    %175 = vector.shape_cast %164 : vector<8x8xf32> to vector<8x1x8xf32>
    %176 = vector.broadcast %174 : vector<8x8x1xf32> to vector<8x8x8xf32>
    %177 = vector.broadcast %175 : vector<8x1x8xf32> to vector<8x8x8xf32>
    %178 = arith.mulf %176, %177 : vector<8x8x8xf32>
    %179 = arith.addf %173, %178 : vector<8x8x8xf32>
    %180 = vector.shape_cast %168 : vector<8x8xf32> to vector<8x8x1xf32>
    %181 = vector.shape_cast %168 : vector<8x8xf32> to vector<8x1x8xf32>
    %182 = vector.broadcast %180 : vector<8x8x1xf32> to vector<8x8x8xf32>
    %183 = vector.broadcast %181 : vector<8x1x8xf32> to vector<8x8x8xf32>
    %184 = arith.mulf %182, %183 : vector<8x8x8xf32>
    %185 = arith.addf %179, %184 : vector<8x8x8xf32>
    %186 = vector.shape_cast %37 : vector<8x8xf32> to vector<8x8x1xf32>
    %187 = vector.shape_cast %37 : vector<8x8xf32> to vector<8x1x8xf32>
    %cst_47 = arith.constant 0.949999988 : f32
    %188 = vector.broadcast %cst_47 : f32 to vector<8x8x8xf32>
    %189 = arith.mulf %188, %185 : vector<8x8x8xf32>
    %190 = vector.broadcast %186 : vector<8x8x1xf32> to vector<8x8x8xf32>
    %191 = vector.broadcast %187 : vector<8x1x8xf32> to vector<8x8x8xf32>
    %192 = arith.mulf %190, %191 : vector<8x8x8xf32>
    %cst_48 = arith.constant 1.000000e-10 : f32
    %193 = vector.broadcast %cst_48 : f32 to vector<8x8x8xf32>
    %194 = arith.addf %192, %193 : vector<8x8x8xf32>
    %195 = arith.divf %189, %194 : vector<8x8x8xf32>
    %cst_49 = arith.constant -0.949999988 : f32
    %cst_50 = arith.constant 0.949999988 : f32
    %196 = vector.broadcast %cst_49 : f32 to vector<8x8x8xf32>
    %197 = arith.maximumf %196, %195 : vector<8x8x8xf32>
    %198 = vector.broadcast %cst_50 : f32 to vector<8x8x8xf32>
    %199 = arith.minimumf %198, %197 : vector<8x8x8xf32>
    %200 = arith.mulf %199, %199 : vector<8x8x8xf32>
    %cst_51 = arith.constant 1.000000e+00 : f32
    %201 = vector.broadcast %cst_51 : f32 to vector<8x8x8xf32>
    %202 = arith.subf %201, %200 : vector<8x8x8xf32>
    %cst_52 = arith.constant 0.000000e+00 : f32
    %203 = vector.broadcast %cst_52 : f32 to vector<8x8x8xf32>
    %204 = arith.maximumf %202, %203 : vector<8x8x8xf32>
    %205 = math.sqrt %204 : vector<8x8x8xf32>
    %206 = vector.broadcast %186 : vector<8x8x1xf32> to vector<8x8x8xf32>
    %207 = vector.broadcast %187 : vector<8x1x8xf32> to vector<8x8x8xf32>
    %208 = arith.addf %206, %207 : vector<8x8x8xf32>
    %cst_53 = arith.constant 5.000000e-01 : f32
    %209 = vector.broadcast %cst_53 : f32 to vector<8x8x8xf32>
    %210 = arith.mulf %209, %208 : vector<8x8x8xf32>
    %211 = vector.shape_cast %156 : vector<8x8xf32> to vector<8x8x1xf32>
    %212 = vector.shape_cast %156 : vector<8x8xf32> to vector<8x1x8xf32>
    %213 = vector.broadcast %211 : vector<8x8x1xf32> to vector<8x8x8xf32>
    %214 = vector.broadcast %212 : vector<8x1x8xf32> to vector<8x8x8xf32>
    %215 = arith.mulf %213, %214 : vector<8x8x8xf32>
    %216 = vector.shape_cast %29 : vector<8x8xf32> to vector<1x8x8xf32>
    %217 = vector.broadcast %216 : vector<1x8x8xf32> to vector<8x8x8xf32>
    %218 = arith.mulf %215, %217 : vector<8x8x8xf32>
    %cst_54 = arith.constant 0.923879504 : f32
    %219 = vector.broadcast %cst_54 : f32 to vector<8x8x8xf32>
    %220 = arith.mulf %199, %219 : vector<8x8x8xf32>
    %cst_55 = arith.constant 1.000000e+00 : f32
    %221 = vector.broadcast %cst_55 : f32 to vector<8x8x8xf32>
    %222 = arith.addf %221, %220 : vector<8x8x8xf32>
    %cst_56 = arith.constant 0.382683456 : f32
    %223 = vector.broadcast %cst_56 : f32 to vector<8x8x8xf32>
    %224 = arith.mulf %205, %223 : vector<8x8x8xf32>
    %225 = arith.addf %222, %224 : vector<8x8x8xf32>
    %cst_57 = arith.constant 5.000000e-01 : f32
    %226 = vector.broadcast %cst_57 : f32 to vector<8x8x8xf32>
    %227 = arith.mulf %226, %225 : vector<8x8x8xf32>
    %cst_58 = arith.constant 0.000000e+00 : f32
    %228 = vector.broadcast %cst_58 : f32 to vector<8x8x8xf32>
    %229 = arith.maximumf %227, %228 : vector<8x8x8xf32>
    %230 = arith.mulf %229, %229 : vector<8x8x8xf32>
    %231 = arith.mulf %230, %230 : vector<8x8x8xf32>
    %232 = arith.mulf %231, %231 : vector<8x8x8xf32>
    %233 = arith.mulf %232, %232 : vector<8x8x8xf32>
    %234 = arith.mulf %233, %233 : vector<8x8x8xf32>
    %cst_59 = arith.constant 0.382683456 : f32
    %235 = vector.broadcast %cst_59 : f32 to vector<8x8x8xf32>
    %236 = arith.mulf %199, %235 : vector<8x8x8xf32>
    %cst_60 = arith.constant 1.000000e+00 : f32
    %237 = vector.broadcast %cst_60 : f32 to vector<8x8x8xf32>
    %238 = arith.addf %237, %236 : vector<8x8x8xf32>
    %cst_61 = arith.constant 0.923879504 : f32
    %239 = vector.broadcast %cst_61 : f32 to vector<8x8x8xf32>
    %240 = arith.mulf %205, %239 : vector<8x8x8xf32>
    %241 = arith.addf %238, %240 : vector<8x8x8xf32>
    %cst_62 = arith.constant 5.000000e-01 : f32
    %242 = vector.broadcast %cst_62 : f32 to vector<8x8x8xf32>
    %243 = arith.mulf %242, %241 : vector<8x8x8xf32>
    %cst_63 = arith.constant 0.000000e+00 : f32
    %244 = vector.broadcast %cst_63 : f32 to vector<8x8x8xf32>
    %245 = arith.maximumf %243, %244 : vector<8x8x8xf32>
    %246 = arith.mulf %245, %245 : vector<8x8x8xf32>
    %247 = arith.mulf %246, %246 : vector<8x8x8xf32>
    %248 = arith.mulf %247, %247 : vector<8x8x8xf32>
    %249 = arith.mulf %248, %248 : vector<8x8x8xf32>
    %250 = arith.mulf %249, %249 : vector<8x8x8xf32>
    %cst_64 = arith.constant -0.382683396 : f32
    %251 = vector.broadcast %cst_64 : f32 to vector<8x8x8xf32>
    %252 = arith.mulf %199, %251 : vector<8x8x8xf32>
    %cst_65 = arith.constant 1.000000e+00 : f32
    %253 = vector.broadcast %cst_65 : f32 to vector<8x8x8xf32>
    %254 = arith.addf %253, %252 : vector<8x8x8xf32>
    %cst_66 = arith.constant 0.923879563 : f32
    %255 = vector.broadcast %cst_66 : f32 to vector<8x8x8xf32>
    %256 = arith.mulf %205, %255 : vector<8x8x8xf32>
    %257 = arith.addf %254, %256 : vector<8x8x8xf32>
    %cst_67 = arith.constant 5.000000e-01 : f32
    %258 = vector.broadcast %cst_67 : f32 to vector<8x8x8xf32>
    %259 = arith.mulf %258, %257 : vector<8x8x8xf32>
    %cst_68 = arith.constant 0.000000e+00 : f32
    %260 = vector.broadcast %cst_68 : f32 to vector<8x8x8xf32>
    %261 = arith.maximumf %259, %260 : vector<8x8x8xf32>
    %262 = arith.mulf %261, %261 : vector<8x8x8xf32>
    %263 = arith.mulf %262, %262 : vector<8x8x8xf32>
    %264 = arith.mulf %263, %263 : vector<8x8x8xf32>
    %265 = arith.mulf %264, %264 : vector<8x8x8xf32>
    %266 = arith.mulf %265, %265 : vector<8x8x8xf32>
    %cst_69 = arith.constant -0.923879504 : f32
    %267 = vector.broadcast %cst_69 : f32 to vector<8x8x8xf32>
    %268 = arith.mulf %199, %267 : vector<8x8x8xf32>
    %cst_70 = arith.constant 1.000000e+00 : f32
    %269 = vector.broadcast %cst_70 : f32 to vector<8x8x8xf32>
    %270 = arith.addf %269, %268 : vector<8x8x8xf32>
    %cst_71 = arith.constant 0.382683486 : f32
    %271 = vector.broadcast %cst_71 : f32 to vector<8x8x8xf32>
    %272 = arith.mulf %205, %271 : vector<8x8x8xf32>
    %273 = arith.addf %270, %272 : vector<8x8x8xf32>
    %cst_72 = arith.constant 5.000000e-01 : f32
    %274 = vector.broadcast %cst_72 : f32 to vector<8x8x8xf32>
    %275 = arith.mulf %274, %273 : vector<8x8x8xf32>
    %cst_73 = arith.constant 0.000000e+00 : f32
    %276 = vector.broadcast %cst_73 : f32 to vector<8x8x8xf32>
    %277 = arith.maximumf %275, %276 : vector<8x8x8xf32>
    %278 = arith.mulf %277, %277 : vector<8x8x8xf32>
    %279 = arith.mulf %278, %278 : vector<8x8x8xf32>
    %280 = arith.mulf %279, %279 : vector<8x8x8xf32>
    %281 = arith.mulf %280, %280 : vector<8x8x8xf32>
    %282 = arith.mulf %281, %281 : vector<8x8x8xf32>
    %cst_74 = arith.constant 9.000000e-02 : f32
    %283 = vector.broadcast %cst_74 : f32 to vector<8x8x8xf32>
    %284 = arith.subf %210, %283 : vector<8x8x8xf32>
    %285 = arith.mulf %284, %284 : vector<8x8x8xf32>
    %cst_75 = arith.constant -8.000000e+01 : f32
    %286 = vector.broadcast %cst_75 : f32 to vector<8x8x8xf32>
    %287 = arith.mulf %286, %285 : vector<8x8x8xf32>
    %288 = math.exp %287 : vector<8x8x8xf32>
    %289 = arith.mulf %218, %288 : vector<8x8x8xf32>
    %290 = arith.mulf %289, %234 : vector<8x8x8xf32>
    %cst_76 = arith.constant dense<0.000000e+00> : vector<8x8xf32>
    %291 = vector.multi_reduction <add>, %290, %cst_76 [2] : vector<8x8x8xf32> to vector<8x8xf32>
    %cst_77 = arith.constant dense<0.000000e+00> : vector<8xf32>
    %292 = vector.multi_reduction <add>, %291, %cst_77 [1] : vector<8x8xf32> to vector<8xf32>
    %293 = vector.shape_cast %292 : vector<8xf32> to vector<8x1xf32>
    %294 = arith.mulf %289, %250 : vector<8x8x8xf32>
    %cst_78 = arith.constant dense<0.000000e+00> : vector<8x8xf32>
    %295 = vector.multi_reduction <add>, %294, %cst_78 [2] : vector<8x8x8xf32> to vector<8x8xf32>
    %cst_79 = arith.constant dense<0.000000e+00> : vector<8xf32>
    %296 = vector.multi_reduction <add>, %295, %cst_79 [1] : vector<8x8xf32> to vector<8xf32>
    %297 = vector.shape_cast %296 : vector<8xf32> to vector<8x1xf32>
    %298 = arith.mulf %289, %266 : vector<8x8x8xf32>
    %cst_80 = arith.constant dense<0.000000e+00> : vector<8x8xf32>
    %299 = vector.multi_reduction <add>, %298, %cst_80 [2] : vector<8x8x8xf32> to vector<8x8xf32>
    %cst_81 = arith.constant dense<0.000000e+00> : vector<8xf32>
    %300 = vector.multi_reduction <add>, %299, %cst_81 [1] : vector<8x8xf32> to vector<8xf32>
    %301 = vector.shape_cast %300 : vector<8xf32> to vector<8x1xf32>
    %302 = arith.mulf %289, %282 : vector<8x8x8xf32>
    %cst_82 = arith.constant dense<0.000000e+00> : vector<8x8xf32>
    %303 = vector.multi_reduction <add>, %302, %cst_82 [2] : vector<8x8x8xf32> to vector<8x8xf32>
    %cst_83 = arith.constant dense<0.000000e+00> : vector<8xf32>
    %304 = vector.multi_reduction <add>, %303, %cst_83 [1] : vector<8x8xf32> to vector<8xf32>
    %305 = vector.shape_cast %304 : vector<8xf32> to vector<8x1xf32>
    %cst_84 = arith.constant 1.700000e-01 : f32
    %306 = vector.broadcast %cst_84 : f32 to vector<8x8x8xf32>
    %307 = arith.subf %210, %306 : vector<8x8x8xf32>
    %308 = arith.mulf %307, %307 : vector<8x8x8xf32>
    %cst_85 = arith.constant -8.000000e+01 : f32
    %309 = vector.broadcast %cst_85 : f32 to vector<8x8x8xf32>
    %310 = arith.mulf %309, %308 : vector<8x8x8xf32>
    %311 = math.exp %310 : vector<8x8x8xf32>
    %312 = arith.mulf %218, %311 : vector<8x8x8xf32>
    %313 = arith.mulf %312, %234 : vector<8x8x8xf32>
    %cst_86 = arith.constant dense<0.000000e+00> : vector<8x8xf32>
    %314 = vector.multi_reduction <add>, %313, %cst_86 [2] : vector<8x8x8xf32> to vector<8x8xf32>
    %cst_87 = arith.constant dense<0.000000e+00> : vector<8xf32>
    %315 = vector.multi_reduction <add>, %314, %cst_87 [1] : vector<8x8xf32> to vector<8xf32>
    %316 = vector.shape_cast %315 : vector<8xf32> to vector<8x1xf32>
    %317 = arith.mulf %312, %250 : vector<8x8x8xf32>
    %cst_88 = arith.constant dense<0.000000e+00> : vector<8x8xf32>
    %318 = vector.multi_reduction <add>, %317, %cst_88 [2] : vector<8x8x8xf32> to vector<8x8xf32>
    %cst_89 = arith.constant dense<0.000000e+00> : vector<8xf32>
    %319 = vector.multi_reduction <add>, %318, %cst_89 [1] : vector<8x8xf32> to vector<8xf32>
    %320 = vector.shape_cast %319 : vector<8xf32> to vector<8x1xf32>
    %321 = arith.mulf %312, %266 : vector<8x8x8xf32>
    %cst_90 = arith.constant dense<0.000000e+00> : vector<8x8xf32>
    %322 = vector.multi_reduction <add>, %321, %cst_90 [2] : vector<8x8x8xf32> to vector<8x8xf32>
    %cst_91 = arith.constant dense<0.000000e+00> : vector<8xf32>
    %323 = vector.multi_reduction <add>, %322, %cst_91 [1] : vector<8x8xf32> to vector<8xf32>
    %324 = vector.shape_cast %323 : vector<8xf32> to vector<8x1xf32>
    %325 = arith.mulf %312, %282 : vector<8x8x8xf32>
    %cst_92 = arith.constant dense<0.000000e+00> : vector<8x8xf32>
    %326 = vector.multi_reduction <add>, %325, %cst_92 [2] : vector<8x8x8xf32> to vector<8x8xf32>
    %cst_93 = arith.constant dense<0.000000e+00> : vector<8xf32>
    %327 = vector.multi_reduction <add>, %326, %cst_93 [1] : vector<8x8xf32> to vector<8xf32>
    %328 = vector.shape_cast %327 : vector<8xf32> to vector<8x1xf32>
    %cst_94 = arith.constant 2.500000e-01 : f32
    %329 = vector.broadcast %cst_94 : f32 to vector<8x8x8xf32>
    %330 = arith.subf %210, %329 : vector<8x8x8xf32>
    %331 = arith.mulf %330, %330 : vector<8x8x8xf32>
    %cst_95 = arith.constant -8.000000e+01 : f32
    %332 = vector.broadcast %cst_95 : f32 to vector<8x8x8xf32>
    %333 = arith.mulf %332, %331 : vector<8x8x8xf32>
    %334 = math.exp %333 : vector<8x8x8xf32>
    %335 = arith.mulf %218, %334 : vector<8x8x8xf32>
    %336 = arith.mulf %335, %234 : vector<8x8x8xf32>
    %cst_96 = arith.constant dense<0.000000e+00> : vector<8x8xf32>
    %337 = vector.multi_reduction <add>, %336, %cst_96 [2] : vector<8x8x8xf32> to vector<8x8xf32>
    %cst_97 = arith.constant dense<0.000000e+00> : vector<8xf32>
    %338 = vector.multi_reduction <add>, %337, %cst_97 [1] : vector<8x8xf32> to vector<8xf32>
    %339 = vector.shape_cast %338 : vector<8xf32> to vector<8x1xf32>
    %340 = arith.mulf %335, %250 : vector<8x8x8xf32>
    %cst_98 = arith.constant dense<0.000000e+00> : vector<8x8xf32>
    %341 = vector.multi_reduction <add>, %340, %cst_98 [2] : vector<8x8x8xf32> to vector<8x8xf32>
    %cst_99 = arith.constant dense<0.000000e+00> : vector<8xf32>
    %342 = vector.multi_reduction <add>, %341, %cst_99 [1] : vector<8x8xf32> to vector<8xf32>
    %343 = vector.shape_cast %342 : vector<8xf32> to vector<8x1xf32>
    %344 = arith.mulf %335, %266 : vector<8x8x8xf32>
    %cst_100 = arith.constant dense<0.000000e+00> : vector<8x8xf32>
    %345 = vector.multi_reduction <add>, %344, %cst_100 [2] : vector<8x8x8xf32> to vector<8x8xf32>
    %cst_101 = arith.constant dense<0.000000e+00> : vector<8xf32>
    %346 = vector.multi_reduction <add>, %345, %cst_101 [1] : vector<8x8xf32> to vector<8xf32>
    %347 = vector.shape_cast %346 : vector<8xf32> to vector<8x1xf32>
    %348 = arith.mulf %335, %282 : vector<8x8x8xf32>
    %cst_102 = arith.constant dense<0.000000e+00> : vector<8x8xf32>
    %349 = vector.multi_reduction <add>, %348, %cst_102 [2] : vector<8x8x8xf32> to vector<8x8xf32>
    %cst_103 = arith.constant dense<0.000000e+00> : vector<8xf32>
    %350 = vector.multi_reduction <add>, %349, %cst_103 [1] : vector<8x8xf32> to vector<8xf32>
    %351 = vector.shape_cast %350 : vector<8xf32> to vector<8x1xf32>
    %cst_104 = arith.constant 3.300000e-01 : f32
    %352 = vector.broadcast %cst_104 : f32 to vector<8x8x8xf32>
    %353 = arith.subf %210, %352 : vector<8x8x8xf32>
    %354 = arith.mulf %353, %353 : vector<8x8x8xf32>
    %cst_105 = arith.constant -8.000000e+01 : f32
    %355 = vector.broadcast %cst_105 : f32 to vector<8x8x8xf32>
    %356 = arith.mulf %355, %354 : vector<8x8x8xf32>
    %357 = math.exp %356 : vector<8x8x8xf32>
    %358 = arith.mulf %218, %357 : vector<8x8x8xf32>
    %359 = arith.mulf %358, %234 : vector<8x8x8xf32>
    %cst_106 = arith.constant dense<0.000000e+00> : vector<8x8xf32>
    %360 = vector.multi_reduction <add>, %359, %cst_106 [2] : vector<8x8x8xf32> to vector<8x8xf32>
    %cst_107 = arith.constant dense<0.000000e+00> : vector<8xf32>
    %361 = vector.multi_reduction <add>, %360, %cst_107 [1] : vector<8x8xf32> to vector<8xf32>
    %362 = vector.shape_cast %361 : vector<8xf32> to vector<8x1xf32>
    %363 = arith.mulf %358, %250 : vector<8x8x8xf32>
    %cst_108 = arith.constant dense<0.000000e+00> : vector<8x8xf32>
    %364 = vector.multi_reduction <add>, %363, %cst_108 [2] : vector<8x8x8xf32> to vector<8x8xf32>
    %cst_109 = arith.constant dense<0.000000e+00> : vector<8xf32>
    %365 = vector.multi_reduction <add>, %364, %cst_109 [1] : vector<8x8xf32> to vector<8xf32>
    %366 = vector.shape_cast %365 : vector<8xf32> to vector<8x1xf32>
    %367 = arith.mulf %358, %266 : vector<8x8x8xf32>
    %cst_110 = arith.constant dense<0.000000e+00> : vector<8x8xf32>
    %368 = vector.multi_reduction <add>, %367, %cst_110 [2] : vector<8x8x8xf32> to vector<8x8xf32>
    %cst_111 = arith.constant dense<0.000000e+00> : vector<8xf32>
    %369 = vector.multi_reduction <add>, %368, %cst_111 [1] : vector<8x8xf32> to vector<8xf32>
    %370 = vector.shape_cast %369 : vector<8xf32> to vector<8x1xf32>
    %371 = arith.mulf %358, %282 : vector<8x8x8xf32>
    %cst_112 = arith.constant dense<0.000000e+00> : vector<8x8xf32>
    %372 = vector.multi_reduction <add>, %371, %cst_112 [2] : vector<8x8x8xf32> to vector<8x8xf32>
    %cst_113 = arith.constant dense<0.000000e+00> : vector<8xf32>
    %373 = vector.multi_reduction <add>, %372, %cst_113 [1] : vector<8x8xf32> to vector<8xf32>
    %374 = vector.shape_cast %373 : vector<8xf32> to vector<8x1xf32>
    %375 = arith.index_cast %33 : i32 to index
    %c0_114 = arith.constant 0 : index
    %376 = vector.load %arg1[%375, %c0_114] : memref<8x104xf32, #tpu.memory_space<vmem>>, vector<8x104xf32>
    %377 = tpu.concatenate %67, %78, %89, %100, %111, %122, %133, %144, %293, %297, %301, %305, %316, %320, %324, %328 in 1 : vector<8x1xf32>, vector<8x1xf32>, vector<8x1xf32>, vector<8x1xf32>, vector<8x1xf32>, vector<8x1xf32>, vector<8x1xf32>, vector<8x1xf32>, vector<8x1xf32>, vector<8x1xf32>, vector<8x1xf32>, vector<8x1xf32>, vector<8x1xf32>, vector<8x1xf32>, vector<8x1xf32>, vector<8x1xf32> -> vector<8x16xf32>
    %378 = tpu.concatenate %339, %343, %347, %351, %362, %366, %370, %374, %376 in 1 : vector<8x1xf32>, vector<8x1xf32>, vector<8x1xf32>, vector<8x1xf32>, vector<8x1xf32>, vector<8x1xf32>, vector<8x1xf32>, vector<8x1xf32>, vector<8x104xf32> -> vector<8x112xf32>
    %379 = tpu.concatenate %377, %378 in 1 : vector<8x16xf32>, vector<8x112xf32> -> vector<8x128xf32>
    %380 = arith.index_cast %33 : i32 to index
    %c0_115 = arith.constant 0 : index
    %381 = vector.load %arg4[%380, %c0_115] : memref<8x128xf32, #tpu.memory_space<vmem>>, vector<8x128xf32>
    tpu.vector_store %arg4[%380, %c0_115], %379 {strides = array<i32>} : memref<8x128xf32, #tpu.memory_space<vmem>>, vector<8x128xf32>,
    %c1_i32 = arith.constant 1 : i32
    %c0_116 = arith.constant 0 : index
    %c0_117 = arith.constant 0 : index
    %382 = vector.load %arg4[%c0_116, %c0_117] : memref<8x128xf32, #tpu.memory_space<vmem>>, vector<8x128xf32>
    %c0_118 = arith.constant 0 : index
    %c0_119 = arith.constant 0 : index
    %383 = vector.load %arg3[%c0_118, %c0_119] : memref<8x8xf32, #tpu.memory_space<vmem>>, vector<8x8xf32>
    %cst_120 = arith.constant 5.200000e-01 : f32
    %384 = vector.broadcast %cst_120 : f32 to vector<8x8xf32>
    %385 = arith.cmpf olt, %383, %384 : vector<8x8xf32>
    %cst_121 = arith.constant 1.000000e+00 : f32
    %cst_122 = arith.constant 0.000000e+00 : f32
    %386 = vector.broadcast %cst_121 : f32 to vector<8x8xf32>
    %387 = vector.broadcast %cst_122 : f32 to vector<8x8xf32>
    %388 = arith.select %385, %386, %387 : vector<8x8xi1>, vector<8x8xf32>
    %cst_123 = arith.constant 1.000000e+00 : f32
    %389 = vector.broadcast %cst_123 : f32 to vector<8x8xf32>
    %390 = arith.subf %389, %32 : vector<8x8xf32>
    %391 = arith.mulf %388, %390 : vector<8x8xf32>
    %cst_124 = arith.constant dense<0.000000e+00> : vector<8xf32>
    %392 = vector.multi_reduction <add>, %391, %cst_124 [0] : vector<8x8xf32> to vector<8xf32>
    %393 = vector.shape_cast %392 : vector<8xf32> to vector<1x8xf32>
    %cst_125 = arith.constant 0.000000e+00 : f32
    %394 = vector.broadcast %cst_125 : f32 to vector<1x8xf32>
    %395 = arith.cmpf ogt, %393, %394 : vector<1x8xf32>
    %cst_126 = arith.constant 1.000000e+00 : f32
    %396 = vector.broadcast %cst_126 : f32 to vector<1x8xf32>
    %397 = arith.select %395, %393, %396 : vector<1x8xi1>, vector<1x8xf32>
    %cst_127 = arith.constant 1.000000e+00 : f32
    %398 = vector.broadcast %cst_127 : f32 to vector<1x8xf32>
    %399 = arith.divf %398, %397 : vector<1x8xf32>
    %400 = vector.broadcast %399 : vector<1x8xf32> to vector<8x8xf32>
    %401 = arith.mulf %391, %400 : vector<8x8xf32>
    %402 = arith.addf %32, %401 : vector<8x8xf32>
    %cst_128 = arith.constant 5.000000e-01 : f32
    %403 = vector.broadcast %cst_128 : f32 to vector<8x8xf32>
    %404 = arith.mulf %403, %402 : vector<8x8xf32>
    %c0_129 = arith.constant 0 : index
    %c0_130 = arith.constant 0 : index
    %405 = vector.load %arg2[%c0_129, %c0_130] : memref<8x1408xf32, #tpu.memory_space<vmem>>, vector<8x128xf32>
    tpu.vector_store %arg2[%c0_129, %c0_130], %382 {strides = array<i32>} : memref<8x1408xf32, #tpu.memory_space<vmem>>, vector<8x128xf32>,
    %cst_131 = arith.constant dense<0.000000e+00> : vector<8x8xf32>
    %406 = tpu.matmul %404, %404, %cst_131 {dimension_numbers = #tpu.dot_dimension_numbers<[1], [0], [0], [1], [0, 0, 1, 1], [], []>} : vector<8x8xf32>, vector<8x8xf32>, vector<8x8xf32> -> vector<8x8xf32>
    %407 = arith.subf %404, %406 : vector<8x8xf32>
    %cst_132 = arith.constant dense<0.000000e+00> : vector<8x128xf32>
    %408 = tpu.matmul %407, %382, %cst_132 {dimension_numbers = #tpu.dot_dimension_numbers<[1], [0], [0], [1], [0, 0, 1, 1], [], []>} : vector<8x8xf32>, vector<8x128xf32>, vector<8x128xf32> -> vector<8x128xf32>
    %409 = math.absf %408 : vector<8x128xf32>
    %c0_133 = arith.constant 0 : index
    %c128 = arith.constant 128 : index
    %410 = vector.load %arg2[%c0_133, %c128] : memref<8x1408xf32, #tpu.memory_space<vmem>>, vector<8x128xf32>
    tpu.vector_store %arg2[%c0_133, %c128], %409 {strides = array<i32>} : memref<8x1408xf32, #tpu.memory_space<vmem>>, vector<8x128xf32>,
    %cst_134 = arith.constant dense<0.000000e+00> : vector<8x8xf32>
    %411 = tpu.matmul %406, %406, %cst_134 {dimension_numbers = #tpu.dot_dimension_numbers<[1], [0], [0], [1], [0, 0, 1, 1], [], []>} : vector<8x8xf32>, vector<8x8xf32>, vector<8x8xf32> -> vector<8x8xf32>
    %412 = arith.subf %406, %411 : vector<8x8xf32>
    %cst_135 = arith.constant dense<0.000000e+00> : vector<8x128xf32>
    %413 = tpu.matmul %412, %382, %cst_135 {dimension_numbers = #tpu.dot_dimension_numbers<[1], [0], [0], [1], [0, 0, 1, 1], [], []>} : vector<8x8xf32>, vector<8x128xf32>, vector<8x128xf32> -> vector<8x128xf32>
    %414 = math.absf %413 : vector<8x128xf32>
    %c0_136 = arith.constant 0 : index
    %c256 = arith.constant 256 : index
    %415 = vector.load %arg2[%c0_136, %c256] : memref<8x1408xf32, #tpu.memory_space<vmem>>, vector<8x128xf32>
    tpu.vector_store %arg2[%c0_136, %c256], %414 {strides = array<i32>} : memref<8x1408xf32, #tpu.memory_space<vmem>>, vector<8x128xf32>,
    %cst_137 = arith.constant dense<0.000000e+00> : vector<8x128xf32>
    %416 = tpu.matmul %412, %409, %cst_137 {dimension_numbers = #tpu.dot_dimension_numbers<[1], [0], [0], [1], [0, 0, 1, 1], [], []>} : vector<8x8xf32>, vector<8x128xf32>, vector<8x128xf32> -> vector<8x128xf32>
    %417 = math.absf %416 : vector<8x128xf32>
    %c0_138 = arith.constant 0 : index
    %c640 = arith.constant 640 : index
    %418 = vector.load %arg2[%c0_138, %c640] : memref<8x1408xf32, #tpu.memory_space<vmem>>, vector<8x128xf32>
    tpu.vector_store %arg2[%c0_138, %c640], %417 {strides = array<i32>} : memref<8x1408xf32, #tpu.memory_space<vmem>>, vector<8x128xf32>,
    %cst_139 = arith.constant dense<0.000000e+00> : vector<8x8xf32>
    %419 = tpu.matmul %411, %411, %cst_139 {dimension_numbers = #tpu.dot_dimension_numbers<[1], [0], [0], [1], [0, 0, 1, 1], [], []>} : vector<8x8xf32>, vector<8x8xf32>, vector<8x8xf32> -> vector<8x8xf32>
    %420 = arith.subf %411, %419 : vector<8x8xf32>
    %cst_140 = arith.constant dense<0.000000e+00> : vector<8x128xf32>
    %421 = tpu.matmul %420, %382, %cst_140 {dimension_numbers = #tpu.dot_dimension_numbers<[1], [0], [0], [1], [0, 0, 1, 1], [], []>} : vector<8x8xf32>, vector<8x128xf32>, vector<8x128xf32> -> vector<8x128xf32>
    %422 = math.absf %421 : vector<8x128xf32>
    %c0_141 = arith.constant 0 : index
    %c384 = arith.constant 384 : index
    %423 = vector.load %arg2[%c0_141, %c384] : memref<8x1408xf32, #tpu.memory_space<vmem>>, vector<8x128xf32>
    tpu.vector_store %arg2[%c0_141, %c384], %422 {strides = array<i32>} : memref<8x1408xf32, #tpu.memory_space<vmem>>, vector<8x128xf32>,
    %cst_142 = arith.constant dense<0.000000e+00> : vector<8x128xf32>
    %424 = tpu.matmul %420, %409, %cst_142 {dimension_numbers = #tpu.dot_dimension_numbers<[1], [0], [0], [1], [0, 0, 1, 1], [], []>} : vector<8x8xf32>, vector<8x128xf32>, vector<8x128xf32> -> vector<8x128xf32>
    %425 = math.absf %424 : vector<8x128xf32>
    %c0_143 = arith.constant 0 : index
    %c768 = arith.constant 768 : index
    %426 = vector.load %arg2[%c0_143, %c768] : memref<8x1408xf32, #tpu.memory_space<vmem>>, vector<8x128xf32>
    tpu.vector_store %arg2[%c0_143, %c768], %425 {strides = array<i32>} : memref<8x1408xf32, #tpu.memory_space<vmem>>, vector<8x128xf32>,
    %cst_144 = arith.constant dense<0.000000e+00> : vector<8x128xf32>
    %427 = tpu.matmul %420, %414, %cst_144 {dimension_numbers = #tpu.dot_dimension_numbers<[1], [0], [0], [1], [0, 0, 1, 1], [], []>} : vector<8x8xf32>, vector<8x128xf32>, vector<8x128xf32> -> vector<8x128xf32>
    %428 = math.absf %427 : vector<8x128xf32>
    %c0_145 = arith.constant 0 : index
    %c896 = arith.constant 896 : index
    %429 = vector.load %arg2[%c0_145, %c896] : memref<8x1408xf32, #tpu.memory_space<vmem>>, vector<8x128xf32>
    tpu.vector_store %arg2[%c0_145, %c896], %428 {strides = array<i32>} : memref<8x1408xf32, #tpu.memory_space<vmem>>, vector<8x128xf32>,
    %cst_146 = arith.constant dense<0.000000e+00> : vector<8x8xf32>
    %430 = tpu.matmul %419, %419, %cst_146 {dimension_numbers = #tpu.dot_dimension_numbers<[1], [0], [0], [1], [0, 0, 1, 1], [], []>} : vector<8x8xf32>, vector<8x8xf32>, vector<8x8xf32> -> vector<8x8xf32>
    %431 = arith.subf %419, %430 : vector<8x8xf32>
    %cst_147 = arith.constant dense<0.000000e+00> : vector<8x128xf32>
    %432 = tpu.matmul %431, %382, %cst_147 {dimension_numbers = #tpu.dot_dimension_numbers<[1], [0], [0], [1], [0, 0, 1, 1], [], []>} : vector<8x8xf32>, vector<8x128xf32>, vector<8x128xf32> -> vector<8x128xf32>
    %433 = math.absf %432 : vector<8x128xf32>
    %c0_148 = arith.constant 0 : index
    %c512 = arith.constant 512 : index
    %434 = vector.load %arg2[%c0_148, %c512] : memref<8x1408xf32, #tpu.memory_space<vmem>>, vector<8x128xf32>
    tpu.vector_store %arg2[%c0_148, %c512], %433 {strides = array<i32>} : memref<8x1408xf32, #tpu.memory_space<vmem>>, vector<8x128xf32>,
    %cst_149 = arith.constant dense<0.000000e+00> : vector<8x128xf32>
    %435 = tpu.matmul %431, %409, %cst_149 {dimension_numbers = #tpu.dot_dimension_numbers<[1], [0], [0], [1], [0, 0, 1, 1], [], []>} : vector<8x8xf32>, vector<8x128xf32>, vector<8x128xf32> -> vector<8x128xf32>
    %436 = math.absf %435 : vector<8x128xf32>
    %c0_150 = arith.constant 0 : index
    %c1024 = arith.constant 1024 : index
    %437 = vector.load %arg2[%c0_150, %c1024] : memref<8x1408xf32, #tpu.memory_space<vmem>>, vector<8x128xf32>
    tpu.vector_store %arg2[%c0_150, %c1024], %436 {strides = array<i32>} : memref<8x1408xf32, #tpu.memory_space<vmem>>, vector<8x128xf32>,
    %cst_151 = arith.constant dense<0.000000e+00> : vector<8x128xf32>
    %438 = tpu.matmul %431, %414, %cst_151 {dimension_numbers = #tpu.dot_dimension_numbers<[1], [0], [0], [1], [0, 0, 1, 1], [], []>} : vector<8x8xf32>, vector<8x128xf32>, vector<8x128xf32> -> vector<8x128xf32>
    %439 = math.absf %438 : vector<8x128xf32>
    %c0_152 = arith.constant 0 : index
    %c1152 = arith.constant 1152 : index
    %440 = vector.load %arg2[%c0_152, %c1152] : memref<8x1408xf32, #tpu.memory_space<vmem>>, vector<8x128xf32>
    tpu.vector_store %arg2[%c0_152, %c1152], %439 {strides = array<i32>} : memref<8x1408xf32, #tpu.memory_space<vmem>>, vector<8x128xf32>,
    %cst_153 = arith.constant dense<0.000000e+00> : vector<8x128xf32>
    %441 = tpu.matmul %431, %422, %cst_153 {dimension_numbers = #tpu.dot_dimension_numbers<[1], [0], [0], [1], [0, 0, 1, 1], [], []>} : vector<8x8xf32>, vector<8x128xf32>, vector<8x128xf32> -> vector<8x128xf32>
    %442 = math.absf %441 : vector<8x128xf32>
    %c0_154 = arith.constant 0 : index
    %c1280 = arith.constant 1280 : index
    %443 = vector.load %arg2[%c0_154, %c1280] : memref<8x1408xf32, #tpu.memory_space<vmem>>, vector<8x128xf32>
    tpu.vector_store %arg2[%c0_154, %c1280], %442 {strides = array<i32>} : memref<8x1408xf32, #tpu.memory_space<vmem>>, vector<8x128xf32>,
    return
  }
}

</mosaic_0001>

<bundles_post_ra>
// kernel: ani_gsg_forward.1
= control target key start
LH: loop header
LB: loop body
LE: loop exit
PB: predicated region body
PF: predicated region fallthrough
CT: control target
= control target key end

     0   :  { %v4729_v0 = vmov 0   ;;  %v4730_v2 = vmov 2   ;;  %s4731_s11 = smov 127   ;;  %v4732_v3 = vmov 1   ;;  %s4733_s12 = smov 126   ;;  %v6919_v6 = vmov 0.0   ;;  %s6915_s0 = inlined_call_operand.vmem [shape: f32[8,3], index: 0, kind: input, shape index: {}]   ;;  %s6916_s1 = inlined_call_operand.vmem [shape: f32[8,104], index: 1, kind: input, shape index: {}]   ;;  %s6917_s2 = inlined_call_operand.vmem [shape: f32[8,1408], index: 2, kind: output, shape index: {}]  }
   0x1   :  { %4596 = vset.pattern.permute.xlu1 %v4729_v0  ;;  %v11_v1 = vld [vmem:[%s6915_s0] sm:$0xff]  ;;  %4598 = vset.pattern.permute.xlu0 %v4730_v2  ;;  %v119_v8 = vlaneseq  ;;  %vm4735_vm0 = vmmov 0   ;;  %vm155_vm1 = vcmask 64512   ;;  %s4743_s14 = smov 8  }
   0x2   :  { %116 = vperm.xlu1 %4596, %v11_v1   ;;  %45 = vrot.lane.b32.xlu0 %v11_v1, %s4731_s11 }
   0x3   :  { %4502 = vmatprep.subr.mxu0 %v6919_v6  ;;  %4507 = vmatprep.subr.mxu1 %v6919_v6  ;;  %v4766_v10 = vshrl.u32 %v119_v8, 7 }
   0x4   :  { %4504 = vmatprep.mubr.msk.f32.mxu0 %vm4735_vm0, %v6919_v6  ;;  %4509 = vmatprep.mubr.msk.f32.mxu1 %vm4735_vm0, %v6919_v6 }
   0x5   :  { %6975 = vst [vmem:[#allocation4_spill] sm:$0xff] %v4766_v10  ;;  %v4773_v11 = vsub.s32 0, %v4766_v10  ;;  %v4777_v14 = vsub.s32 1, %v4766_v10  ;;  %v4782_v17 = vsub.s32 5, %v4766_v10  ;;  %v4785_v18 = vsub.s32 2, %v4766_v10 }
   0x6   :  { %4597 = vset.pattern.permute.xlu1 %v4732_v3  ;;  %80 = vrot.lane.b32.xlu0 %v11_v1, %s4733_s12  ;;  %v4796_v23 = vsub.s32 7, %v4766_v10  ;;  %v4799_v24 = vsub.s32 3, %v4766_v10  ;;  %v4806_v27 = vsub.s32 4, %v4766_v10  ;;  %v4811_v29 = vsub.s32 6, %v4766_v10 }
   0x7   :  { %127 = vperm.xlu1 %4597, %v11_v1  }
   0xa   :  { %138 = vperm.xlu0 %4598, %v11_v1  }
   0xe   :  { %4600 = vset.pattern.permute.xlu0 %v4732_v3 }
   0xf   :  { %474 = vperm.xlu0 %4600, %v11_v1  }
  0x30   :  { %12 = vxpose.xlu1.b32.start.end [1/1] (short) (narrow) %v11_v1, 8 }
  0x4e   :  { %4599 = vset.pattern.permute.xlu1 %v4729_v0 }
  0x4f   :  { %469 = vperm.xlu1 %4599, %v11_v1  }
  0x53   :  { %4601 = vset.pattern.permute.xlu1 %v4730_v2 }
  0x54   :  { %479 = vperm.xlu1 %4601, %v11_v1   ;;  %v4847_v1 = vand.u32 127, %v119_v8 }
  0x56   :  { %6976 = vst [vmem:[#allocation5_spill] sm:$0xff] %v4847_v1  ;;  %vm164_vm4 = vcmp.eq.s32.totalorder %v4766_v10, %v4847_v1 }
  0x74   :  { %v46_v4 = vpop.permute.xlu0 %45 }
  0x75   :  { %48 = vxpose.xlu0.b32.start.end [1/1] (short) (narrow) %v46_v4, 8 }
  0x78   :  { %v81_v5 = vpop.permute.xlu0 %80 }
  0x79   :  { %83 = vxpose.xlu0.b32.start.end [1/1] (short) (narrow) %v81_v5, 8 }
  0x81   :  { %v117_v7 = vpop.permute.xlu1 %116 }
  0x86   :  { %v128_v9 = vpop.permute.xlu1 %127 }
  0x89   :  { %v139_v31 = vpop.permute.xlu0 %138 }
  0x8e   :  { %v475_v32 = vpop.permute.xlu0 %474 }
  0xa2   :  { %4602 = vset.pattern.permute.xlu0 %v4730_v2 }
  0xb0   :  { %v28_v12 = vpop.trf.xlu1 }
  0xb1   :  { %v122_v13 = vrot.slane %v28_v12, %v4773_v11 }
  0xb3   :  { %v123_v35 = vsub.f32 %v117_v7, %v122_v13  ;;  %v4860_v7 = vsel %vm164_vm4, 1.0, %v6919_v6 }
  0xb5   :  { %v124_v44 = vmul.f32 %v123_v35, %v123_v35 }
  0xce   :  { %v470_v15 = vpop.permute.xlu1 %469 }
  0xcf   :  { %v4779_v16 = vsub.f32 %v122_v13, %v470_v15  ;;  %v3353_v13 = vsub.f32 1.0, %v4860_v7 }
  0xd1   :  { %v493_v19 = vrot.slane %v4779_v16, %v4777_v14  ;;  %v486_v20 = vrot.slane %v4779_v16, %v4773_v11  ;;  %v521_v21 = vrot.slane %v4779_v16, %v4782_v17  ;;  %v500_v22 = vrot.slane %v4779_v16, %v4785_v18 }
  0xd2   :  { %v535_v25 = vrot.slane %v4779_v16, %v4796_v23  ;;  %v507_v26 = vrot.slane %v4779_v16, %v4799_v24  ;;  %v514_v28 = vrot.slane %v4779_v16, %v4806_v27  ;;  %v528_v30 = vrot.slane %v4779_v16, %v4811_v29 }
  0xd3   :  { %495 = vbcast.lane.b32.xlu1 %v493_v19, 256  ;;  %488 = vbcast.lane.b32.xlu0 %v486_v20, 256  ;;  %v480_v39 = vpop.permute.xlu1 %479 }
  0xd7   :  { %523 = vbcast.lane.b32.xlu1 %v521_v21, 256  ;;  %502 = vbcast.lane.b32.xlu0 %v500_v22, 256 }
  0xdb   :  { %537 = vbcast.lane.b32.xlu1 %v535_v25, 256  ;;  %509 = vbcast.lane.b32.xlu0 %v507_v26, 256 }
  0xdf   :  { %516 = vbcast.lane.b32.xlu0 %v514_v28, 256 }
  0xe3   :  { %530 = vbcast.lane.b32.xlu0 %v528_v30, 256 }
  0xf5   :  { %v64_v33 = vpop.trf.xlu0 }
  0xf6   :  { %v133_v34 = vrot.slane %v64_v33, %v4773_v11 }
  0xf8   :  { %v134_v36 = vsub.f32 %v128_v9, %v133_v34  ;;  %v4816_v37 = vsub.f32 %v133_v34, %v475_v32 }
  0xf9   :  { %v99_v38 = vpop.trf.xlu0 }
  0xfa   :  { %v135_v40 = vmul.f32 %v134_v36, %v134_v36  ;;  %v144_v41 = vrot.slane %v99_v38, %v4773_v11  ;;  %v647_v42 = vrot.slane %v4816_v37, %v4777_v14  ;;  %v640_v43 = vrot.slane %v4816_v37, %v4773_v11 }
  0xfb   :  { %v654_v49 = vrot.slane %v4816_v37, %v4785_v18  ;;  %v661_v52 = vrot.slane %v4816_v37, %v4799_v24  ;;  %v675_v55 = vrot.slane %v4816_v37, %v4782_v17  ;;  %v668_v56 = vrot.slane %v4816_v37, %v4806_v27 }
  0xfc   :  { %v145_v45 = vsub.f32 %v139_v31, %v144_v41  ;;  %v4823_v46 = vsub.f32 %v144_v41, %v480_v39  ;;  %649 = vbcast.lane.b32.xlu1 %v647_v42, 256  ;;  %642 = vbcast.lane.b32.xlu0 %v640_v43, 256  ;;  %v136_v47 = vadd.f32 %v135_v40, %v124_v44 }
  0xfd   :  { %v689_v62 = vrot.slane %v4816_v37, %v4796_v23  ;;  %v682_v2 = vrot.slane %v4816_v37, %v4811_v29 }
  0xfe   :  { %v146_v48 = vmul.f32 %v145_v45, %v145_v45  ;;  %v802_v50 = vrot.slane %v4823_v46, %v4773_v11  ;;  %v816_v53 = vrot.slane %v4823_v46, %v4785_v18  ;;  %v809_v54 = vrot.slane %v4823_v46, %v4777_v14 }
  0xff   :  { %v830_v57 = vrot.slane %v4823_v46, %v4806_v27  ;;  %v823_v61 = vrot.slane %v4823_v46, %v4799_v24  ;;  %v844_v3 = vrot.slane %v4823_v46, %v4811_v29  ;;  %v837_v4 = vrot.slane %v4823_v46, %v4782_v17 }
 0x100   :  { %v147_v51 = vadd.f32 %v146_v48, %v136_v47  ;;  %656 = vbcast.lane.b32.xlu1 %v654_v49, 256  ;;  %804 = vbcast.lane.b32.xlu0 %v802_v50, 256  ;;  %v851_v9 = vrot.slane %v4823_v46, %v4796_v23  ;;  %v4736_v49 = vmov 683565275  }
 0x102   :  { %4604 = vrsqrt.f32 %v147_v51  ;;  %vm150_vm2 = vcmp.eq.f32.partialorder %v147_v51, inf  ;;  %v153_v60 = vand.u32 2147483648, %v147_v51  ;;  %vm152_vm3 = vcmp.eq.f32.partialorder %v147_v51, 0.0 }
 0x104   :  { %663 = vbcast.lane.b32.xlu1 %v661_v52, 256  ;;  %818 = vbcast.lane.b32.xlu0 %v816_v53, 256 }
 0x108   :  { %811 = vbcast.lane.b32.xlu1 %v809_v54, 256  ;;  %677 = vbcast.lane.b32.xlu0 %v675_v55, 256  ;;  %v4738_v55 = vmov 2131351028  }
 0x10c   :  { %v4605_v58 = vpop.eup %4604  ;;  %670 = vbcast.lane.b32.xlu1 %v668_v56, 256  ;;  %832 = vbcast.lane.b32.xlu0 %v830_v57, 256 }
 0x10d   :  { %v149_v59 = vmul.f32 %v4605_v58, %v147_v51  ;;  %v4739_v58 = vmov 2102212464  }
 0x10f   :  { %v151_v63 = vsel %vm150_vm2, %v147_v51, %v149_v59  ;;  %v4737_v51 = vmov 2475754826  }
 0x110   :  { %v154_v0 = vsel %vm152_vm3, %v153_v60, %v151_v63  ;;  %825 = vbcast.lane.b32.xlu1 %v823_v61, 256  ;;  %691 = vbcast.lane.b32.xlu0 %v689_v62, 256  ;;  %v4740_v61 = vmov 920167782  }
 0x111   :  { %156 = vst.msk [vmem:[#allocation2] sm:$0xff] %vm155_vm1, %v154_v0  ;;  %v4741_v0 = vmov 1326507024  }
 0x114   :  { %684 = vbcast.lane.b32.xlu1 %v682_v2, 256  ;;  %846 = vbcast.lane.b32.xlu0 %v844_v3, 256 }
 0x118   :  { %v4857_v5 = vld [vmem:[#allocation2] sm:$0xff]  ;;  %839 = vbcast.lane.b32.xlu1 %v837_v4, 256 }
 0x119   :  { %v978_v8 = vrot.slane %v4857_v5, %v4785_v18  ;;  %v4867_v12 = vmul.f32 8.975979, %v4857_v5  ;;  %vm3351_vm5 = vcmp.lt.f32.partialorder %v4857_v5, 0.52  ;;  %v992_v15 = vrot.slane %v4857_v5, %v4806_v27 }
 0x11a   :  { %v964_v20 = vrot.slane %v4857_v5, %v4773_v11  ;;  %v3352_v22 = vsel %vm3351_vm5, 1.0, %v6919_v6  ;;  %v1006_v28 = vrot.slane %v4857_v5, %v4811_v29  ;;  %v971_v32 = vrot.slane %v4857_v5, %v4777_v14 }
 0x11b   :  { %980 = vbcast.lane.b32.xlu0 %v978_v8, 256  ;;  %v363_v19 = vand.u32 2139095040, %v4867_v12  ;;  %v360_v21 = vand.u32 2147483647, %v4867_v12  ;;  %v4878_v26 = vmul.f32 %v3353_v13, %v3352_v22  ;;  %v985_v38 = vrot.slane %v4857_v5, %v4799_v24 }
 0x11c   :  { %853 = vbcast.lane.b32.xlu1 %v851_v9, 256  ;;  %v999_v43 = vrot.slane %v4857_v5, %v4782_v17  ;;  %v1013_v44 = vrot.slane %v4857_v5, %v4796_v23 }
 0x11d   :  { %v364_v25 = vshrl.u32 %v363_v19, 23  ;;  %v3355_v31 = vsel %vm155_vm1, %v4878_v26, 0.0  ;;  %v367_v33 = vand.u32 8388607, %v360_v21 }
 0x11e   :  { %v3356_v34 = vrot.slane %v3355_v31, 4 }
 0x11f   :  { %994 = vbcast.lane.b32.xlu0 %v992_v15, 256  ;;  %v4416_v30 = vadd.s32 4294967169, %v364_v25  ;;  %v368_v39 = vor.u32 8388608, %v367_v33 }
 0x120   :  { %966 = vbcast.lane.b32.xlu1 %v964_v20, 256  ;;  %v3357_v36 = vadd.f32 %v3356_v34, %v3355_v31 }
 0x121   :  { %v370_v35 = vadd.s32 1, %v4416_v30  ;;  %v408_v53 = vshll.u32 %v368_v39, 8 }
 0x122   :  { %v3358_v41 = vrot.slane %v3357_v36, 2 }
 0x123   :  { %1008 = vbcast.lane.b32.xlu0 %v1006_v28, 256  ;;  %vm371_vm6 = vcmp.gt.s32.totalorder %v370_v35, 0 }
 0x124   :  { %973 = vbcast.lane.b32.xlu1 %v971_v32, 256  ;;  %v372_v40 = vsel %vm371_vm6, %v370_v35, 0  ;;  %v3359_v47 = vadd.f32 %v3358_v41, %v3357_v36  ;;  %vm362_vm6 = vcmp.lt.s32.totalorder %v4867_v12, 0 }
 0x125   :  { %v374_v42 = vand.u32 31, %v372_v40  ;;  %v373_v48 = vshrl.u32 %v372_v40, 5 }
 0x126   :  { %v3360_v9 = vrot.slane %v3359_v47, 1 }
 0x127   :  { %v375_v45 = vsub.s32 32, %v374_v42  ;;  %v377_v50 = vshll.u32 %v4736_v49, %v374_v42  ;;  %v380_v52 = vshll.u32 %v4737_v51, %v374_v42  ;;  %v383_v57 = vshll.u32 %v4738_v55, %v374_v42 }
 0x128   :  { %987 = vbcast.lane.b32.xlu1 %v985_v38, 256  ;;  %v386_v60 = vshll.u32 %v4739_v58, %v374_v42  ;;  %v389_v63 = vshll.u32 %v4740_v61, %v374_v42  ;;  %vm392_vm7 = vcmp.lt.s32.totalorder %v373_v48, 1  ;;  %vm395_vm8 = vcmp.lt.s32.totalorder %v373_v48, 4 }
 0x129   :  { %v378_v54 = vshrl.u32 %v4737_v51, %v375_v45  ;;  %v381_v56 = vshrl.u32 %v4738_v55, %v375_v45  ;;  %v384_v59 = vshrl.u32 %v4739_v58, %v375_v45  ;;  %v387_v62 = vshrl.u32 %v4740_v61, %v375_v45 }
 0x12a   :  { %v390_v2 = vshrl.u32 %v4741_v0, %v375_v45  ;;  %v376_v19 = vshrl.u32 %v4736_v49, %v375_v45  ;;  %vm394_vm9 = vcmp.lt.s32.totalorder %v373_v48, 3  ;;  %v3361_v31 = vadd.f32 %v3360_v9, %v3359_v47 }
 0x12b   :  { %v379_v3 = vor.u32 %v378_v54, %v377_v50  ;;  %v382_v4 = vor.u32 %v381_v56, %v380_v52  ;;  %v385_v8 = vor.u32 %v384_v59, %v383_v57  ;;  %v388_v13 = vor.u32 %v387_v62, %v386_v60 }
 0x12c   :  { %1001 = vbcast.lane.b32.xlu1 %v999_v43, 256  ;;  %v391_v15 = vor.u32 %v390_v2, %v389_v63  ;;  %vm393_vm10 = vcmp.lt.s32.totalorder %v373_v48, 2  ;;  %vm3362_vm11 = vcmp.gt.f32.partialorder %v3361_v31, 0.0 }
 0x12d   :  { %v397_v20 = vsel %vm395_vm8, %v385_v8, 2102212464  ;;  %v400_v22 = vsel %vm392_vm7, %v379_v3, %v382_v4  ;;  %v404_v25 = vsel %vm392_vm7, %v382_v4, %v385_v8  ;;  %v401_v28 = vsel %vm395_vm8, %v388_v13, 920167782 }
 0x12e   :  { %v405_v30 = vsel %vm395_vm8, %v391_v15, 1326507024  ;;  %v396_v32 = vsel %vm392_vm7, %v376_v19, %v379_v3  ;;  %v402_v33 = vsel %vm394_vm9, %v385_v8, %v401_v28  ;;  %v398_v35 = vsel %vm394_vm9, %v382_v4, %v397_v20 }
 0x12f   :  { %v406_v34 = vsel %vm394_vm9, %v388_v13, %v405_v30  ;;  %v403_v36 = vsel %vm393_vm10, %v400_v22, %v402_v33  ;;  %v3363_v43 = vsel %vm3362_vm11, %v3361_v31, 1.0  ;;  %v399_v45 = vsel %vm393_vm10, %v396_v32, %v398_v35 }
 0x130   :  { %1015 = vbcast.lane.b32.xlu1 %v1013_v44, 256  ;;  %v407_v38 = vsel %vm393_vm10, %v404_v25, %v406_v34  ;;  %v4908_v41 = vmul.u32.u64.low %v408_v53, %v403_v36  ;;  %v4909_v42 = vmul.u32.u64.high %v408_v53, %v403_v36, %v4908_v41  ;;  %v4913_v44 = vmul.f32 6.0415244, %v4857_v5 }
 0x131   :  { %v4905_v39 = vmul.u32.u64.low %v408_v53, %v407_v38  ;;  %v4906_v40 = vmul.u32.u64.high %v408_v53, %v407_v38, %v4905_v39  ;;  %4606 = vrcp.f32 %v3363_v43  ;;  %v415_v50 = vmul.u32 %v408_v53, %v399_v45 }
 0x132   :  { %6977 = vst [vmem:[#allocation6_spill] sm:$0xff] %v4913_v44  ;;  %v174_v47 = vand.u32 2139095040, %v4913_v44  ;;  %v418_v48 = vadd.s32 1, %v4909_v42  ;;  %v6918_v2 = vand.u32 2147483647, %v4913_v44  ;;  %vm161_vm8 = vcmp.ne.s32.totalorder %v4766_v10, %v4847_v1 }
 0x133   :  { %vm417_vm12 = vc.u32 %v4906_v40, %v4908_v41  ;;  %vm4982_vm7 = vcmp.le.f32.partialorder %v360_v21, 0.7853982 }
 0x134   :  { %v175_v52 = vshrl.u32 %v174_v47, 23  ;;  %v419_v54 = vsel %vm417_vm12, %v418_v48, %v4909_v42  ;;  %v178_v15 = vand.u32 8388607, %v6918_v2 }
 0x135   :  { %v420_v56 = vadd.s32 %v419_v54, %v415_v50 }
 0x136   :  { %v4404_v57 = vadd.s32 4294967169, %v175_v52  ;;  %v179_v34 = vor.u32 8388608, %v178_v15 }
 0x137   :  { %v421_v59 = vadd.s32 536870912, %v420_v56 }
 0x138   :  { %v181_v60 = vadd.s32 1, %v4404_v57 }
 0x139   :  { %v4920_v62 = vshrl.u32 %v421_v59, 30 }
 0x13a   :  { %vm182_vm13 = vcmp.gt.s32.totalorder %v181_v60, 0 }
 0x13b   :  { %v4607_v63 = vpop.eup %4606  ;;  %v183_v3 = vsel %vm182_vm13, %v181_v60, 0  ;;  %v423_v4 = vshll.u32 %v4920_v62, 30  ;;  %v4742_v60 = vmov 1966171168   ;;  %vm452_vm13 = vweird.f32 %v4867_v12 }
 0x13c   :  { %v3366_v8 = vmul.f32 %v4607_v63, %v4878_v26  ;;  %v185_v9 = vand.u32 31, %v183_v3  ;;  %v184_v19 = vshrl.u32 %v183_v3, 5  ;;  %v542_v63 = vunpack.c.l.s4 %v4742_v60 }
 0x13d   :  { %v424_v53 = vsub.s32 %v420_v56, %v423_v4  ;;  %v416_v3 = vadd.s32 %v4908_v41, %v4906_v40  ;;  %v540_v60 = vcombine.high %v4779_v16, %v4779_v16 }
 0x13e   :  { %v3367_v13 = vadd.f32 %v4860_v7, %v3366_v8  ;;  %v186_v20 = vsub.s32 32, %v185_v9  ;;  %v188_v28 = vshll.u32 %v4736_v49, %v185_v9  ;;  %v191_v7 = vshll.u32 %v4737_v51, %v185_v9 }
 0x13f   :  { %v426_v22 = vsub.s32 0, %v424_v53  ;;  %v194_v33 = vshll.u32 %v4738_v55, %v185_v9  ;;  %vm203_vm14 = vcmp.lt.s32.totalorder %v184_v19, 1  ;;  %v200_v43 = vshll.u32 %v4740_v61, %v185_v9 }
 0x140   :  { %v4928_v25 = vmul.f32 0.5, %v3367_v13  ;;  %v189_v30 = vshrl.u32 %v4737_v51, %v186_v20  ;;  %v192_v31 = vshrl.u32 %v4738_v55, %v186_v20  ;;  %v195_v26 = vshrl.u32 %v4739_v58, %v186_v20 }
 0x141   :  { %v4417_v32 = vmin.u32 %v426_v22, %v424_v53  ;;  %v187_v38 = vshrl.u32 %v4736_v49, %v186_v20  ;;  %v197_v51 = vshll.u32 %v4739_v58, %v185_v9  ;;  %v198_v55 = vshrl.u32 %v4740_v61, %v186_v20 }
 0x142   :  { %6978 = vst [vmem:[#allocation7_spill] sm:$0xff] %v4928_v25  ;;  %4503 = vmatpush3.msra.mxu0 %v4928_v25  ;;  %v190_v35 = vor.u32 %v189_v30, %v188_v28  ;;  %v193_v39 = vor.u32 %v192_v31, %v191_v7  ;;  %v196_v42 = vor.u32 %v195_v26, %v194_v33  ;;  %vm204_vm15 = vcmp.lt.s32.totalorder %v184_v19, 2 }
 0x143   :  { %4505 = vmatmul.mubr.msk.f32.vlgmr.msra.gmra.mrb[0].mxu0 %vm155_vm1, %v4928_v25  ;;  %4512 = vmatprep.subr.mxu0 %v6919_v6  ;;  %v428_v36 = vclz %v4417_v32  ;;  %v201_v45 = vshrl.u32 %v4741_v0, %v186_v20  ;;  %vm205_vm2 = vcmp.lt.s32.totalorder %v184_v19, 3  ;;  %vm206_vm3 = vcmp.lt.s32.totalorder %v184_v19, 4 }
 0x144   :  { %4514 = vmatprep.mubr.msk.f32.mxu0 %vm4735_vm0, %v6919_v6  ;;  %v199_v48 = vor.u32 %v198_v55, %v197_v51  ;;  %v207_v52 = vsel %vm203_vm14, %v187_v38, %v190_v35  ;;  %v208_v54 = vsel %vm206_vm3, %v196_v42, 2102212464  ;;  %v211_v58 = vsel %vm203_vm14, %v190_v35, %v193_v39 }
 0x145   :  { %v4418_v47 = vadd.s32 4294967294, %v428_v36  ;;  %v202_v50 = vor.u32 %v201_v45, %v200_v43  ;;  %v209_v49 = vsel %vm205_vm2, %v193_v39, %v208_v54  ;;  %v215_v56 = vsel %vm203_vm14, %v193_v39, %v196_v42 }
 0x146   :  { %v210_v61 = vsel %vm204_vm15, %v207_v52, %v209_v49  ;;  %v212_v0 = vsel %vm206_vm3, %v199_v48, 920167782  ;;  %v219_v20 = vshll.u32 %v179_v34, 8  ;;  %v543_v36 = vunpack.c.0.s8 %v542_v63 }
 0x147   :  { %vm4419_vm4 = vcmp.lt.s32.totalorder %v4418_v47, 0  ;;  %v216_v59 = vsel %vm206_vm3, %v202_v50, 1326507024  ;;  %v213_v13 = vsel %vm205_vm2, %v196_v42, %v212_v0  ;;  %vm358_vm14 = vcmp.lt.f32.partialorder %v4857_v5, 0.35 }
 0x148   :  { %v431_v57 = vsel %vm4419_vm4, 0, %v4418_v47  ;;  %v217_v15 = vsel %vm205_vm2, %v199_v48, %v216_v59  ;;  %v214_v30 = vsel %vm204_vm15, %v211_v58, %v213_v13  ;;  %v226_v42 = vmul.u32 %v219_v20, %v210_v61  ;;  %v496_v61 = vpop.permute.xlu1 %495 }
 0x149   :  { %v432_v4 = vsub.s32 32, %v431_v57  ;;  %v436_v8 = vsub.s32 4294967266, %v431_v57  ;;  %v433_v9 = vshll.u32 %v424_v53, %v431_v57  ;;  %v218_v31 = vsel %vm204_vm15, %v215_v56, %v217_v15  ;;  %v4964_v53 = vpop.permute.xlu0 %488 }
 0x14a   :  { %v4958_v26 = vmul.u32.u64.low %v219_v20, %v218_v31  ;;  %v4959_v32 = vmul.u32.u64.high %v219_v20, %v218_v31, %v4958_v26  ;;  %v4961_v7 = vmul.u32.u64.low %v219_v20, %v214_v30  ;;  %v4962_v33 = vmul.u32.u64.high %v219_v20, %v214_v30, %v4961_v7 }
 0x14b   :  { %v434_v22 = vshrl.u32 %v416_v3, %v432_v4  ;;  %v437_v28 = vadd.s32 127, %v436_v8  ;;  %v4975_v47 = vsub.s32 %v543_v36, %v4766_v10  ;;  %v446_v58 = vsub.s32 4, %v4920_v62 }
 0x14c   :  { %v4967_v34 = vadd.s32 %v4961_v7, %v4959_v32  ;;  %vm228_vm5 = vc.u32 %v4959_v32, %v4961_v7  ;;  %v229_v19 = vadd.s32 1, %v4962_v33  ;;  %v5027_v32 = vsel %vm161_vm8, 1.0, %v6919_v6 }
 0x14d   :  { %v435_v40 = vor.u32 %v434_v22, %v433_v9  ;;  %v438_v41 = vshll.u32 %v437_v28, 23  ;;  %v4972_v43 = vpop.permute.xlu0 %502  ;;  %v547_v52 = vrot.slane %v4779_v16, %v4975_v47  ;;  %v701_v63 = vrot.slane %v4816_v37, %v4975_v47  ;;  %v5016_v22 = vpop.permute.xlu1 %523  ;;  %6982 = vst [vmem:[#allocation9_spill] sm:$0xff] %v5027_v32 }
 0x14e   :  { %v230_v51 = vsel %vm228_vm5, %v229_v19, %v4962_v33  ;;  %v447_v3 = vsel %vm362_vm6, %v446_v58, %v4920_v62  ;;  %v694_v9 = vcombine.high %v4816_v37, %v4816_v37  ;;  %v5014_v62 = vrot.slane %v540_v60, %v4975_v47 }
 0x14f   :  { %v439_v35 = vor.u32 4788187, %v438_v41  ;;  %v442_v39 = vcvt.s32.f32 %v435_v40  ;;  %v231_v45 = vadd.s32 %v230_v51, %v226_v42  ;;  %v555_v21 = vcombine.high %v547_v52, %v547_v52 }
 0x150   :  { %v563_v4 = vrot.slane %v547_v52, %v4975_v47  ;;  %v449_v16 = vsel %vm4982_vm7, 0, %v447_v3  ;;  %v709_v20 = vcombine.high %v701_v63, %v701_v63  ;;  %v717_v31 = vrot.slane %v701_v63, %v4975_v47 }
 0x151   :  { %v440_v38 = vand.u32 2147483647, %v439_v35  ;;  %v232_v50 = vadd.s32 536870912, %v231_v45  ;;  %v4992_v0 = vpop.permute.xlu0 %509  ;;  %v5011_v15 = vrot.slane %v555_v21, %v4975_v47  ;;  %v5024_v26 = vrot.slane %v4823_v46, %v4975_v47  ;;  %v5048_v58 = vpop.permute.xlu1 %537 }
 0x152   :  { %v585_v28 = vcombine.high %v563_v4, %v563_v4  ;;  %v453_v7 = vand.u32 3, %v449_v16  ;;  %v5030_v33 = vrot.slane %v694_v9, %v4975_v47  ;;  %v592_v35 = vrot.slane %v563_v4, %v4773_v11 }
 0x153   :  { %v443_v55 = vmul.f32 %v442_v39, %v440_v38  ;;  %v4987_v56 = vshrl.u32 %v232_v50, 30  ;;  %v596_v41 = vrot.slane %v5011_v15, %v4773_v11  ;;  %v556_v36 = vcombine.high %v5014_v62, %v5014_v62 }
 0x154   :  { %v5038_v19 = vrot.slane %v709_v20, %v4975_v47  ;;  %v600_v39 = vrot.slane %v585_v28, %v4773_v11  ;;  %v587_v42 = vcombine.high %v5011_v15, %v5011_v15  ;;  %v746_v51 = vrot.slane %v717_v31, %v4773_v11 }
 0x155   :  { %v444_v48 = vxor.u32 2147483648, %v443_v55  ;;  %6981 = vst [vmem:[#allocation8_spill] sm:$0xff] %v4987_v56  ;;  %v234_v59 = vshll.u32 %v4987_v56, 30  ;;  %v5018_v30 = vpop.permute.xlu0 %516  ;;  %v739_v50 = vcombine.high %v717_v31, %v717_v31  ;;  %v879_v52 = vrot.slane %v5024_v26, %v4975_v47 }
 0x156   :  { %v871_v54 = vcombine.high %v5024_v26, %v5024_v26  ;;  %vm458_vm9 = vcmp.eq.s32.totalorder %v453_v7, 2  ;;  %vm455_vm11 = vcmp.eq.s32.totalorder %v453_v7, 0  ;;  %v750_v60 = vrot.slane %v5038_v19, %v4773_v11 }
 0x157   :  { %v445_v49 = vsel %vm362_vm6, %v444_v48, %v443_v55  ;;  %v5001_v8 = vsub.s32 %v231_v45, %v234_v59  ;;  %v710_v59 = vcombine.high %v5030_v33, %v5030_v33  ;;  %vm454_vm12 = vcmp.lt.s32.totalorder %v453_v7, 2 }
 0x158   :  { %v448_v57 = vsel %vm4982_vm7, %v4867_v12, %v445_v49  ;;  %v630_v16 = vmul.f32 %v596_v41, %v496_v61  ;;  %v754_v15 = vrot.slane %v739_v50, %v4773_v11  ;;  %v629_v7 = vmul.f32 %v592_v35, %v4964_v53 }
 0x159   :  { %4608 = vcosq.f32 %v448_v57  ;;  %v237_v13 = vsub.s32 0, %v5001_v8  ;;  %v741_v12 = vcombine.high %v5038_v19, %v5038_v19  ;;  %v856_v35 = vcombine.high %v4823_v46, %v4823_v46 }
 0x15a   :  { %4610 = vsinq.f32 %v448_v57  ;;  %v5050_v57 = vpop.permute.xlu0 %530  ;;  %v631_v19 = vmul.f32 %v600_v39, %v4972_v43 }
 0x15b   :  { %v4405_v37 = vmin.u32 %v237_v13, %v5001_v8  ;;  %v758_v46 = vrot.slane %v741_v12, %v4773_v11 }
 0x15d   :  { %v239_v40 = vclz %v4405_v37 }
 0x15f   :  { %v4406_v55 = vadd.s32 4294967294, %v239_v40 }
 0x161   :  { %vm4407_vm10 = vcmp.lt.s32.totalorder %v4406_v55, 0 }
 0x162   :  { %v242_v63 = vsel %vm4407_vm10, 0, %v4406_v55 }
 0x163   :  { %v4609_v38 = vpop.eup %4608  ;;  %v243_v4 = vsub.s32 32, %v242_v63  ;;  %v247_v9 = vsub.s32 4294967266, %v242_v63  ;;  %v244_v37 = vshll.u32 %v5001_v8, %v242_v63 }
 0x164   :  { %v4611_v45 = vpop.eup %4610  ;;  %v459_v48 = vxor.u32 2147483648, %v4609_v38 }
 0x165   :  { %v456_v49 = vxor.u32 2147483648, %v4611_v45  ;;  %v245_v26 = vshrl.u32 %v4967_v34, %v243_v4  ;;  %v248_v40 = vadd.s32 127, %v247_v9  ;;  %v5066_v34 = vrot.slane %v556_v36, %v4975_v47 }
 0x166   :  { %v460_v21 = vsel %vm458_vm9, %v459_v48, %v4611_v45  ;;  %v908_v48 = vrot.slane %v879_v52, %v4773_v11  ;;  %v738_v36 = vrot.slane %v710_v59, %v4975_v47 }
 0x167   :  { %v457_v3 = vsel %vm455_vm11, %v4609_v38, %v456_v49  ;;  %v246_v61 = vor.u32 %v245_v26, %v244_v37  ;;  %v249_v41 = vshll.u32 %v248_v40, 23  ;;  %v870_v26 = vrot.slane %v856_v35, %v4975_v47 }
 0x168   :  { %v461_v13 = vsel %vm454_vm12, %v457_v3, %v460_v21  ;;  %v901_v3 = vcombine.high %v879_v52, %v879_v52  ;;  %v604_v52 = vrot.slane %v587_v42, %v4773_v11  ;;  %v612_v40 = vrot.slane %v5066_v34, %v4773_v11 }
 0x169   :  { %v462_v20 = vsel %vm452_vm13, nan, %v461_v13  ;;  %v893_v13 = vrot.slane %v871_v54, %v4975_v47 }
 0x16a   :  { %v463_v45 = vmul.f32 0.5, %v462_v20  ;;  %v632_v54 = vmul.f32 %v604_v52, %v4992_v0 }
 0x16b   :  { %v912_v0 = vrot.slane %v893_v13, %v4773_v11 }
 0x16c   :  { %v464_v50 = vadd.f32 0.5, %v463_v45  ;;  %v570_v45 = vrot.slane %v5014_v62, %v4975_v47 }
 0x16e   :  { %v650_v28 = vpop.permute.xlu1 %649  ;;  %v643_v31 = vpop.permute.xlu0 %642  ;;  %v608_v35 = vrot.slane %v570_v45, %v4773_v11 }
 0x16f   :  { %v784_v38 = vmul.f32 %v750_v60, %v650_v28  ;;  %v783_v55 = vmul.f32 %v746_v51, %v643_v31  ;;  %v250_v51 = vor.u32 4788187, %v249_v41  ;;  %v465_v60 = vsel %vm358_vm14, %v464_v50, 0.0 }
 0x170   :  { %v5072_v9 = vmul.f32 %v5027_v32, %v465_v60  ;;  %v916_v28 = vrot.slane %v901_v3, %v4773_v11  ;;  %v903_v60 = vcombine.high %v893_v13, %v893_v13 }
 0x171   :  { %v792_v49 = vadd.f32 %v784_v38, %v630_v16  ;;  %v791_v21 = vadd.f32 %v783_v55, %v629_v7  ;;  %v251_v42 = vand.u32 2147483647, %v250_v51  ;;  %v253_v7 = vcvt.s32.f32 %v246_v61 }
 0x172   :  { %v657_v8 = vpop.permute.xlu1 %656  ;;  %v805_v53 = vpop.permute.xlu0 %804  ;;  %v1269_v43 = vrot.slane %v5072_v9, %v4777_v14  ;;  %v1262_v39 = vrot.slane %v5072_v9, %v4773_v11  ;;  %v724_v14 = vrot.slane %v5030_v33, %v4975_v47  ;;  %v1283_v12 = vrot.slane %v5072_v9, %v4799_v24 }
 0x173   :  { %v785_v63 = vmul.f32 %v754_v15, %v657_v8  ;;  %v945_v4 = vmul.f32 %v908_v48, %v805_v53  ;;  %v766_v48 = vrot.slane %v738_v36, %v4773_v11  ;;  %v1276_v41 = vrot.slane %v5072_v9, %v4785_v18 }
 0x174   :  { %1271 = vbcast.lane.b32.xlu1 %v1269_v43, 256  ;;  %1264 = vbcast.lane.b32.xlu0 %v1262_v39, 256  ;;  %v634_v33 = vmul.f32 %v612_v40, %v5016_v22  ;;  %v886_v8 = vrot.slane %v870_v26, %v4975_v47  ;;  %v588_v53 = vcombine.high %v5066_v34, %v5066_v34 }
 0x175   :  { %v793_v16 = vadd.f32 %v785_v63, %v631_v19  ;;  %v5077_v20 = vadd.f32 %v945_v4, %v791_v21  ;;  %v5101_v21 = vmul.f32 %v253_v7, %v251_v42  ;;  %v762_v24 = vrot.slane %v724_v14, %v4773_v11 }
 0x176   :  { %v664_v15 = vpop.permute.xlu1 %663  ;;  %v819_v31 = vpop.permute.xlu0 %818  ;;  %v742_v19 = vcombine.high %v738_v36, %v738_v36  ;;  %v1297_v22 = vrot.slane %v5072_v9, %v4782_v17  ;;  %v1290_v63 = vrot.slane %v5072_v9, %v4806_v27  ;;  %v633_v34 = vmul.f32 %v608_v35, %v5018_v30 }
 0x177   :  { %v786_v37 = vmul.f32 %v758_v46, %v664_v15  ;;  %v947_v59 = vmul.f32 %v916_v28, %v819_v31  ;;  %6983 = vst [vmem:[#allocation10_spill] sm:$0xff] %v5101_v21  ;;  %v924_v28 = vrot.slane %v886_v8, %v4773_v11  ;;  %v740_v13 = vcombine.high %v724_v14, %v724_v14 }
 0x178   :  { %1285 = vbcast.lane.b32.xlu1 %v1283_v12, 256  ;;  %1278 = vbcast.lane.b32.xlu0 %v1276_v41, 256  ;;  %v872_v36 = vcombine.high %v870_v26, %v870_v26  ;;  %v920_v17 = vrot.slane %v903_v60, %v4773_v11  ;;  %v774_v27 = vrot.slane %v742_v19, %v4773_v11 }
 0x179   :  { %v794_v38 = vadd.f32 %v786_v37, %v632_v54  ;;  %v5093_v55 = vadd.f32 %v947_v59, %v793_v16  ;;  %v586_v16 = vcombine.high %v570_v45, %v570_v45  ;;  %v1311_v15 = vrot.slane %v5072_v9, %v4796_v23 }
 0x17a   :  { %v812_v62 = vpop.permute.xlu1 %811  ;;  %v678_v50 = vpop.permute.xlu0 %677  ;;  %v1304_v30 = vrot.slane %v5072_v9, %v4811_v29  ;;  %v902_v54 = vcombine.high %v886_v8, %v886_v8  ;;  %v770_v23 = vrot.slane %v740_v13, %v4773_v11  ;;  %v900_v29 = vrot.slane %v872_v36, %v4975_v47 }
 0x17b   :  { %v946_v61 = vmul.f32 %v912_v0, %v812_v62  ;;  %v788_v3 = vmul.f32 %v766_v48, %v678_v50  ;;  %v616_v45 = vrot.slane %v586_v16, %v4773_v11 }
 0x17c   :  { %1299 = vbcast.lane.b32.xlu1 %v1297_v22, 256  ;;  %1292 = vbcast.lane.b32.xlu0 %v1290_v63, 256  ;;  %v932_v41 = vrot.slane %v902_v54, %v4773_v11  ;;  %v1018_v22 = vcombine.high %v4857_v5, %v4857_v5 }
 0x17d   :  { %v5109_v18 = vadd.f32 %v946_v61, %v792_v49  ;;  %v796_v51 = vadd.f32 %v788_v3, %v634_v33  ;;  %v620_v49 = vrot.slane %v588_v53, %v4773_v11  ;;  %v635_v12 = vmul.f32 %v616_v45, %v5050_v57 }
 0x17e   :  { %v671_v4 = vpop.permute.xlu1 %670  ;;  %v833_v52 = vpop.permute.xlu0 %832  ;;  %v928_v33 = vrot.slane %v900_v29, %v4773_v11  ;;  %v904_v61 = vcombine.high %v900_v29, %v900_v29  ;;  %v1025_v57 = vrot.slane %v4857_v5, %v4975_v47 }
 0x17f   :  { %v787_v46 = vmul.f32 %v762_v24, %v671_v4  ;;  %v949_v39 = vmul.f32 %v924_v28, %v833_v52  ;;  %v636_v37 = vmul.f32 %v620_v49, %v5048_v58  ;;  %v1032_v52 = vrot.slane %v1018_v22, %v4975_v47 }
 0x180   :  { %1313 = vbcast.lane.b32.xlu1 %v1311_v15, 256  ;;  %1306 = vbcast.lane.b32.xlu0 %v1304_v30, 256  ;;  %v936_v35 = vrot.slane %v904_v61, %v4773_v11  ;;  %v1041_v63 = vrot.slane %v1025_v57, %v4975_v47  ;;  %v1323_v15 = vrot.slane %v5072_v9, %v4975_v47  ;;  %v1067_v22 = vmul.f32 0.95, %v5077_v20 }
 0x181   :  { %v795_v43 = vadd.f32 %v787_v46, %v633_v34  ;;  %v1033_v34 = vcombine.high %v1025_v57, %v1025_v57  ;;  %v1048_v46 = vrot.slane %v1032_v52, %v4975_v47  ;;  %v1034_v36 = vcombine.high %v1032_v52, %v1032_v52 }
 0x182   :  { %v826_v31 = vpop.permute.xlu1 %825  ;;  %v692_v42 = vpop.permute.xlu0 %691  ;;  %v1063_v16 = vcombine.high %v1041_v63, %v1041_v63  ;;  %v1331_v29 = vcombine.high %v1323_v15, %v1323_v15  ;;  %v5165_v61 = vrot.slane %v1323_v15, %v4975_v47  ;;  %v1069_v52 = vmul.f32 0.95, %v5093_v55 }
 0x183   :  { %v5125_v59 = vadd.f32 %v949_v39, %v795_v43  ;;  %v948_v26 = vmul.f32 %v920_v17, %v826_v31  ;;  %v790_v40 = vmul.f32 %v774_v27, %v692_v42  ;;  %v1055_v28 = vrot.slane %v1033_v34, %v4975_v47 }
 0x184   :  { %v1086_v49 = vrot.slane %v1063_v16, %v4773_v11  ;;  %v1078_v43 = vrot.slane %v1041_v63, %v4773_v11  ;;  %v1064_v17 = vcombine.high %v1048_v46, %v1048_v46  ;;  %v1316_v31 = vcombine.high %v5072_v9, %v5072_v9 }
 0x185   :  { %v5128_v14 = vadd.f32 %v948_v26, %v794_v38  ;;  %v798_v7 = vadd.f32 %v790_v40, %v636_v37  ;;  %v1082_v27 = vrot.slane %v1055_v28, %v4773_v11  ;;  %v1062_v37 = vrot.slane %v1034_v36, %v4975_v47 }
 0x186   :  { %v685_v0 = vpop.permute.xlu1 %684  ;;  %v847_v48 = vpop.permute.xlu0 %846  ;;  %v1094_v26 = vrot.slane %v1048_v46, %v4773_v11  ;;  %v1065_v40 = vcombine.high %v1055_v28, %v1055_v28  ;;  %v1361_v16 = vcombine.high %v5165_v61, %v5165_v61 }
 0x187   :  { %v789_v58 = vmul.f32 %v770_v23, %v685_v0  ;;  %v951_v50 = vmul.f32 %v932_v41, %v847_v48  ;;  %v1066_v9 = vcombine.high %v1062_v37, %v1062_v37 }
 0x189   :  { %v797_v62 = vadd.f32 %v789_v58, %v635_v12  ;;  %v1330_v58 = vrot.slane %v1316_v31, %v4975_v47 }
 0x18a   :  { %v840_v3 = vpop.permute.xlu1 %839 }
 0x18b   :  { %v5135_v38 = vadd.f32 %v951_v50, %v797_v62  ;;  %v950_v8 = vmul.f32 %v928_v33, %v840_v3  ;;  %v1090_v50 = vrot.slane %v1065_v40, %v4773_v11  ;;  %v1332_v57 = vcombine.high %v1330_v58, %v1330_v58 }
 0x18c   :  { %v5182_v46 = vrot.slane %v1330_v58, %v4975_v47 }
 0x18d   :  { %v5137_v53 = vadd.f32 %v950_v8, %v796_v51  ;;  %v981_v4 = vpop.permute.xlu0 %980  ;;  %v5168_v8 = vrot.slane %v1062_v37, %v4773_v11 }
 0x18e   :  { %v854_v24 = vpop.permute.xlu1 %853  ;;  %v1117_v5 = vmul.f32 %v1086_v49, %v981_v4  ;;  %v1245_v30 = vadd.f32 %v1086_v49, %v981_v4  ;;  %v5176_v4 = vrot.slane %v1066_v9, %v4773_v11 }
 0x18f   :  { %v952_v60 = vmul.f32 %v936_v35, %v854_v24  ;;  %v5171_v35 = vrot.slane %v1331_v29, %v4975_v47 }
 0x190   :  { %v1125_v45 = vadd.f32 1e-10, %v1117_v5  ;;  %v5160_v0 = vmul.f32 0.5, %v1245_v30  ;;  %v1068_v5 = vmul.f32 0.95, %v5109_v18  ;;  %v1362_v18 = vcombine.high %v5182_v46, %v5182_v46 }
 0x191   :  { %v5140_v19 = vadd.f32 %v952_v60, %v798_v7  ;;  %v995_v13 = vpop.permute.xlu0 %994  ;;  %v1102_v7 = vrot.slane %v1064_v17, %v4773_v11  ;;  %v1363_v55 = vcombine.high %v5171_v35, %v5171_v35 }
 0x192   :  { %v967_v51 = vpop.permute.xlu1 %966  ;;  %6984 = vst [vmem:[#allocation11_spill] sm:$0xff] %v5160_v0  ;;  %v1119_v48 = vmul.f32 %v1094_v26, %v995_v13  ;;  %4612 = vrcp.f32 %v1125_v45  ;;  %v1247_v3 = vadd.f32 %v1094_v26, %v995_v13  ;;  %v4446_v24 = vadd.f32 -0.25, %v5160_v0 }
 0x193   :  { %v1115_v42 = vmul.f32 %v1078_v43, %v967_v51  ;;  %v1243_v63 = vadd.f32 %v1078_v43, %v967_v51  ;;  %v4454_v28 = vadd.f32 -0.33, %v5160_v0  ;;  %v5192_v43 = vrot.slane %v1332_v57, %v4975_v47 }
 0x194   :  { %v1127_v60 = vadd.f32 1e-10, %v1119_v48  ;;  %v5185_v49 = vmul.f32 0.5, %v1247_v3  ;;  %v2550_v51 = vmul.f32 %v4446_v24, %v4446_v24  ;;  %v5227_v57 = vmul.f32 0.95, %v5137_v53 }
 0x195   :  { %v1009_v23 = vpop.permute.xlu0 %1008  ;;  %v1123_v41 = vadd.f32 1e-10, %v1115_v42  ;;  %v5195_v17 = vmul.f32 0.5, %v1243_v63  ;;  %v5200_v42 = vrot.slane %v1361_v16, %v4773_v11  ;;  %v2930_v37 = vmul.f32 %v4454_v28, %v4454_v28 }
 0x196   :  { %v974_v39 = vpop.permute.xlu1 %973  ;;  %v1121_v62 = vmul.f32 %v1102_v7, %v1009_v23  ;;  %6985 = vst [vmem:[#allocation12_spill] sm:$0xff] %v5185_v49  ;;  %v1249_v15 = vadd.f32 %v1102_v7, %v1009_v23  ;;  %v4448_v47 = vadd.f32 -0.25, %v5185_v49  ;;  %v2558_v40 = vmul.f32 -80.0, %v2550_v51 }
 0x197   :  { %v1116_v54 = vmul.f32 %v1082_v27, %v974_v39  ;;  %6986 = vst [vmem:[#allocation13_spill] sm:$0xff] %v5195_v17  ;;  %v1244_v31 = vadd.f32 %v1082_v27, %v974_v39  ;;  %v5208_v7 = vrot.slane %v1363_v55, %v4773_v11  ;;  %v1071_v23 = vmul.f32 0.95, %v5125_v59 }
 0x198   :  { %v1129_v34 = vadd.f32 1e-10, %v1121_v62  ;;  %v4444_v29 = vadd.f32 -0.25, %v5195_v17  ;;  %v5214_v48 = vmul.f32 0.5, %v1249_v15  ;;  %v4452_v9 = vadd.f32 -0.33, %v5195_v17 }
 0x199   :  { %v1124_v12 = vadd.f32 1e-10, %v1116_v54  ;;  %v5220_v62 = vmul.f32 0.5, %v1244_v31  ;;  %v1073_v59 = vmul.f32 0.95, %v5135_v38  ;;  %v2938_v24 = vmul.f32 -80.0, %v2930_v37 }
 0x19a   :  { %v988_v33 = vpop.permute.xlu1 %987  ;;  %6987 = vst [vmem:[#allocation14_spill] sm:$0xff] %v5214_v48  ;;  %v2548_v16 = vmul.f32 %v4444_v29, %v4444_v29  ;;  %v4450_v28 = vadd.f32 -0.25, %v5214_v48  ;;  %v2928_v38 = vmul.f32 %v4452_v9, %v4452_v9 }
 0x19b   :  { %4614 = vrcp.f32 %v1124_v12  ;;  %v1118_v13 = vmul.f32 %v1090_v50, %v988_v33  ;;  %v1246_v45 = vadd.f32 %v1090_v50, %v988_v33  ;;  %v1364_v12 = vcombine.high %v5192_v43, %v5192_v43  ;;  %6988 = vst [vmem:[#allocation15_spill] sm:$0xff] %v5220_v62 }
 0x19c   :  { %4616 = vrcp.f32 %v1123_v41  ;;  %v4613_v27 = vpop.eup %4612  ;;  %v1070_v41 = vmul.f32 0.95, %v5128_v14  ;;  %v4445_v31 = vadd.f32 -0.25, %v5220_v62  ;;  %v2554_v9 = vmul.f32 %v4450_v28, %v4450_v28 }
 0x19d   :  { %4618 = vrcp.f32 %v1127_v60  ;;  %v1126_v26 = vadd.f32 1e-10, %v1118_v13  ;;  %v2552_v60 = vmul.f32 %v4448_v47, %v4448_v47  ;;  %v1136_v63 = vmul.f32 %v4613_v27, %v1069_v52 }
 0x19e   :  { %v1002_v36 = vpop.permute.xlu1 %1001  ;;  %4620 = vrcp.f32 %v1129_v34  ;;  %v2568_v34 = vmul.f32 1.442695, %v2558_v40  ;;  %v5229_v14 = vmul.f32 0.5, %v1246_v45  ;;  %v2948_v47 = vmul.f32 1.442695, %v2938_v24 }
 0x19f   :  { %v1120_v50 = vmul.f32 %v5168_v8, %v1002_v36  ;;  %4622 = vrcp.f32 %v1126_v26  ;;  %v2560_v53 = vmul.f32 -80.0, %v2552_v60  ;;  %v4453_v52 = vadd.f32 -0.33, %v5220_v62 }
 0x1a0   :  { %6989 = vst [vmem:[#allocation16_spill] sm:$0xff] %v5229_v14  ;;  %v5237_v26 = vrot.slane %v1362_v18, %v4773_v11  ;;  %v5239_v45 = vclamps-f32 %v1136_v63, 0.95  ;;  %v1248_v27 = vadd.f32 %v5168_v8, %v1002_v36  ;;  %v2936_v24 = vmul.f32 -80.0, %v2928_v38 }
 0x1a1   :  { %v1128_v37 = vadd.f32 1e-10, %v1120_v50  ;;  %v2549_v60 = vmul.f32 %v4445_v31, %v4445_v31  ;;  %v2572_v18 = vmul.f32 1.442695, %v2560_v53  ;;  %v2929_v63 = vmul.f32 %v4453_v52, %v4453_v52 }
 0x1a2   :  { %v5223_v33 = vpop.permute.xlu1 %1015  ;;  %6990 = vst [vmem:[#allocation17_spill] sm:$0xff] %v5237_v26  ;;  %v1165_v6 = vmul.f32 %v5239_v45, %v5239_v45  ;;  %v5249_v8 = vmul.f32 0.5, %v1248_v27  ;;  %v2562_v28 = vmul.f32 -80.0, %v2554_v9  ;;  %v4455_v31 = vadd.f32 -0.33, %v5229_v14 }
 0x1a3   :  { %v1122_v51 = vmul.f32 %v5176_v4, %v5223_v33  ;;  %4624 = vrcp.f32 %v1128_v37  ;;  %v2937_v38 = vmul.f32 -80.0, %v2929_v63  ;;  %v1599_v25 = vmul.f32 -0.3826834, %v5239_v45 }
 0x1a4   :  { %4626 = vpow2.f32 %v2568_v34  ;;  %6991 = vst [vmem:[#allocation18_spill] sm:$0xff] %v5249_v8  ;;  %v4449_v52 = vadd.f32 -0.25, %v5249_v8  ;;  %v2576_v27 = vmul.f32 1.442695, %v2562_v28 }
 0x1a5   :  { %v4615_v58 = vpop.eup %4614  ;;  %v1130_v29 = vadd.f32 1e-10, %v1122_v51  ;;  %v2557_v51 = vmul.f32 -80.0, %v2549_v60 }
 0x1a6   :  { %v4617_v3 = vpop.eup %4616  ;;  %v1134_v13 = vmul.f32 %v4615_v58, %v1068_v5  ;;  %v4447_v5 = vadd.f32 -0.25, %v5229_v14  ;;  %v2556_v58 = vmul.f32 -80.0, %v2548_v16  ;;  %v2553_v60 = vmul.f32 %v4449_v52, %v4449_v52 }
 0x1a7   :  { %v4619_v55 = vpop.eup %4618  ;;  %v1132_v15 = vmul.f32 %v4617_v3, %v1067_v22  ;;  %4628 = vrcp.f32 %v1130_v29 }
 0x1a8   :  { %v4621_v40 = vpop.eup %4620  ;;  %v1140_v22 = vmul.f32 %v4619_v55, %v1071_v23  ;;  %v5243_v3 = vclamps-f32 %v1134_v13, 0.95  ;;  %v2551_v39 = vmul.f32 %v4447_v5, %v4447_v5  ;;  %v2564_v16 = vmul.f32 1.442695, %v2556_v58 }
 0x1a9   :  { %v5245_v50 = vclamps-f32 %v1132_v15, 0.95  ;;  %v1144_v2 = vmul.f32 %v4621_v40, %v1073_v59  ;;  %v4623_v36 = vpop.eup %4622  ;;  %v2944_v59 = vmul.f32 1.442695, %v2936_v24  ;;  %4630 = vpow2.f32 %v2948_v47 }
 0x1aa   :  { %v5251_v23 = vclamps-f32 %v1140_v22, 0.95  ;;  %v1164_v13 = vmul.f32 %v5243_v3, %v5243_v3  ;;  %v1138_v55 = vmul.f32 %v4623_v36, %v1070_v41  ;;  %4632 = vpow2.f32 %v2572_v18 }
 0x1ab   :  { %v1163_v34 = vmul.f32 %v5245_v50, %v5245_v50  ;;  %v5257_v15 = vclamps-f32 %v1144_v2, 0.95  ;;  %v2559_v53 = vmul.f32 -80.0, %v2551_v39  ;;  %v1173_v40 = vsub.f32 1.0, %v1165_v6 }
 0x1ac   :  { %v5260_v37 = vclamps-f32 %v1138_v55, 0.95  ;;  %v1167_v5 = vmul.f32 %v5251_v23, %v5251_v23  ;;  %v1172_v29 = vsub.f32 1.0, %v1164_v13  ;;  %4634 = vpow2.f32 %v2564_v16 }
 0x1ad   :  { %6992 = vst [vmem:[#allocation19_spill] sm:$0xff] %v5257_v15  ;;  %v1171_v22 = vsub.f32 1.0, %v1163_v34  ;;  %v2566_v41 = vmul.f32 1.442695, %v2557_v51  ;;  %4636 = vpow2.f32 %v2944_v59  ;;  %v1169_v47 = vmul.f32 %v5257_v15, %v5257_v15  ;;  %v4625_v9 = vpop.eup %4624 }
 0x1ae   :  { %v1166_v2 = vmul.f32 %v5260_v37, %v5260_v37  ;;  %v2946_v58 = vmul.f32 1.442695, %v2937_v38  ;;  %v2931_v39 = vmul.f32 %v4455_v31, %v4455_v31  ;;  %v2570_v6 = vmul.f32 1.442695, %v2559_v53  ;;  %v5271_v63 = vpop.eup %4626 }
 0x1af   :  { %v1250_v18 = vadd.f32 %v5176_v4, %v5223_v33  ;;  %v1074_v36 = vmul.f32 0.95, %v5140_v19  ;;  %4638 = vpow2.f32 %v2576_v27  ;;  %v5274_v16 = vmax.f32 %v1172_v29, 0.0 }
 0x1b0   :  { %v1174_v24 = vsub.f32 1.0, %v1166_v2  ;;  %v1142_v28 = vmul.f32 %v4625_v9, %v5227_v57  ;;  %v5277_v34 = vmax.f32 %v1173_v40, 0.0  ;;  %v1175_v59 = vsub.f32 1.0, %v1167_v5 }
 0x1b1   :  { %v4629_v13 = vpop.eup %4628  ;;  %v5279_v51 = vmax.f32 %v1171_v22, 0.0  ;;  %4640 = vpow2.f32 %v2566_v41  ;;  %v1177_v55 = vsub.f32 1.0, %v1169_v47  ;;  %v2939_v38 = vmul.f32 -80.0, %v2931_v39 }
 0x1b2   :  { %4642 = vpow2.f32 %v2946_v58  ;;  %v5281_v4 = vclamps-f32 %v1142_v28, 0.95  ;;  %v5283_v33 = vmax.f32 %v1174_v24, 0.0  ;;  %v2561_v19 = vmul.f32 -80.0, %v2553_v60 }
 0x1b3   :  { %4644 = vpow2.f32 %v2570_v6  ;;  %v5285_v31 = vmul.f32 0.5, %v1250_v18  ;;  %v5287_v53 = vpop.eup %4630  ;;  %v1146_v57 = vmul.f32 %v4629_v13, %v1074_v36  ;;  %v1422_v52 = vmul.f32 0.9238795, %v5243_v3 }
 0x1b4   :  { %6994 = vst [vmem:[#allocation21_spill] sm:$0xff] %v5287_v53  ;;  %4646 = vrsqrt.f32 %v5274_v16  ;;  %v5295_v40 = vrot.slane %v1364_v12, %v4773_v11  ;;  %v5297_v5 = vpop.eup %4632  ;;  %v5299_v27 = vmax.f32 %v1175_v59, 0.0  ;;  %v5302_v29 = vadd.f32 -0.33, %v5185_v49 }
 0x1b5   :  { %6993 = vst [vmem:[#allocation20_spill] sm:$0xff] %v5285_v31  ;;  %v1168_v22 = vmul.f32 %v5281_v4, %v5281_v4  ;;  %4648 = vrsqrt.f32 %v5279_v51  ;;  %v5307_v41 = vmax.f32 %v1177_v55, 0.0  ;;  %v1421_v2 = vmul.f32 0.9238795, %v5245_v50 }
 0x1b6   :  { %6995 = vst [vmem:[#allocation22_spill] sm:$0xff] %v5295_v40  ;;  %v1509_v47 = vmul.f32 0.38268346, %v5245_v50  ;;  %4650 = vrsqrt.f32 %v5277_v34  ;;  %v5312_v12 = vpop.eup %4634  ;;  %v5314_v58 = vmul.f32 1.442695, %v2939_v38  ;;  %v5317_v9 = vadd.f32 -0.25, %v5285_v31 }
 0x1b7   :  { %v2574_v39 = vmul.f32 1.442695, %v2561_v19  ;;  %4652 = vrsqrt.f32 %v5283_v33  ;;  %v5320_v24 = vpop.eup %4636  ;;  %v5322_v6 = vclamps-f32 %v1146_v57, 0.95  ;;  %vm1196_vm15 = vcmp.eq.f32.partialorder %v5274_v16, inf }
 0x1b8   :  { %6996 = vst [vmem:[#allocation23_spill] sm:$0xff] %v5317_v9  ;;  %v1199_v60 = vand.u32 2147483648, %v5274_v16  ;;  %v5326_v18 = vadd.f32 1.0, %v1422_v52  ;;  %v1423_v36 = vmul.f32 0.9238795, %v5239_v45  ;;  %v1176_v28 = vsub.f32 1.0, %v1168_v22 }
 0x1b9   :  { %6997 = vst [vmem:[#allocation24_spill] sm:$0xff] %v5322_v6  ;;  %vm1198_vm2 = vcmp.eq.f32.partialorder %v5274_v16, 0.0  ;;  %vm1189_vm3 = vcmp.eq.f32.partialorder %v5279_v51, inf  ;;  %v1192_v13 = vand.u32 2147483648, %v5279_v51  ;;  %v1510_v59 = vmul.f32 0.38268346, %v5243_v3  ;;  %v5334_v38 = vpop.eup %4638 }
 0x1ba   :  { %v1597_v55 = vmul.f32 -0.3826834, %v5245_v50  ;;  %6998 = vst [vmem:[#allocation25_spill] sm:$0xff] %v5334_v38  ;;  %vm1191_vm4 = vcmp.eq.f32.partialorder %v5279_v51, 0.0  ;;  %v1429_v19 = vadd.f32 1.0, %v1421_v2  ;;  %v1517_v57 = vadd.f32 1.0, %v1509_v47 }
 0x1bb   :  { %vm1203_vm5 = vcmp.eq.f32.partialorder %v5277_v34, inf  ;;  %v1206_v52 = vand.u32 2147483648, %v5277_v34  ;;  %v1511_v22 = vmul.f32 0.38268346, %v5239_v45  ;;  %v5340_v54 = vpop.eup %4640  ;;  %4654 = vpow2.f32 %v2574_v39 }
 0x1bc   :  { %vm1205_vm6 = vcmp.eq.f32.partialorder %v5277_v34, 0.0  ;;  %v1424_v20 = vmul.f32 0.9238795, %v5260_v37  ;;  %v1598_v30 = vmul.f32 -0.3826834, %v5243_v3  ;;  %v5346_v1 = vpop.eup %4642  ;;  %v5350_v2 = vmul.f32 %v5322_v6, %v5322_v6 }
 0x1bd   :  { %v1512_v47 = vmul.f32 0.38268346, %v5260_v37  ;;  %v1686_v10 = vmul.f32 -0.9238795, %v5243_v3  ;;  %v1685_v39 = vmul.f32 -0.9238795, %v5245_v50  ;;  %v5355_v49 = vpop.eup %4644  ;;  %4656 = vrsqrt.f32 %v5299_v27 }
 0x1be   :  { %v5357_v14 = vmax.f32 %v1176_v28, 0.0  ;;  %v1431_v0 = vadd.f32 1.0, %v1423_v36  ;;  %v1518_v56 = vadd.f32 1.0, %v1510_v59  ;;  %v1605_v62 = vadd.f32 1.0, %v1597_v55  ;;  %v4647_v17 = vpop.eup %4646 }
 0x1bf   :  { %v1519_v44 = vadd.f32 1.0, %v1511_v22  ;;  %vm1210_vm7 = vcmp.eq.f32.partialorder %v5283_v33, inf  ;;  %v1213_v21 = vand.u32 2147483648, %v5283_v33  ;;  %v4649_v31 = vpop.eup %4648  ;;  %v1195_v3 = vmul.f32 %v4647_v17, %v5274_v16 }
 0x1c0   :  { %vm1212_vm8 = vcmp.eq.f32.partialorder %v5283_v33, 0.0  ;;  %v5364_v50 = vadd.f32 1.0, %v1424_v20  ;;  %v5366_v28 = vadd.f32 1.0, %v1598_v30  ;;  %v5368_v36 = vadd.f32 1.0, %v1599_v25  ;;  %v4651_v59 = vpop.eup %4650 }
 0x1c1   :  { %v1188_v55 = vmul.f32 %v4649_v31, %v5279_v51  ;;  %v5371_v22 = vadd.f32 1.0, %v1512_v47  ;;  %v5373_v48 = vadd.f32 1.0, %v1686_v10  ;;  %v5375_v40 = vadd.f32 1.0, %v1685_v39  ;;  %v4653_v6 = vpop.eup %4652 }
 0x1c2   :  { %v1197_v17 = vsel %vm1196_vm15, %v5274_v16, %v1195_v3  ;;  %v1202_v20 = vmul.f32 %v4651_v59, %v5277_v34  ;;  %v5383_v25 = vmul.f32 0.38268346, %v5251_v23  ;;  %v1209_v47 = vmul.f32 %v4653_v6, %v5283_v33 }
 0x1c3   :  { %v5387_v31 = vsel %vm1198_vm2, %v1199_v60, %v1197_v17  ;;  %v1190_v10 = vsel %vm1189_vm3, %v5279_v51, %v1188_v55  ;;  %v5394_v39 = vmul.f32 -0.9238795, %v5239_v45  ;;  %4658 = vrsqrt.f32 %v5357_v14 }
 0x1c4   :  { %v1438_v3 = vmul.f32 0.38268346, %v5387_v31  ;;  %v5399_v59 = vsel %vm1191_vm4, %v1192_v13, %v1190_v10  ;;  %v1204_v16 = vsel %vm1203_vm5, %v5277_v34, %v1202_v20  ;;  %v1526_v60 = vmul.f32 0.9238795, %v5387_v31 }
 0x1c5   :  { %v1437_v17 = vmul.f32 0.38268346, %v5399_v59  ;;  %v1525_v55 = vmul.f32 0.9238795, %v5399_v59  ;;  %v5409_v45 = vsel %vm1205_vm6, %v1206_v52, %v1204_v16  ;;  %v1613_v6 = vmul.f32 0.92387956, %v5399_v59  ;;  %v5412_v30 = vpop.eup %4654 }
 0x1c6   :  { %6999 = vst [vmem:[#allocation26_spill] sm:$0xff] %v5412_v30  ;;  %v1446_v51 = vadd.f32 %v1438_v3, %v5326_v18  ;;  %v1439_v13 = vmul.f32 0.38268346, %v5409_v45  ;;  %v1534_v10 = vadd.f32 %v1526_v60, %v1518_v56  ;;  %v1527_v20 = vmul.f32 0.9238795, %v5409_v45 }
 0x1c7   :  { %v1445_v38 = vadd.f32 %v1437_v17, %v1429_v19  ;;  %v1533_v8 = vadd.f32 %v1525_v55, %v1517_v57  ;;  %v1621_v26 = vadd.f32 %v1613_v6, %v1605_v62  ;;  %v1211_v34 = vsel %vm1210_vm7, %v5283_v33, %v1209_v47  ;;  %v5420_v9 = vpop.eup %4656 }
 0x1c8   :  { %v1454_v52 = vmul.f32 0.5, %v1446_v51  ;;  %v1447_v16 = vadd.f32 %v1439_v13, %v1431_v0  ;;  %v1542_v15 = vmul.f32 0.5, %v1534_v10  ;;  %v1535_v53 = vadd.f32 %v1527_v20, %v1519_v44 }
 0x1c9   :  { %v1453_v30 = vmul.f32 0.5, %v1445_v38  ;;  %v1541_v18 = vmul.f32 0.5, %v1533_v8  ;;  %v1629_v3 = vmul.f32 0.5, %v1621_v26  ;;  %v5424_v56 = vsel %vm1212_vm8, %v1213_v21, %v1211_v34 }
 0x1ca   :  { %v1462_v19 = vmax.f32 %v1454_v52, 0.0  ;;  %v1455_v57 = vmul.f32 0.5, %v1447_v16  ;;  %v1550_v62 = vmax.f32 %v1542_v15, 0.0  ;;  %v1543_v60 = vmul.f32 0.5, %v1535_v53 }
 0x1cb   :  { %v1461_v17 = vmax.f32 %v1453_v30, 0.0  ;;  %v1549_v55 = vmax.f32 %v1541_v18, 0.0  ;;  %v1637_v47 = vmax.f32 %v1629_v3, 0.0  ;;  %v1440_v0 = vmul.f32 0.38268346, %v5424_v56 }
 0x1cc   :  { %v1470_v6 = vmul.f32 %v1462_v19, %v1462_v19  ;;  %v1463_v44 = vmax.f32 %v1455_v57, 0.0  ;;  %v1558_v51 = vmul.f32 %v1550_v62, %v1550_v62  ;;  %v1551_v13 = vmax.f32 %v1543_v60, 0.0 }
 0x1cd   :  { %v1469_v38 = vmul.f32 %v1461_v17, %v1461_v17  ;;  %v1557_v8 = vmul.f32 %v1549_v55, %v1549_v55  ;;  %v1645_v26 = vmul.f32 %v1637_v47, %v1637_v47  ;;  %v1425_v33 = vmul.f32 0.9238795, %v5251_v23 }
 0x1ce   :  { %v1478_v21 = vmul.f32 %v1470_v6, %v1470_v6  ;;  %v1471_v10 = vmul.f32 %v1463_v44, %v1463_v44  ;;  %v1566_v20 = vmul.f32 %v1558_v51, %v1558_v51  ;;  %v1600_v15 = vmul.f32 -0.3826834, %v5260_v37 }
 0x1cf   :  { %v1477_v53 = vmul.f32 %v1469_v38, %v1469_v38  ;;  %v1565_v30 = vmul.f32 %v1557_v8, %v1557_v8  ;;  %v1653_v34 = vmul.f32 %v1645_v26, %v1645_v26  ;;  %v1448_v52 = vadd.f32 %v1440_v0, %v5364_v50 }
 0x1d0   :  { %v1486_v3 = vmul.f32 %v1478_v21, %v1478_v21  ;;  %v1479_v19 = vmul.f32 %v1471_v10, %v1471_v10  ;;  %v1574_v57 = vmul.f32 %v1566_v20, %v1566_v20  ;;  %v1559_v62 = vmul.f32 %v1551_v13, %v1551_v13 }
 0x1d1   :  { %v7000_v60 = vrot.slane %v5171_v35, %v4773_v11  ;;  %v7001_v55 = vrot.slane %v5165_v61, %v4773_v11  ;;  %v1485_v6 = vmul.f32 %v1477_v53, %v1477_v53  ;;  %v1573_v44 = vmul.f32 %v1565_v30, %v1565_v30 }
 0x1d2   :  { %v1494_v51 = vmul.f32 %v1486_v3, %v1486_v3  ;;  %v1487_v38 = vmul.f32 %v1479_v19, %v1479_v19  ;;  %v1582_v8 = vmul.f32 %v1574_v57, %v1574_v57  ;;  %v1661_v50 = vmul.f32 %v1653_v34, %v1653_v34 }
 0x1d3   :  { %v1493_v13 = vmul.f32 %v1485_v6, %v1485_v6  ;;  %v1581_v21 = vmul.f32 %v1573_v44, %v1573_v44  ;;  %v1567_v61 = vmul.f32 %v1559_v62, %v1559_v62  ;;  %v1456_v62 = vmul.f32 0.5, %v1448_v52 }
 0x1d4   :  { %v1495_v20 = vmul.f32 %v1487_v38, %v1487_v38  ;;  %v5444_v30 = vmul.f32 %v1494_v51, %v1494_v51  ;;  %v5459_v57 = vmul.f32 %v1582_v8, %v1582_v8  ;;  %vm1217_vm9 = vcmp.eq.f32.partialorder %v5299_v27, inf }
 0x1d5   :  { %v5453_v3 = vmul.f32 %v1493_v13, %v1493_v13  ;;  %v1575_v6 = vmul.f32 %v1567_v61, %v1567_v61  ;;  %v1695_v8 = vadd.f32 1.0, %v5394_v39  ;;  %v5489_v13 = vadd.f32 1.0, %v1600_v15 }
 0x1d6   :  { %7002 = vst [vmem:[#allocation27_spill] sm:$0xff] %v5444_v30  ;;  %7003 = vst [vmem:[#allocation28_spill] sm:$0xff] %v5459_v57  ;;  %v1464_v39 = vmax.f32 %v1456_v62, 0.0  ;;  %v1615_v15 = vmul.f32 0.92387956, %v5409_v45  ;;  %vm1219_vm10 = vcmp.eq.f32.partialorder %v5299_v27, 0.0  ;;  %4660 = vrsqrt.f32 %v5307_v41 }
 0x1d7   :  { %vm1224_vm11 = vcmp.eq.f32.partialorder %v5357_v14, inf  ;;  %vm1226_vm12 = vcmp.eq.f32.partialorder %v5357_v14, 0.0  ;;  %4662 = vpow2.f32 %v5314_v58  ;;  %vm1231_vm13 = vcmp.eq.f32.partialorder %v5307_v41, inf }
 0x1d8   :  { %vm1233_vm14 = vcmp.eq.f32.partialorder %v5307_v41, 0.0  ;;  %vm1893_vm8 = vcmask 1041409  }
 0x1e6   :  { %v1272_v16 = vpop.permute.xlu1 %1271  ;;  %v1265_v18 = vpop.permute.xlu0 %1264 }
 0x1e7   :  { %v1406_v17 = vmul.f32 %v7000_v60, %v1272_v16  ;;  %v1405_v47 = vmul.f32 %v7001_v55, %v1265_v18  ;;  %v1669_v16 = vmul.f32 %v1661_v50, %v1661_v50  ;;  %v5451_v18 = vadd.f32 1.0, %v5383_v25 }
 0x1e8   :  { %v5487_v50 = vadd.f32 1.0, %v1425_v33  ;;  %v1614_v33 = vmul.f32 0.92387956, %v5387_v31 }
 0x1e9   :  { %v5437_v0 = vmul.f32 %v5027_v32, %v1406_v17  ;;  %v5440_v26 = vmul.f32 %v5027_v32, %v1405_v47  ;;  %v5467_v17 = vmul.f32 %v1581_v21, %v1581_v21  ;;  %v5471_v47 = vmul.f32 %v1495_v20, %v1495_v20 }
 0x1ea   :  { %v1286_v35 = vpop.permute.xlu1 %1285  ;;  %v1279_v10 = vpop.permute.xlu0 %1278  ;;  %v7007_v21 = vrot.slane %v5182_v46, %v4773_v11  ;;  %v1583_v20 = vmul.f32 %v1575_v6, %v1575_v6  ;;  %v1622_v62 = vadd.f32 %v1614_v33, %v5366_v28  ;;  %v1528_v6 = vmul.f32 0.9238795, %v5424_v56 }
 0x1eb   :  { %v1407_v53 = vmul.f32 %v5200_v42, %v1279_v10  ;;  %v5448_v34 = vmul.f32 %v5340_v54, %v5437_v0  ;;  %v5457_v19 = vmul.f32 %v5312_v12, %v5440_v26  ;;  %v1408_v42 = vmul.f32 %v5208_v7, %v1286_v35  ;;  %7005 = vst [vmem:[#allocation30_spill] sm:$0xff] %v5467_v17 }
 0x1ec   :  { %7006 = vst [vmem:[#allocation31_spill] sm:$0xff] %v5471_v47  ;;  %v5473_v12 = vmul.f32 %v1669_v16, %v1669_v16  ;;  %v1536_v28 = vadd.f32 %v1528_v6, %v5371_v22 }
 0x1ed   :  { %v5463_v60 = vmul.f32 %v5027_v32, %v1407_v53  ;;  %v2589_v54 = vmul.f32 %v5448_v34, %v5444_v30  ;;  %v2588_v55 = vmul.f32 %v5457_v19, %v5453_v3  ;;  %v2671_v7 = vmul.f32 %v5457_v19, %v5467_v17 }
 0x1ee   :  { %v1293_v25 = vpop.permute.xlu0 %1292  ;;  %v2672_v51 = vmul.f32 %v5448_v34, %v5459_v57  ;;  %v2754_v10 = vmul.f32 %v5457_v19, %v5473_v12  ;;  %v5499_v16 = vmul.f32 %v5027_v32, %v1408_v42  ;;  %v1472_v42 = vmul.f32 %v1464_v39, %v1464_v39 }
 0x1ef   :  { %7004 = vst [vmem:[#allocation29_spill] sm:$0xff] %v5463_v60  ;;  %v2599_v52 = vsel %vm155_vm1, %v2589_v54, 0.0  ;;  %v5480_v44 = vmul.f32 %v5271_v63, %v5463_v60  ;;  %v2596_v38 = vsel %vm155_vm1, %v2588_v55, 0.0  ;;  %v1409_v35 = vmul.f32 %v7007_v21, %v1293_v25  ;;  %v5509_v25 = vpop.eup %4658 }
 0x1f0   :  { %2600 = vadd.xlane.f32.xlu1 %v2599_v52  ;;  %2597 = vadd.xlane.f32.xlu0 %v2596_v38  ;;  %7008 = vst [vmem:[#allocation32_spill] sm:$0xff] %v5499_v16  ;;  %v2679_v46 = vsel %vm155_vm1, %v2671_v7, 0.0  ;;  %v2682_v53 = vsel %vm155_vm1, %v2672_v51, 0.0  ;;  %v5507_v54 = vmul.f32 %v1583_v20, %v1583_v20  ;;  %v1623_v55 = vadd.f32 %v1615_v15, %v5368_v36 }
 0x1f1   :  { %v2590_v63 = vmul.f32 %v5480_v44, %v5471_v47  ;;  %v5515_v52 = vmul.f32 %v5027_v32, %v1409_v35  ;;  %v2762_v7 = vsel %vm155_vm1, %v2754_v10, 0.0  ;;  %v1702_v38 = vmul.f32 0.3826835, %v5387_v31 }
 0x1f2   :  { %v2673_v51 = vmul.f32 %v5480_v44, %v5507_v54  ;;  %v1480_v21 = vmul.f32 %v1472_v42, %v1472_v42  ;;  %v1631_v20 = vmul.f32 0.5, %v1623_v55  ;;  %v5524_v36 = vmul.f32 %v5355_v49, %v5499_v16 }
 0x1f3   :  { %v2602_v61 = vsel %vm155_vm1, %v2590_v63, 0.0  ;;  %v1630_v63 = vmul.f32 0.5, %v1622_v62  ;;  %v1710_v35 = vadd.f32 %v1702_v38, %v5373_v48  ;;  %v1701_v39 = vmul.f32 0.3826835, %v5399_v59 }
 0x1f4   :  { %2603 = vadd.xlane.f32.xlu1 %v2602_v61  ;;  %2680 = vadd.xlane.f32.xlu0 %v2679_v46  ;;  %v1216_v10 = vmul.f32 %v5420_v9, %v5299_v27  ;;  %v1488_v33 = vmul.f32 %v1480_v21, %v1480_v21  ;;  %v1639_v31 = vmax.f32 %v1631_v20, 0.0  ;;  %v1544_v46 = vmul.f32 0.5, %v1536_v28 }
 0x1f5   :  { %v1638_v15 = vmax.f32 %v1630_v63, 0.0  ;;  %v2685_v61 = vsel %vm155_vm1, %v2673_v51, 0.0  ;;  %v1718_v22 = vmul.f32 0.5, %v1710_v35  ;;  %v1709_v42 = vadd.f32 %v1701_v39, %v5375_v40 }
 0x1f6   :  { %v1218_v49 = vsel %vm1217_vm9, %v5299_v27, %v1216_v10  ;;  %v1496_v48 = vmul.f32 %v1488_v33, %v1488_v33  ;;  %v1647_v62 = vmul.f32 %v1639_v31, %v1639_v31  ;;  %v1552_v55 = vmax.f32 %v1544_v46, 0.0 }
 0x1f7   :  { %v1646_v59 = vmul.f32 %v1638_v15, %v1638_v15  ;;  %v1726_v9 = vmax.f32 %v1718_v22, 0.0  ;;  %v1717_v6 = vmul.f32 0.5, %v1709_v42  ;;  %v1703_v51 = vmul.f32 0.3826835, %v5409_v45 }
 0x1f8   :  { %2763 = vadd.xlane.f32.xlu1 %v2762_v7  ;;  %2683 = vadd.xlane.f32.xlu0 %v2682_v53  ;;  %v7009_v7 = vand.u32 2147483648, %v5299_v27  ;;  %v5542_v38 = vmul.f32 %v1496_v48, %v1496_v48  ;;  %v1655_v21 = vmul.f32 %v1647_v62, %v1647_v62  ;;  %v1560_v63 = vmul.f32 %v1552_v55, %v1552_v55 }
 0x1f9   :  { %v1654_v40 = vmul.f32 %v1646_v59, %v1646_v59  ;;  %v1734_v20 = vmul.f32 %v1726_v9, %v1726_v9  ;;  %v1725_v28 = vmax.f32 %v1717_v6, 0.0  ;;  %v1711_v39 = vadd.f32 %v1703_v51, %v1695_v8 }
 0x1fa   :  { %v5539_v53 = vsel %vm1219_vm10, %v7009_v7, %v1218_v49  ;;  %v2591_v10 = vmul.f32 %v5524_v36, %v5542_v38  ;;  %v1663_v27 = vmul.f32 %v1655_v21, %v1655_v21  ;;  %v1568_v15 = vmul.f32 %v1560_v63, %v1560_v63 }
 0x1fb   :  { %v1529_v35 = vmul.f32 0.9238795, %v5539_v53  ;;  %v1662_v33 = vmul.f32 %v1654_v40, %v1654_v40  ;;  %v1742_v31 = vmul.f32 %v1734_v20, %v1734_v20  ;;  %v1733_v46 = vmul.f32 %v1725_v28, %v1725_v28 }
 0x1fc   :  { %2686 = vadd.xlane.f32.xlu0 %v2685_v61  ;;  %v1719_v22 = vmul.f32 0.5, %v1711_v39  ;;  %v2605_v42 = vsel %vm155_vm1, %v2591_v10, 0.0  ;;  %v1671_v61 = vmul.f32 %v1663_v27, %v1663_v27  ;;  %v1576_v48 = vmul.f32 %v1568_v15, %v1568_v15 }
 0x1fd   :  { %v1537_v45 = vadd.f32 %v1529_v35, %v5451_v18  ;;  %v1670_v49 = vmul.f32 %v1662_v33, %v1662_v33  ;;  %2606 = vadd.xlane.f32.xlu1 %v2605_v42  ;;  %v1750_v59 = vmul.f32 %v1742_v31, %v1742_v31  ;;  %v1741_v62 = vmul.f32 %v1733_v46, %v1733_v46 }
 0x1fe   :  { %v1727_v55 = vmax.f32 %v1719_v22, 0.0  ;;  %v5551_v6 = vmul.f32 %v1671_v61, %v1671_v61  ;;  %v1584_v7 = vmul.f32 %v1576_v48, %v1576_v48  ;;  %v1441_v51 = vmul.f32 0.38268346, %v5539_v53 }
 0x1ff   :  { %v1545_v8 = vmul.f32 0.5, %v1537_v45  ;;  %v5549_v9 = vmul.f32 %v1670_v49, %v1670_v49  ;;  %v1758_v40 = vmul.f32 %v1750_v59, %v1750_v59  ;;  %v1749_v18 = vmul.f32 %v1741_v62, %v1741_v62 }
 0x200   :  { %v1735_v63 = vmul.f32 %v1727_v55, %v1727_v55  ;;  %v2756_v28 = vmul.f32 %v5480_v44, %v5551_v6  ;;  %v5559_v35 = vmul.f32 %v1584_v7, %v1584_v7  ;;  %v1449_v39 = vadd.f32 %v1441_v51, %v5487_v50 }
 0x201   :  { %v1553_v21 = vmax.f32 %v1545_v8, 0.0  ;;  %v2755_v20 = vmul.f32 %v5448_v34, %v5549_v9  ;;  %v5562_v10 = vmul.f32 %v1758_v40, %v1758_v40  ;;  %v1757_v33 = vmul.f32 %v1749_v18, %v1749_v18 }
 0x202   :  { %7010 = vst [vmem:[#allocation33_spill] sm:$0xff] %v5559_v35  ;;  %v1743_v15 = vmul.f32 %v1735_v63, %v1735_v63  ;;  %v2768_v46 = vsel %vm155_vm1, %v2756_v28, 0.0  ;;  %v2674_v45 = vmul.f32 %v5524_v36, %v5559_v35  ;;  %v1457_v22 = vmul.f32 0.5, %v1449_v39 }
 0x203   :  { %v1561_v27 = vmul.f32 %v1553_v21, %v1553_v21  ;;  %v2765_v31 = vsel %vm155_vm1, %v2755_v20, 0.0  ;;  %2769 = vadd.xlane.f32.xlu1 %v2768_v46  ;;  %v2838_v42 = vmul.f32 %v5448_v34, %v5562_v10  ;;  %v5570_v49 = vmul.f32 %v1757_v33, %v1757_v33 }
 0x204   :  { %2766 = vadd.xlane.f32.xlu0 %v2765_v31  ;;  %v1616_v61 = vmul.f32 0.92387956, %v5424_v56  ;;  %v1751_v48 = vmul.f32 %v1743_v15, %v1743_v15  ;;  %v1465_v59 = vmax.f32 %v1457_v22, 0.0  ;;  %v1227_v62 = vand.u32 2147483648, %v5357_v14 }
 0x205   :  { %v1569_v50 = vmul.f32 %v1561_v27, %v1561_v27  ;;  %v1514_v8 = vmul.f32 0.38268346, %v5281_v4  ;;  %v2688_v55 = vsel %vm155_vm1, %v2674_v45, 0.0  ;;  %v2837_v7 = vmul.f32 %v5457_v19, %v5570_v49 }
 0x206   :  { %v1624_v40 = vadd.f32 %v1616_v61, %v5489_v13  ;;  %v2848_v34 = vsel %vm155_vm1, %v2838_v42, 0.0  ;;  %v1759_v18 = vmul.f32 %v1751_v48, %v1751_v48  ;;  %v1473_v21 = vmul.f32 %v1465_v59, %v1465_v59 }
 0x207   :  { %v1577_v51 = vmul.f32 %v1569_v50, %v1569_v50  ;;  %v1223_v63 = vmul.f32 %v5509_v25, %v5357_v14  ;;  %2849 = vadd.xlane.f32.xlu1 %v2848_v34  ;;  %v5584_v28 = vmul.f32 %v5297_v5, %v5515_v52  ;;  %v1688_v19 = vmul.f32 -0.9238795, %v5260_v37  ;;  %v1300_v25 = vpop.permute.xlu1 %1299 }
 0x208   :  { %2689 = vadd.xlane.f32.xlu0 %v2688_v55  ;;  %v1632_v39 = vmul.f32 0.5, %v1624_v40  ;;  %v1481_v33 = vmul.f32 %v1473_v21, %v1473_v21  ;;  %v5589_v13 = vmul.f32 %v5346_v1, %v5437_v0  ;;  %v2845_v15 = vsel %vm155_vm1, %v2837_v7, 0.0 }
 0x209   :  { %v1585_v20 = vmul.f32 %v1577_v51, %v1577_v51  ;;  %v1225_v27 = vsel %vm1224_vm11, %v5357_v14, %v1223_v63  ;;  %v5600_v37 = vmul.f32 %v1759_v18, %v1759_v18  ;;  %v1522_v22 = vadd.f32 1.0, %v1514_v8 }
 0x20a   :  { %v1640_v5 = vmax.f32 %v1632_v39, 0.0  ;;  %v5598_v46 = vsel %vm1226_vm12, %v1227_v62, %v1225_v27  ;;  %v1489_v45 = vmul.f32 %v1481_v33, %v1481_v33  ;;  %v1696_v14 = vadd.f32 1.0, %v1688_v19 }
 0x20b   :  { %v5596_v31 = vmul.f32 %v1585_v20, %v1585_v20  ;;  %v1530_v1 = vmul.f32 0.9238795, %v5598_v46  ;;  %v1704_v61 = vmul.f32 0.3826835, %v5424_v56  ;;  %v7011_v48 = vrot.slane %v5192_v43, %v4773_v11 }
 0x20c   :  { %2846 = vadd.xlane.f32.xlu0 %v2845_v15  ;;  %v1648_v50 = vmul.f32 %v1640_v5, %v1640_v5  ;;  %v2839_v62 = vmul.f32 %v5480_v44, %v5600_v37  ;;  %v1497_v55 = vmul.f32 %v1489_v45, %v1489_v45  ;;  %v1426_v34 = vmul.f32 0.9238795, %v5281_v4 }
 0x20d   :  { %v2675_v42 = vmul.f32 %v5584_v28, %v5596_v31  ;;  %v1410_v59 = vmul.f32 %v7011_v48, %v1300_v25  ;;  %v1538_v7 = vadd.f32 %v1530_v1, %v1522_v22  ;;  %v1712_v40 = vadd.f32 %v1704_v61, %v1696_v14 }
 0x20e   :  { %v1656_v51 = vmul.f32 %v1648_v50, %v1648_v50  ;;  %v5613_v18 = vmul.f32 %v1497_v55, %v1497_v55  ;;  %v2969_v56 = vmul.f32 %v5589_v13, %v5444_v30  ;;  %v1442_v11 = vmul.f32 0.38268346, %v5598_v46 }
 0x20f   :  { %v2691_v8 = vsel %vm155_vm1, %v2675_v42, 0.0  ;;  %v1546_v21 = vmul.f32 0.5, %v1538_v7  ;;  %v5620_v44 = vmul.f32 %v5320_v24, %v5440_v26  ;;  %v1720_v63 = vmul.f32 0.5, %v1712_v40 }
 0x210   :  { %2692 = vadd.xlane.f32.xlu1 %v2691_v8  ;;  %v1664_v43 = vmul.f32 %v1656_v51, %v1656_v51  ;;  %v1434_v20 = vadd.f32 1.0, %v1426_v34  ;;  %v2592_v39 = vmul.f32 %v5584_v28, %v5613_v18  ;;  %v1601_v33 = vmul.f32 -0.3826834, %v5251_v23 }
 0x211   :  { %v1554_v19 = vmax.f32 %v1546_v21, 0.0  ;;  %v1617_v27 = vmul.f32 0.92387956, %v5539_v53  ;;  %v2851_v25 = vsel %vm155_vm1, %v2839_v62, 0.0  ;;  %v1728_v5 = vmax.f32 %v1720_v63, 0.0  ;;  %v7014_v63 = vld [vmem:[#allocation23_spill] sm:$0xff] }
 0x212   :  { %v1672_v15 = vmul.f32 %v1664_v43, %v1664_v43  ;;  %v1450_v45 = vadd.f32 %v1442_v11, %v1434_v20  ;;  %v1178_v22 = vsub.f32 1.0, %v5350_v2  ;;  %v2608_v24 = vsel %vm155_vm1, %v2592_v39, 0.0 }
 0x213   :  { %v1562_v42 = vmul.f32 %v1554_v19, %v1554_v19  ;;  %v1609_v50 = vadd.f32 1.0, %v1601_v33  ;;  %v5632_v14 = vmul.f32 %v5027_v32, %v1410_v59  ;;  %2609 = vadd.xlane.f32.xlu0 %v2608_v24  ;;  %v1736_v62 = vmul.f32 %v1728_v5, %v1728_v5 }
 0x214   :  { %2852 = vadd.xlane.f32.xlu1 %v2851_v25  ;;  %v5634_v61 = vmul.f32 %v1672_v15, %v1672_v15  ;;  %v1458_v55 = vmul.f32 0.5, %v1450_v45  ;;  %v2979_v2 = vsel %vm155_vm1, %v2969_v56, 0.0  ;;  %v7013_v51 = vmov 0.0   ;;  %v7015_v15 = vld [vmem:[#allocation26_spill] sm:$0xff] }
 0x215   :  { %v1570_v7 = vmul.f32 %v1562_v42, %v1562_v42  ;;  %v1625_v8 = vadd.f32 %v1617_v27, %v1609_v50  ;;  %v2968_v40 = vmul.f32 %v5620_v44, %v5453_v3  ;;  %v1744_v34 = vmul.f32 %v1736_v62, %v1736_v62 }
 0x216   :  { %v5629_v1 = vpop.f32.mrb[0].mxu0  ;;  %v2757_v59 = vmul.f32 %v5524_v36, %v5634_v61  ;;  %v1466_v21 = vmax.f32 %v1458_v55, 0.0  ;;  %v5650_v56 = vmul.f32 %v5302_v29, %v5302_v29  ;;  %v2555_v20 = vmul.f32 %v7014_v63, %v7014_v63 }
 0x217   :  { %7012 = vst [vmem:[#allocation34_spill] sm:$0xff] %v5629_v1  ;;  %v4506_v48 = vpop.f32.mrb[1].mxu0  ;;  %4513 = vmatpush3.msra.mxu0 %v5629_v1  ;;  %v1578_v11 = vmul.f32 %v1570_v7, %v1570_v7  ;;  %v1633_v43 = vmul.f32 0.5, %v1625_v8  ;;  %v1752_v19 = vmul.f32 %v1744_v34, %v1744_v34  ;;  %v5656_v27 = vmax.f32 %v1178_v22, 0.0 }
 0x218   :  { %4515 = vmatmul.mubr.msk.f32.vlgmr.msra.gmra.mrb[2].mxu0 %vm155_vm1, %v5629_v1  ;;  %4522 = vmatprep.subr.mxu0 %v7013_v51  ;;  %v2771_v39 = vsel %vm155_vm1, %v2757_v59, 0.0  ;;  %v1474_v33 = vmul.f32 %v1466_v21, %v1466_v21  ;;  %v5660_v29 = vmul.f32 %v7015_v15, %v5632_v14  ;;  %v2976_v58 = vsel %vm155_vm1, %v2968_v40, 0.0  ;;  %v7019_v21 = vld [vmem:[#allocation19_spill] sm:$0xff] }
 0x219   :  { %4524 = vmatprep.mubr.msk.f32.mxu0 %vm4735_vm0, %v7013_v51  ;;  %2980 = vadd.xlane.f32.xlu1 %v2979_v2  ;;  %v1586_v25 = vmul.f32 %v1578_v11, %v1578_v11  ;;  %v1641_v5 = vmax.f32 %v1633_v43, 0.0  ;;  %v1760_v45 = vmul.f32 %v1752_v19, %v1752_v19  ;;  %v1602_v42 = vmul.f32 -0.3826834, %v5281_v4  ;;  %v7017_v2 = vld [vmem:[#allocation21_spill] sm:$0xff] }
 0x21a   :  { %2772 = vadd.xlane.f32.xlu0 %v2771_v39  ;;  %v1482_v24 = vmul.f32 %v1474_v33, %v1474_v33  ;;  %v3051_v48 = vmul.f32 %v5620_v44, %v5467_v17  ;;  %v1618_v62 = vmul.f32 0.92387956, %v5598_v46  ;;  %v5671_v7 = vmul.f32 %v7017_v2, %v5463_v60  ;;  %v4661_v33 = vpop.eup %4660 }
 0x21b   :  { %v5664_v50 = vmul.f32 %v1586_v25, %v1586_v25  ;;  %v1649_v22 = vmul.f32 %v1641_v5, %v1641_v5  ;;  %v1610_v8 = vadd.f32 1.0, %v1602_v42  ;;  %v5676_v40 = vmul.f32 %v1760_v45, %v1760_v45 }
 0x21c   :  { %v1490_v55 = vmul.f32 %v1482_v24, %v1482_v24  ;;  %v1427_v11 = vmul.f32 0.9238795, %v7019_v21  ;;  %v1515_v39 = vmul.f32 0.38268346, %v7019_v21  ;;  %v1689_v19 = vmul.f32 -0.9238795, %v5251_v23 }
 0x21d   :  { %7016 = vst [vmem:[#allocation23_spill] sm:$0xff] %v5664_v50  ;;  %v2676_v59 = vmul.f32 %v5660_v29, %v5664_v50  ;;  %7018 = vst [vmem:[#allocation26_spill] sm:$0xff] %v5676_v40  ;;  %v1657_v34 = vmul.f32 %v1649_v22, %v1649_v22  ;;  %v1626_v63 = vadd.f32 %v1618_v62, %v1610_v8  ;;  %v1234_v24 = vand.u32 2147483648, %v5307_v41  ;;  %v5689_v22 = vpop.eup %4662  ;;  %v1307_v8 = vpop.permute.xlu0 %1306 }
 0x21e   :  { %2977 = vadd.xlane.f32.xlu0 %v2976_v58  ;;  %v1498_v43 = vmul.f32 %v1490_v55, %v1490_v55  ;;  %v2840_v15 = vmul.f32 %v5524_v36, %v5676_v40  ;;  %v1230_v45 = vmul.f32 %v4661_v33, %v5307_v41  ;;  %v1435_v62 = vadd.f32 1.0, %v1427_v11 }
 0x21f   :  { %v2694_v25 = vsel %vm155_vm1, %v2676_v59, 0.0  ;;  %v1665_v5 = vmul.f32 %v1657_v34, %v1657_v34  ;;  %v1634_v42 = vmul.f32 0.5, %v1626_v63  ;;  %v1697_v55 = vadd.f32 1.0, %v1689_v19 }
 0x220   :  { %2695 = vadd.xlane.f32.xlu1 %v2694_v25  ;;  %v5685_v58 = vmul.f32 %v1498_v43, %v1498_v43  ;;  %v1705_v2 = vmul.f32 0.3826835, %v5539_v53  ;;  %v1232_v59 = vsel %vm1231_vm13, %v5307_v41, %v1230_v45  ;;  %v1523_v43 = vadd.f32 1.0, %v1515_v39 }
 0x221   :  { %v1673_v23 = vmul.f32 %v1665_v5, %v1665_v5  ;;  %v1642_v34 = vmax.f32 %v1634_v42, 0.0  ;;  %v2854_v33 = vsel %vm155_vm1, %v2840_v15, 0.0  ;;  %v5702_v11 = vsel %vm1233_vm14, %v1234_v24, %v1232_v59  ;;  %v7020_v42 = vld [vmem:[#allocation17_spill] sm:$0xff] }
 0x222   :  { %v2593_v36 = vmul.f32 %v5660_v29, %v5685_v58  ;;  %v1713_v19 = vadd.f32 %v1705_v2, %v1697_v55  ;;  %v1443_v25 = vmul.f32 0.38268346, %v5702_v11  ;;  %v1531_v51 = vmul.f32 0.9238795, %v5702_v11  ;;  %v7021_v2 = vld [vmem:[#allocation18_spill] sm:$0xff] }
 0x223   :  { %v5698_v63 = vmul.f32 %v1673_v23, %v1673_v23  ;;  %v1650_v5 = vmul.f32 %v1642_v34, %v1642_v34  ;;  %v2563_v45 = vmul.f32 -80.0, %v2555_v20  ;;  %v1411_v39 = vmul.f32 %v7020_v42, %v1307_v8 }
 0x224   :  { %2855 = vadd.xlane.f32.xlu1 %v2854_v33  ;;  %v2611_v53 = vsel %vm155_vm1, %v2593_v36, 0.0  ;;  %v1721_v23 = vmul.f32 0.5, %v1713_v19  ;;  %v2940_v41 = vmul.f32 -80.0, %v5650_v56  ;;  %v1451_v24 = vadd.f32 %v1443_v25, %v1435_v62 }
 0x225   :  { %2612 = vadd.xlane.f32.xlu0 %v2611_v53  ;;  %v2758_v15 = vmul.f32 %v5584_v28, %v5698_v63  ;;  %v1539_v55 = vadd.f32 %v1531_v51, %v1523_v43  ;;  %4664 = vrsqrt.f32 %v5656_v27  ;;  %v4457_v36 = vadd.f32 -0.33, %v7021_v2 }
 0x226   :  { %v3059_v59 = vsel %vm155_vm1, %v3051_v48, 0.0  ;;  %v2970_v20 = vmul.f32 %v5671_v7, %v5471_v47  ;;  %v1729_v34 = vmax.f32 %v1721_v23, 0.0  ;;  %v1459_v33 = vmul.f32 0.5, %v1451_v24 }
 0x227   :  { %v2774_v8 = vsel %vm155_vm1, %v2758_v15, 0.0  ;;  %v1658_v53 = vmul.f32 %v1650_v5, %v1650_v5  ;;  %v1547_v19 = vmul.f32 0.5, %v1539_v55  ;;  %v2578_v42 = vmul.f32 1.442695, %v2563_v45 }
 0x228   :  { %3060 = vadd.xlane.f32.xlu1 %v3059_v59  ;;  %v5718_v56 = vmul.f32 %v5027_v32, %v1411_v39  ;;  %v3052_v51 = vmul.f32 %v5589_v13, %v5459_v57  ;;  %v1737_v62 = vmul.f32 %v1729_v34, %v1729_v34  ;;  %v5722_v48 = vmul.f32 1.442695, %v2940_v41  ;;  %v7022_v41 = vld [vmem:[#allocation25_spill] sm:$0xff] }
 0x229   :  { %2775 = vadd.xlane.f32.xlu0 %v2774_v8  ;;  %v1467_v43 = vmax.f32 %v1459_v33, 0.0  ;;  %v1555_v25 = vmax.f32 %v1547_v19, 0.0  ;;  %v1603_v23 = vmul.f32 -0.3826834, %v7019_v21  ;;  %v5725_v59 = vmul.f32 %v4457_v36, %v4457_v36 }
 0x22a   :  { %v2982_v5 = vsel %vm155_vm1, %v2970_v20, 0.0  ;;  %v1745_v15 = vmul.f32 %v1737_v62, %v1737_v62  ;;  %v1619_v45 = vmul.f32 0.92387956, %v5702_v11  ;;  %v1666_v24 = vmul.f32 %v1658_v53, %v1658_v53 }
 0x22b   :  { %v1475_v39 = vmul.f32 %v1467_v43, %v1467_v43  ;;  %v1563_v55 = vmul.f32 %v1555_v25, %v1555_v25  ;;  %v1611_v8 = vadd.f32 1.0, %v1603_v23  ;;  %4666 = vpow2.f32 %v2578_v42  ;;  %v7023_v42 = vld [vmem:[#allocation24_spill] sm:$0xff] }
 0x22c   :  { %v5731_v34 = vmul.f32 %v7022_v41, %v5718_v56  ;;  %v3062_v33 = vsel %vm155_vm1, %v3052_v51, 0.0  ;;  %v1690_v36 = vmul.f32 -0.9238795, %v5281_v4  ;;  %v1753_v20 = vmul.f32 %v1745_v15, %v1745_v15 }
 0x22d   :  { %2983 = vadd.xlane.f32.xlu0 %v2982_v5  ;;  %v1483_v19 = vmul.f32 %v1475_v39, %v1475_v39  ;;  %v1571_v1 = vmul.f32 %v1563_v55, %v1563_v55  ;;  %v1627_v62 = vadd.f32 %v1619_v45, %v1611_v8  ;;  %v5737_v43 = vmul.f32 %v5689_v22, %v5499_v16 }
 0x22e   :  { %vm1238_vm15 = vcmp.eq.f32.partialorder %v5656_v27, inf  ;;  %v1241_v53 = vand.u32 2147483648, %v5656_v27  ;;  %v1428_v25 = vmul.f32 0.9238795, %v7023_v42  ;;  %v1674_v41 = vmul.f32 %v1666_v24, %v1666_v24 }
 0x22f   :  { %v4665_v23 = vpop.eup %4664  ;;  %v1491_v5 = vmul.f32 %v1483_v19, %v1483_v19  ;;  %v1579_v51 = vmul.f32 %v1571_v1, %v1571_v1  ;;  %v1635_v57 = vmul.f32 0.5, %v1627_v62  ;;  %v1516_v15 = vmul.f32 0.38268346, %v7023_v42 }
 0x230   :  { %v1237_v4 = vmul.f32 %v4665_v23, %v5656_v27  ;;  %v1698_v45 = vadd.f32 1.0, %v1690_v36  ;;  %v1706_v22 = vmul.f32 0.3826835, %v5598_v46  ;;  %v1761_v8 = vmul.f32 %v1753_v20, %v1753_v20  ;;  %v1314_v46 = vpop.permute.xlu1 %1313 }
 0x231   :  { %3063 = vadd.xlane.f32.xlu0 %v3062_v33  ;;  %v1499_v39 = vmul.f32 %v1491_v5, %v1491_v5  ;;  %v1587_v55 = vmul.f32 %v1579_v51, %v1579_v51  ;;  %v1643_v17 = vmax.f32 %v1635_v57, 0.0  ;;  %vm1240_vm2 = vcmp.eq.f32.partialorder %v5656_v27, 0.0 }
 0x232   :  { %v1239_v47 = vsel %vm1238_vm15, %v5656_v27, %v1237_v4  ;;  %v1436_v1 = vadd.f32 1.0, %v1428_v25  ;;  %v1714_v24 = vadd.f32 %v1706_v22, %v1698_v45  ;;  %v5751_v19 = vmul.f32 %v1674_v41, %v1674_v41 }
 0x233   :  { %v5749_v33 = vmul.f32 %v1499_v39, %v1499_v39  ;;  %v5753_v62 = vmul.f32 %v1587_v55, %v1587_v55  ;;  %v5755_v36 = vsel %vm1240_vm2, %v1241_v53, %v1239_v47  ;;  %v1524_v57 = vadd.f32 1.0, %v1516_v15  ;;  %v7024_v15 = vld [vmem:[#allocation22_spill] sm:$0xff] }
 0x234   :  { %v1444_v20 = vmul.f32 0.38268346, %v5755_v36  ;;  %v1532_v23 = vmul.f32 0.9238795, %v5755_v36  ;;  %v1722_v5 = vmul.f32 0.5, %v1714_v24  ;;  %v5763_v51 = vmul.f32 %v1761_v8, %v1761_v8 }
 0x235   :  { %v2594_v27 = vmul.f32 %v5731_v34, %v5749_v33  ;;  %v2677_v25 = vmul.f32 %v5731_v34, %v5753_v62  ;;  %v1651_v41 = vmul.f32 %v1643_v17, %v1643_v17  ;;  %v4667_v4 = vpop.eup %4666  ;;  %v2759_v47 = vmul.f32 %v5660_v29, %v5751_v19 }
 0x236   :  { %v1452_v53 = vadd.f32 %v1444_v20, %v1436_v1  ;;  %v1540_v45 = vadd.f32 %v1532_v23, %v1524_v57  ;;  %v1730_v22 = vmax.f32 %v1722_v5, 0.0  ;;  %v1412_v39 = vmul.f32 %v7024_v15, %v1314_v46 }
 0x237   :  { %v2614_v55 = vsel %vm155_vm1, %v2594_v27, 0.0  ;;  %v2697_v24 = vsel %vm155_vm1, %v2677_v25, 0.0  ;;  %v2841_v16 = vmul.f32 %v5584_v28, %v5763_v51  ;;  %v2971_v17 = vmul.f32 %v5737_v43, %v5542_v38 }
 0x238   :  { %2615 = vadd.xlane.f32.xlu1 %v2614_v55  ;;  %2698 = vadd.xlane.f32.xlu0 %v2697_v24  ;;  %v1460_v8 = vmul.f32 0.5, %v1452_v53  ;;  %v1548_v30 = vmul.f32 0.5, %v1540_v45  ;;  %v1738_v60 = vmul.f32 %v1730_v22, %v1730_v22  ;;  %v3053_v1 = vmul.f32 %v5671_v7, %v5507_v54 }
 0x239   :  { %v1659_v20 = vmul.f32 %v1651_v41, %v1651_v41  ;;  %v1691_v46 = vmul.f32 -0.9238795, %v7019_v21  ;;  %v1707_v57 = vmul.f32 0.3826835, %v5702_v11  ;;  %v2777_v23 = vsel %vm155_vm1, %v2759_v47, 0.0 }
 0x23a   :  { %v1468_v5 = vmax.f32 %v1460_v8, 0.0  ;;  %v1556_v28 = vmax.f32 %v1548_v30, 0.0  ;;  %v1746_v27 = vmul.f32 %v1738_v60, %v1738_v60  ;;  %v2857_v25 = vsel %vm155_vm1, %v2841_v16, 0.0 }
 0x23b   :  { %v1699_v15 = vadd.f32 1.0, %v1691_v46  ;;  %v1604_v53 = vmul.f32 -0.3826834, %v7023_v42  ;;  %v1620_v45 = vmul.f32 0.92387956, %v5755_v36  ;;  %4668 = vpow2.f32 %v5722_v48 }
 0x23c   :  { %v5784_v41 = vmul.f32 %v5027_v32, %v1412_v39  ;;  %2778 = vadd.xlane.f32.xlu1 %v2777_v23  ;;  %2858 = vadd.xlane.f32.xlu0 %v2857_v25  ;;  %v1476_v21 = vmul.f32 %v1468_v5, %v1468_v5  ;;  %v1564_v11 = vmul.f32 %v1556_v28, %v1556_v28  ;;  %v2985_v47 = vsel %vm155_vm1, %v2971_v17, 0.0 }
 0x23d   :  { %v1667_v30 = vmul.f32 %v1659_v20, %v1659_v20  ;;  %v1715_v60 = vadd.f32 %v1707_v57, %v1699_v15  ;;  %v1612_v22 = vadd.f32 1.0, %v1604_v53  ;;  %v3134_v16 = vmul.f32 %v5620_v44, %v5473_v12 }
 0x23e   :  { %v1484_v55 = vmul.f32 %v1476_v21, %v1476_v21  ;;  %v1572_v24 = vmul.f32 %v1564_v11, %v1564_v11  ;;  %v1754_v8 = vmul.f32 %v1746_v27, %v1746_v27  ;;  %v3065_v48 = vsel %vm155_vm1, %v3053_v1, 0.0  ;;  %v7025_v11 = vld [vmem:[#allocation14_spill] sm:$0xff] }
 0x23f   :  { %v3135_v39 = vmul.f32 %v5589_v13, %v5549_v9  ;;  %v1723_v46 = vmul.f32 0.5, %v1715_v60  ;;  %v1628_v23 = vadd.f32 %v1620_v45, %v1612_v22  ;;  %v2941_v5 = vmul.f32 -80.0, %v5725_v59 }
 0x240   :  { %2986 = vadd.xlane.f32.xlu1 %v2985_v47  ;;  %3066 = vadd.xlane.f32.xlu0 %v3065_v48  ;;  %v1492_v17 = vmul.f32 %v1484_v55, %v1484_v55  ;;  %v1580_v20 = vmul.f32 %v1572_v24, %v1572_v24  ;;  %v5794_v57 = vmul.f32 %v4667_v4, %v5784_v41  ;;  %v1692_v27 = vmul.f32 -0.9238795, %v7023_v42 }
 0x241   :  { %v1675_v28 = vmul.f32 %v1667_v30, %v1667_v30  ;;  %v1636_v25 = vmul.f32 0.5, %v1628_v23  ;;  %v1762_v53 = vmul.f32 %v1754_v8, %v1754_v8  ;;  %v1731_v21 = vmax.f32 %v1723_v46, 0.0 }
 0x242   :  { %v1500_v15 = vmul.f32 %v1492_v17, %v1492_v17  ;;  %v1588_v1 = vmul.f32 %v1580_v20, %v1580_v20  ;;  %v4434_v60 = vadd.f32 -0.09, %v7025_v11  ;;  %v3142_v45 = vsel %vm155_vm1, %v3134_v16, 0.0 }
 0x243   :  { %v3145_v59 = vsel %vm155_vm1, %v3135_v39, 0.0  ;;  %v1644_v47 = vmax.f32 %v1636_v25, 0.0  ;;  %v4458_v22 = vadd.f32 -0.33, %v7025_v11  ;;  %v2954_v55 = vmul.f32 1.442695, %v2941_v5 }
 0x244   :  { %3143 = vadd.xlane.f32.xlu1 %v3142_v45  ;;  %v5801_v4 = vmul.f32 %v1500_v15, %v1500_v15  ;;  %3146 = vadd.xlane.f32.xlu0 %v3145_v59  ;;  %v5803_v30 = vmul.f32 %v1588_v1, %v1588_v1  ;;  %v5805_v42 = vmul.f32 %v1675_v28, %v1675_v28  ;;  %v1700_v8 = vadd.f32 1.0, %v1692_v27 }
 0x245   :  { %v1652_v24 = vmul.f32 %v1644_v47, %v1644_v47  ;;  %v1708_v48 = vmul.f32 0.3826835, %v5755_v36  ;;  %v4669_v46 = vpop.eup %4668  ;;  %v5812_v23 = vmul.f32 %v1762_v53, %v1762_v53  ;;  %v1739_v5 = vmul.f32 %v1731_v21, %v1731_v21  ;;  %v7026_v53 = vld [vmem:[#allocation20_spill] sm:$0xff] }
 0x246   :  { %v2595_v16 = vmul.f32 %v5794_v57, %v5801_v4  ;;  %v2678_v39 = vmul.f32 %v5794_v57, %v5803_v30  ;;  %v1787_v17 = vmul.f32 %v4434_v60, %v4434_v60  ;;  %v5815_v20 = vmul.f32 %v4669_v46, %v5515_v52 }
 0x247   :  { %v1660_v28 = vmul.f32 %v1652_v24, %v1652_v24  ;;  %v1716_v25 = vadd.f32 %v1708_v48, %v1700_v8  ;;  %v2760_v36 = vmul.f32 %v5731_v34, %v5805_v42  ;;  %v2842_v1 = vmul.f32 %v5660_v29, %v5812_v23 }
 0x248   :  { %v2617_v27 = vsel %vm155_vm1, %v2595_v16, 0.0  ;;  %v2700_v15 = vsel %vm155_vm1, %v2678_v39, 0.0  ;;  %v2934_v45 = vmul.f32 %v4458_v22, %v4458_v22  ;;  %4670 = vpow2.f32 %v2954_v55 }
 0x249   :  { %v4435_v21 = vadd.f32 -0.09, %v7026_v53  ;;  %2618 = vadd.xlane.f32.xlu1 %v2617_v27  ;;  %2701 = vadd.xlane.f32.xlu0 %v2700_v15  ;;  %v1724_v60 = vmul.f32 0.5, %v1716_v25  ;;  %v1747_v59 = vmul.f32 %v1739_v5, %v1739_v5  ;;  %v1668_v47 = vmul.f32 %v1660_v28, %v1660_v28 }
 0x24a   :  { %v1795_v24 = vmul.f32 -80.0, %v1787_v17  ;;  %v4433_v8 = vadd.f32 -0.09, %v7021_v2  ;;  %v2780_v46 = vsel %vm155_vm1, %v2760_v36, 0.0  ;;  %v2972_v16 = vmul.f32 %v5815_v20, %v5613_v18 }
 0x24b   :  { %v1732_v48 = vmax.f32 %v1724_v60, 0.0  ;;  %v2860_v29 = vsel %vm155_vm1, %v2842_v1, 0.0  ;;  %v3054_v22 = vmul.f32 %v5737_v43, %v5559_v35  ;;  %v2942_v55 = vmul.f32 -80.0, %v2934_v45 }
 0x24c   :  { %v1788_v39 = vmul.f32 %v4435_v21, %v4435_v21  ;;  %v4459_v25 = vadd.f32 -0.33, %v7026_v53  ;;  %v1755_v5 = vmul.f32 %v1747_v59, %v1747_v59  ;;  %v1676_v17 = vmul.f32 %v1668_v47, %v1668_v47 }
 0x24d   :  { %2781 = vadd.xlane.f32.xlu1 %v2780_v46  ;;  %2861 = vadd.xlane.f32.xlu0 %v2860_v29  ;;  %v1740_v28 = vmul.f32 %v1732_v48, %v1732_v48  ;;  %v1809_v27 = vmul.f32 1.442695, %v1795_v24  ;;  %v1786_v15 = vmul.f32 %v4433_v8, %v4433_v8  ;;  %v3136_v36 = vmul.f32 %v5671_v7, %v5551_v6 }
 0x24e   :  { %v2988_v60 = vsel %vm155_vm1, %v2972_v16, 0.0  ;;  %v3068_v1 = vsel %vm155_vm1, %v3054_v22, 0.0  ;;  %v3217_v45 = vmul.f32 %v5620_v44, %v5570_v49  ;;  %v2956_v21 = vmul.f32 1.442695, %v2942_v55 }
 0x24f   :  { %v1796_v32 = vmul.f32 -80.0, %v1788_v39  ;;  %v2935_v35 = vmul.f32 %v4459_v25, %v4459_v25  ;;  %v1763_v59 = vmul.f32 %v1755_v5, %v1755_v5  ;;  %v5838_v47 = vmul.f32 %v1676_v17, %v1676_v17 }
 0x250   :  { %v1748_v24 = vmul.f32 %v1740_v28, %v1740_v28  ;;  %4672 = vpow2.f32 %v1809_v27  ;;  %v4442_v48 = vadd.f32 -0.17, %v7025_v11  ;;  %v1794_v46 = vmul.f32 -80.0, %v1786_v15  ;;  %v7027_v15 = vld [vmem:[#allocation10_spill] sm:$0xff] }
 0x251   :  { %2989 = vadd.xlane.f32.xlu1 %v2988_v60  ;;  %3069 = vadd.xlane.f32.xlu0 %v3068_v1  ;;  %v3148_v16 = vsel %vm155_vm1, %v3136_v36, 0.0  ;;  %v3218_v29 = vmul.f32 %v5589_v13, %v5562_v10  ;;  %v3225_v44 = vsel %vm155_vm1, %v3217_v45, 0.0  ;;  %v2761_v22 = vmul.f32 %v5794_v57, %v5838_v47 }
 0x252   :  { %v4671_v8 = vpop.eup %4670  ;;  %4674 = vpow2.f32 %v2956_v21  ;;  %v4441_v39 = vadd.f32 -0.17, %v7021_v2  ;;  %v1811_v25 = vmul.f32 1.442695, %v1796_v32  ;;  %v2943_v5 = vmul.f32 -80.0, %v2935_v35 }
 0x253   :  { %v5848_v55 = vmul.f32 %v4671_v8, %v5632_v14  ;;  %v4443_v11 = vadd.f32 -0.17, %v7026_v53  ;;  %v5852_v17 = vmul.f32 %v1763_v59, %v1763_v59  ;;  %v1756_v13 = vmul.f32 %v1748_v24, %v1748_v24  ;;  %v7028_v59 = vld [vmem:[#allocation6_spill] sm:$0xff] }
 0x254   :  { %v2174_v28 = vmul.f32 %v4442_v48, %v4442_v48  ;;  %v1807_v27 = vmul.f32 1.442695, %v1794_v46  ;;  %v255_v36 = vxor.u32 2147483648, %v7027_v15  ;;  %v3228_v60 = vsel %vm155_vm1, %v3218_v29, 0.0 }
 0x255   :  { %3149 = vadd.xlane.f32.xlu1 %v3148_v16  ;;  %3226 = vadd.xlane.f32.xlu0 %v3225_v44  ;;  %v2843_v1 = vmul.f32 %v5731_v34, %v5852_v17  ;;  %v2783_v2 = vsel %vm155_vm1, %v2761_v22, 0.0  ;;  %v2973_v32 = vmul.f32 %v5848_v55, %v5685_v58  ;;  %v2173_v35 = vmul.f32 %v4441_v39, %v4441_v39 }
 0x256   :  { %4676 = vpow2.f32 %v1811_v25  ;;  %v2958_v53 = vmul.f32 1.442695, %v2943_v5  ;;  %v2175_v45 = vmul.f32 %v4443_v11, %v4443_v11  ;;  %v1764_v21 = vmul.f32 %v1756_v13, %v1756_v13 }
 0x257   :  { %vm173_vm3 = vcmp.lt.s32.totalorder %v7028_v59, 0  ;;  %v2182_v24 = vmul.f32 -80.0, %v2174_v28  ;;  %4678 = vpow2.f32 %v1807_v27  ;;  %v3055_v8 = vmul.f32 %v5815_v20, %v5596_v31  ;;  %v7032_v27 = vld [vmem:[#allocation13_spill] sm:$0xff] }
 0x258   :  { %v256_v34 = vsel %vm173_vm3, %v255_v36, %v7027_v15  ;;  %v2863_v48 = vsel %vm155_vm1, %v2843_v1, 0.0  ;;  %v2991_v46 = vsel %vm155_vm1, %v2973_v32, 0.0  ;;  %v3137_v16 = vmul.f32 %v5737_v43, %v5634_v61 }
 0x259   :  { %3229 = vadd.xlane.f32.xlu1 %v3228_v60  ;;  %2784 = vadd.xlane.f32.xlu0 %v2783_v2  ;;  %v2181_v44 = vmul.f32 -80.0, %v2173_v35  ;;  %4680 = vpow2.f32 %v2958_v53  ;;  %v7029_v22 = vand.u32 2147483647, %v7028_v59  ;;  %v2183_v25 = vmul.f32 -80.0, %v2175_v45  ;;  %v7034_v45 = vld [vmem:[#allocation15_spill] sm:$0xff] }
 0x25a   :  { %v4673_v29 = vpop.eup %4672  ;;  %v5877_v5 = vmul.f32 %v1764_v21, %v1764_v21  ;;  %v4428_v15 = vadd.f32 -0.09, %v7032_v27  ;;  %v2196_v36 = vmul.f32 1.442695, %v2182_v24  ;;  %v3071_v60 = vsel %vm155_vm1, %v3055_v8, 0.0  ;;  %v7035_v8 = vld [vmem:[#allocation8_spill] sm:$0xff] }
 0x25b   :  { %vm5873_vm4 = vcmp.le.f32.partialorder %v7029_v22, 0.7853982  ;;  %v5880_v11 = vmul.f32 %v4673_v29, %v5718_v56  ;;  %v3219_v1 = vmul.f32 %v5671_v7, %v5600_v37  ;;  %v3151_v2 = vsel %vm155_vm1, %v3137_v16, 0.0  ;;  %v7036_v7 = vld [vmem:[#allocation11_spill] sm:$0xff] }
 0x25c   :  { %v259_v13 = vsel %vm5873_vm4, %v7028_v59, %v256_v34  ;;  %v4675_v28 = vpop.eup %4674  ;;  %v2844_v35 = vmul.f32 %v5794_v57, %v5877_v5  ;;  %v4429_v21 = vadd.f32 -0.09, %v7034_v45  ;;  %v2194_v24 = vmul.f32 1.442695, %v2181_v44 }
 0x25d   :  { %2864 = vadd.xlane.f32.xlu1 %v2863_v48  ;;  %2992 = vadd.xlane.f32.xlu0 %v2991_v46  ;;  %v5891_v32 = vmul.f32 %v4675_v28, %v5718_v56  ;;  %v5897_v53 = vmul.f32 %v5880_v11, %v5749_v33  ;;  %v257_v34 = vsub.s32 4, %v7035_v8  ;;  %4682 = vcosq.f32 %v259_v13 }
 0x25e   :  { %v4430_v48 = vadd.f32 -0.09, %v7036_v7  ;;  %v2198_v46 = vmul.f32 1.442695, %v2183_v25  ;;  %4684 = vsinq.f32 %v259_v13  ;;  %v1781_v29 = vmul.f32 %v4428_v15, %v4428_v15 }
 0x25f   :  { %7033 = vst [vmem:[#allocation21_spill] sm:$0xff] %v5897_v53  ;;  %4686 = vpow2.f32 %v2196_v36  ;;  %v3231_v57 = vsel %vm155_vm1, %v3219_v1, 0.0  ;;  %v3056_v22 = vmul.f32 %v5848_v55, %v5664_v50  ;;  %v2974_v44 = vmul.f32 %v5891_v32, %v5749_v33  ;;  %v7038_v36 = vld [vmem:[#allocation16_spill] sm:$0xff] }
 0x260   :  { %v4677_v16 = vpop.eup %4676  ;;  %v2866_v28 = vsel %vm155_vm1, %v2844_v35, 0.0  ;;  %4688 = vpow2.f32 %v2194_v24  ;;  %v258_v15 = vsel %vm173_vm3, %v257_v34, %v7035_v8  ;;  %v4431_v1 = vadd.f32 -0.09, %v7038_v36 }
 0x261   :  { %3072 = vadd.xlane.f32.xlu1 %v3071_v60  ;;  %3152 = vadd.xlane.f32.xlu0 %v3151_v2  ;;  %v5910_v60 = vmul.f32 %v5880_v11, %v5753_v62  ;;  %v1820_v25 = vmul.f32 %v4677_v16, %v5784_v41  ;;  %v4679_v13 = vpop.eup %4678  ;;  %v1782_v2 = vmul.f32 %v4429_v21, %v4429_v21  ;;  %4690 = vpow2.f32 %v2198_v46 }
 0x262   :  { %v5918_v35 = vmul.f32 %v4679_v13, %v5632_v14  ;;  %v1783_v16 = vmul.f32 %v4430_v48, %v4430_v48  ;;  %v1789_v50 = vmul.f32 -80.0, %v1781_v29  ;;  %v3138_v21 = vmul.f32 %v5815_v20, %v5698_v63 }
 0x263   :  { %7037 = vst [vmem:[#allocation19_spill] sm:$0xff] %v5910_v60  ;;  %v5921_v53 = vmul.f32 %v1820_v25, %v5801_v4  ;;  %v4681_v60 = vpop.eup %4680  ;;  %v3074_v24 = vsel %vm155_vm1, %v3056_v22, 0.0  ;;  %v3220_v34 = vmul.f32 %v5737_v43, %v5676_v40  ;;  %v5934_v46 = vmul.f32 %v5880_v11, %v5805_v42 }
 0x264   :  { %v5928_v8 = vmul.f32 %v4681_v60, %v5784_v41  ;;  %v5937_v48 = vmul.f32 %v1820_v25, %v5803_v30  ;;  %v1784_v29 = vmul.f32 %v4431_v1, %v4431_v1  ;;  %v5941_v22 = vmul.f32 %v5918_v35, %v5812_v23 }
 0x265   :  { %3232 = vadd.xlane.f32.xlu1 %v3231_v57  ;;  %2867 = vadd.xlane.f32.xlu0 %v2866_v28  ;;  %7039 = vst [vmem:[#allocation17_spill] sm:$0xff] %v5921_v53  ;;  %v2994_v57 = vsel %vm155_vm1, %v2974_v44, 0.0  ;;  %7040 = vst [vmem:[#allocation18_spill] sm:$0xff] %v5934_v46  ;;  %v1790_v28 = vmul.f32 -80.0, %v1782_v2  ;;  %v1791_v60 = vmul.f32 -80.0, %v1783_v16  ;;  %v3154_v43 = vsel %vm155_vm1, %v3138_v21, 0.0 }
 0x266   :  { %7041 = vst [vmem:[#allocation25_spill] sm:$0xff] %v5937_v48  ;;  %7042 = vst [vmem:[#allocation24_spill] sm:$0xff] %v5941_v22  ;;  %v1797_v13 = vmul.f32 1.442695, %v1789_v50  ;;  %v260_v59 = vsel %vm5873_vm4, 0, %v258_v15  ;;  %v3057_v1 = vmul.f32 %v5891_v32, %v5753_v62  ;;  %v5955_v22 = vmul.f32 %v5880_v11, %v5852_v17  ;;  %v7045_v15 = vld [vmem:[#allocation12_spill] sm:$0xff] }
 0x267   :  { %v5943_v44 = vpop.eup %4682  ;;  %v1799_v50 = vmul.f32 1.442695, %v1790_v28  ;;  %v5958_v39 = vmul.f32 %v1820_v25, %v5838_v47  ;;  %v4432_v21 = vadd.f32 -0.09, %v7045_v15  ;;  %v1792_v46 = vmul.f32 -80.0, %v1784_v29 }
 0x268   :  { %v4685_v2 = vpop.eup %4684  ;;  %7043 = vst [vmem:[#allocation22_spill] sm:$0xff] %v5955_v22  ;;  %v264_v48 = vand.u32 3, %v260_v59  ;;  %4692 = vpow2.f32 %v1797_v13  ;;  %v3139_v40 = vmul.f32 %v5848_v55, %v5751_v19  ;;  %v3058_v13 = vmul.f32 %v5928_v8, %v5803_v30 }
 0x269   :  { %2995 = vadd.xlane.f32.xlu1 %v2994_v57  ;;  %3075 = vadd.xlane.f32.xlu0 %v3074_v24  ;;  %v2975_v24 = vmul.f32 %v5928_v8, %v5801_v4  ;;  %v3234_v57 = vsel %vm155_vm1, %v3220_v34, 0.0  ;;  %v4687_v16 = vpop.eup %4686  ;;  %7044 = vst [vmem:[#allocation14_spill] sm:$0xff] %v5958_v39  ;;  %v1801_v34 = vmul.f32 1.442695, %v1791_v60  ;;  %v5969_v39 = vmul.f32 %v1820_v25, %v5877_v5 }
 0x26a   :  { %v4689_v53 = vpop.eup %4688  ;;  %v2206_v11 = vmul.f32 %v4687_v16, %v5718_v56  ;;  %4694 = vpow2.f32 %v1799_v50  ;;  %v1803_v60 = vmul.f32 1.442695, %v1792_v46  ;;  %vm265_vm5 = vcmp.lt.s32.totalorder %v264_v48, 2 }
 0x26b   :  { %v4691_v22 = vpop.eup %4690  ;;  %v2997_v28 = vsel %vm155_vm1, %v2975_v24, 0.0  ;;  %v5972_v59 = vmul.f32 %v4689_v53, %v5632_v14  ;;  %v3140_v25 = vmul.f32 %v5891_v32, %v5805_v42  ;;  %v267_v14 = vxor.u32 2147483648, %v4685_v2 }
 0x26c   :  { %v5975_v29 = vmul.f32 %v2206_v11, %v5749_v33  ;;  %v2207_v56 = vmul.f32 %v4691_v22, %v5784_v41  ;;  %v5991_v41 = vmul.f32 %v2206_v11, %v5753_v62  ;;  %v270_v46 = vxor.u32 2147483648, %v5943_v44 }
 0x26d   :  { %3155 = vadd.xlane.f32.xlu1 %v3154_v43  ;;  %3235 = vadd.xlane.f32.xlu0 %v3234_v57  ;;  %v3077_v43 = vsel %vm155_vm1, %v3057_v1, 0.0  ;;  %v3221_v57 = vmul.f32 %v5815_v20, %v5763_v51  ;;  %v3157_v20 = vsel %vm155_vm1, %v3139_v40, 0.0  ;;  %4696 = vpow2.f32 %v1801_v34 }
 0x26e   :  { %v5984_v24 = vmul.f32 %v2207_v56, %v5801_v4  ;;  %v5988_v33 = vmul.f32 %v2207_v56, %v5803_v30  ;;  %v1785_v22 = vmul.f32 %v4432_v21, %v4432_v21  ;;  %v5996_v40 = vmul.f32 %v5972_v59, %v5812_v23 }
 0x26f   :  { %v3237_v53 = vsel %vm155_vm1, %v3221_v57, 0.0  ;;  %vm266_vm6 = vcmp.eq.s32.totalorder %v264_v48, 0  ;;  %4698 = vpow2.f32 %v1803_v60  ;;  %v3080_v4 = vsel %vm155_vm1, %v3058_v13, 0.0 }
 0x270   :  { %v3222_v30 = vmul.f32 %v5848_v55, %v5812_v23  ;;  %v6002_v62 = vmul.f32 %v2206_v11, %v5852_v17  ;;  %v3160_v1 = vsel %vm155_vm1, %v3140_v25, 0.0  ;;  %v6006_v16 = vmul.f32 %v2206_v11, %v5805_v42 }
 0x271   :  { %2998 = vadd.xlane.f32.xlu1 %v2997_v28  ;;  %3078 = vadd.xlane.f32.xlu0 %v3077_v43  ;;  %v6009_v50 = vmul.f32 %v2207_v56, %v5838_v47  ;;  %vm269_vm7 = vcmp.eq.s32.totalorder %v264_v48, 2  ;;  %v3141_v21 = vmul.f32 %v5928_v8, %v5838_v47  ;;  %v6014_v34 = vmul.f32 %v2207_v56, %v5877_v5 }
 0x272   :  { %7046 = vst [vmem:[#allocation20_spill] sm:$0xff] %v6002_v62  ;;  %7047 = vst [vmem:[#allocation10_spill] sm:$0xff] %v6006_v16  ;;  %v268_v23 = vsel %vm266_vm6, %v5943_v44, %v267_v14  ;;  %v271_v55 = vsel %vm269_vm7, %v270_v46, %v4685_v2  ;;  %v4693_v28 = vpop.eup %4692  ;;  %v1793_v43 = vmul.f32 -80.0, %v1785_v22  ;;  %v3240_v47 = vsel %vm155_vm1, %v3222_v30, 0.0 }
 0x273   :  { %7048 = vst [vmem:[#allocation13_spill] sm:$0xff] %v6009_v50  ;;  %7049 = vst [vmem:[#allocation15_spill] sm:$0xff] %v6014_v34  ;;  %v6020_v42 = vsel %vm265_vm5, %v268_v23, %v271_v55  ;;  %v3223_v56 = vmul.f32 %v5891_v32, %v5852_v17  ;;  %v3163_v44 = vsel %vm155_vm1, %v3141_v21, 0.0  ;;  %v6029_v2 = vmul.f32 %v4693_v28, %v5440_v26  ;;  %v7053_v21 = vld [vmem:[#allocation32_spill] sm:$0xff]  ;;  %v7054_v28 = vld [vmem:[#allocation31_spill] sm:$0xff] }
 0x274   :  { %v4695_v60 = vpop.eup %4694  ;;  %v3224_v13 = vmul.f32 %v5928_v8, %v5877_v5  ;;  %v7051_v5 = vld [vmem:[#allocation29_spill] sm:$0xff]  ;;  %vm1895_vm9 = vcmask 1042434   ;;  %vm1897_vm10 = vcmask 1043459   ;;  %vm1899_vm11 = vcmask 1044484  }
 0x275   :  { %3158 = vadd.xlane.f32.xlu1 %v3157_v20  ;;  %3238 = vadd.xlane.f32.xlu0 %v3237_v53  ;;  %v6034_v48 = vmul.f32 %v4695_v60, %v5437_v0  ;;  %v1805_v20 = vmul.f32 1.442695, %v1793_v43  ;;  %v3243_v53 = vsel %vm155_vm1, %v3223_v56, 0.0  ;;  %v1821_v46 = vmul.f32 %v6029_v2, %v5453_v3 }
 0x276   :  { %v3246_v22 = vsel %vm155_vm1, %v3224_v13, 0.0  ;;  %v4437_v13 = vadd.f32 -0.17, %v7034_v45  ;;  %vm1901_vm12 = vcmask 1045509   ;;  %vm1903_vm14 = vcmask 1046534  }
 0x277   :  { %v4697_v14 = vpop.eup %4696  ;;  %4700 = vpow2.f32 %v1805_v20  ;;  %v1829_v55 = vsel %vm155_vm1, %v1821_v46, 0.0  ;;  %vm1905_vm15 = vcmask 1047559   ;;  %vm3301_vm3 = vcmask 7168  }
 0x278   :  { %v6045_v8 = vmul.f32 %v4697_v14, %v7051_v5  ;;  %vm3303_vm4 = vcmask 15360   ;;  %vm3305_vm5 = vcmask 23552   ;;  %vm3307_vm6 = vcmask 31744  }
 0x279   :  { %3081 = vadd.xlane.f32.xlu1 %v3080_v4  ;;  %3161 = vadd.xlane.f32.xlu0 %v3160_v1  ;;  %v4699_v32 = vpop.eup %4698  ;;  %v7052_v4 = vld [vmem:[#allocation27_spill] sm:$0xff]  ;;  %v4436_v1 = vadd.f32 -0.17, %v7032_v27  ;;  %vm3309_vm7 = vcmask 39936  }
 0x27a   :  { %v1822_v30 = vmul.f32 %v6034_v48, %v7052_v4  ;;  %v6051_v23 = vmul.f32 %v4699_v32, %v7053_v21  ;;  %v1823_v43 = vmul.f32 %v6045_v8, %v7054_v28 }
 0x27b   :  { %v2168_v20 = vmul.f32 %v4436_v1, %v4436_v1  ;;  %v1913_v1 = vmul.f32 %v6045_v8, %v5507_v54 }
 0x27c   :  { %v1832_v60 = vsel %vm155_vm1, %v1822_v30, 0.0  ;;  %v1835_v14 = vsel %vm155_vm1, %v1823_v43, 0.0  ;;  %v2169_v30 = vmul.f32 %v4437_v13, %v4437_v13 }
 0x27d   :  { %v6017_v57 = vpop.xlane.xlu1 %2600  ;;  %v6022_v11 = vpop.xlane.xlu0 %2597  ;;  %3241 = vadd.xlane.f32.xlu1 %v3240_v47  ;;  %3164 = vadd.xlane.f32.xlu0 %v3163_v44  ;;  %v7055_v47 = vld [vmem:[#allocation30_spill] sm:$0xff]  ;;  %v1925_v50 = vsel %vm155_vm1, %v1913_v1, 0.0 }
 0x27e   :  { %v1911_v56 = vmul.f32 %v6029_v2, %v7055_v47 }
 0x280   :  { %v1919_v46 = vsel %vm155_vm1, %v1911_v56, 0.0  ;;  %v1994_v56 = vmul.f32 %v6029_v2, %v5473_v12 }
 0x281   :  { %v6036_v25 = vpop.xlane.xlu0 %2680  ;;  %v6039_v17 = vpop.xlane.xlu1 %2603  ;;  %3244 = vadd.xlane.f32.xlu1 %v3243_v53  ;;  %3247 = vadd.xlane.f32.xlu0 %v3246_v22  ;;  %v7056_v53 = vld [vmem:[#allocation28_spill] sm:$0xff]  ;;  %v1824_v22 = vmul.f32 %v6051_v23, %v5542_v38 }
 0x282   :  { %7050 = vst [vmem:[#allocation8_spill] sm:$0xff] %v6036_v25  ;;  %v1912_v32 = vmul.f32 %v6034_v48, %v7056_v53  ;;  %v4701_v45 = vpop.eup %4700 }
 0x283   :  { %v1838_v34 = vsel %vm155_vm1, %v1824_v22, 0.0  ;;  %v6081_v13 = vmul.f32 %v4701_v45, %v5515_v52 }
 0x284   :  { %v1922_v43 = vsel %vm155_vm1, %v1912_v32, 0.0  ;;  %v2002_v32 = vsel %vm155_vm1, %v1994_v56, 0.0  ;;  %v1996_v56 = vmul.f32 %v6045_v8, %v5551_v6 }
 0x285   :  { %v6059_v44 = vpop.xlane.xlu0 %2683  ;;  %1830 = vadd.xlane.f32.xlu1 %v1829_v55  ;;  %1833 = vadd.xlane.f32.xlu0 %v1832_v60  ;;  %v6062_v27 = vpop.xlane.xlu1 %2763  ;;  %v2176_v55 = vmul.f32 -80.0, %v2168_v20  ;;  %v4438_v20 = vadd.f32 -0.17, %v7036_v7  ;;  %v1825_v22 = vmul.f32 %v6081_v13, %v5613_v18 }
 0x289   :  { %1836 = vadd.xlane.f32.xlu1 %v1835_v14  ;;  %1920 = vadd.xlane.f32.xlu0 %v1919_v46  ;;  %v6070_v25 = vpop.xlane.xlu0 %2686  ;;  %v2177_v14 = vmul.f32 -80.0, %v2169_v30  ;;  %v2184_v46 = vmul.f32 1.442695, %v2176_v55  ;;  %v7058_v55 = vld [vmem:[#allocation33_spill] sm:$0xff] }
 0x28a   :  { %7057 = vst [vmem:[#allocation11_spill] sm:$0xff] %v6070_v25  ;;  %v6074_v60 = vpop.xlane.xlu1 %2606  ;;  %v1995_v25 = vmul.f32 %v6034_v48, %v5549_v9  ;;  %v1914_v1 = vmul.f32 %v6051_v23, %v7058_v55 }
 0x28b   :  { %v2186_v45 = vmul.f32 1.442695, %v2177_v14  ;;  %4702 = vpow2.f32 %v2184_v46  ;;  %v2008_v46 = vsel %vm155_vm1, %v1996_v56, 0.0  ;;  %v4439_v56 = vadd.f32 -0.17, %v7038_v36 }
 0x28c   :  { %v2005_v7 = vsel %vm155_vm1, %v1995_v25, 0.0  ;;  %v2077_v25 = vmul.f32 %v6029_v2, %v5570_v49  ;;  %v1915_v2 = vmul.f32 %v6081_v13, %v5596_v31 }
 0x28d   :  { %1923 = vadd.xlane.f32.xlu1 %v1922_v43  ;;  %1839 = vadd.xlane.f32.xlu0 %v1838_v34  ;;  %v2170_v34 = vmul.f32 %v4438_v20, %v4438_v20  ;;  %v1841_v43 = vsel %vm155_vm1, %v1825_v22, 0.0  ;;  %4704 = vpow2.f32 %v2186_v45  ;;  %v1928_v20 = vsel %vm155_vm1, %v1914_v1, 0.0 }
 0x290   :  { %v6092_v30 = vpop.xlane.xlu1 %2769 }
 0x291   :  { %v6090_v16 = vpop.xlane.xlu0 %2766  ;;  %1926 = vadd.xlane.f32.xlu1 %v1925_v50  ;;  %2003 = vadd.xlane.f32.xlu0 %v2002_v32  ;;  %v2178_v50 = vmul.f32 -80.0, %v2170_v34  ;;  %v2078_v32 = vmul.f32 %v6034_v48, %v5562_v10  ;;  %v1826_v34 = vmul.f32 %v5918_v35, %v5685_v58 }
 0x293   :  { %v2188_v45 = vmul.f32 1.442695, %v2178_v50  ;;  %v2088_v1 = vsel %vm155_vm1, %v2078_v32, 0.0  ;;  %v1997_v50 = vmul.f32 %v6051_v23, %v5634_v61  ;;  %v1931_v32 = vsel %vm155_vm1, %v1915_v2, 0.0 }
 0x294   :  { %v6102_v14 = vpop.xlane.xlu1 %2849 }
 0x295   :  { %v6100_v62 = vpop.xlane.xlu0 %2689  ;;  %2006 = vadd.xlane.f32.xlu1 %v2005_v7  ;;  %1842 = vadd.xlane.f32.xlu0 %v1841_v43  ;;  %7059 = vst [vmem:[#allocation16_spill] sm:$0xff] %v6102_v14  ;;  %v2085_v7 = vsel %vm155_vm1, %v2077_v25, 0.0  ;;  %v4703_v43 = vpop.eup %4702  ;;  %4706 = vpow2.f32 %v2188_v45  ;;  %v2079_v14 = vmul.f32 %v6045_v8, %v5600_v37 }
 0x296   :  { %v6124_v25 = vmul.f32 %v4703_v43, %v5440_v26  ;;  %v7063_v43 = vld [vmem:[#allocation4_spill] sm:$0xff] }
 0x298   :  { %v2208_v26 = vmul.f32 %v6124_v25, %v5453_v3 }
 0x299   :  { %1929 = vadd.xlane.f32.xlu1 %v1928_v20  ;;  %2009 = vadd.xlane.f32.xlu0 %v2008_v46  ;;  %v6110_v22 = vpop.xlane.xlu0 %2846  ;;  %v4705_v20 = vpop.eup %4704  ;;  %v1844_v46 = vsel %vm155_vm1, %v1826_v34, 0.0  ;;  %v2091_v34 = vsel %vm155_vm1, %v2079_v14, 0.0 }
 0x29a   :  { %7060 = vst [vmem:[#allocation12_spill] sm:$0xff] %v6110_v22  ;;  %v6131_v36 = vmul.f32 %v4705_v20, %v5437_v0  ;;  %v4440_v22 = vadd.f32 -0.17, %v7045_v15 }
 0x29c   :  { %v2209_v2 = vmul.f32 %v6131_v36, %v7052_v4 }
 0x29d   :  { %2086 = vadd.xlane.f32.xlu1 %v2085_v7  ;;  %2089 = vadd.xlane.f32.xlu0 %v2088_v1  ;;  %v6119_v48 = vpop.xlane.xlu1 %2692  ;;  %v2171_v1 = vmul.f32 %v4439_v56, %v4439_v56  ;;  %v7064_v56 = vld [vmem:[#allocation5_spill] sm:$0xff] }
 0x29e   :  { %7061 = vst [vmem:[#allocation29_spill] sm:$0xff] %v6119_v48  ;;  %v2011_v48 = vsel %vm155_vm1, %v1997_v50, 0.0  ;;  %v6145_v20 = vsub.s32 %v7064_v56, %v7063_v43  ;;  %v2219_v50 = vsel %vm155_vm1, %v2209_v2, 0.0  ;;  %v7067_v56 = vld [vmem:[#allocation21_spill] sm:$0xff] }
 0x29f   :  { %v2179_v8 = vmul.f32 -80.0, %v2171_v1  ;;  %v4707_v14 = vpop.eup %4706 }
 0x2a0   :  { %v2610_v7 = vpop.xlane.xlu0 %2609  ;;  %v6156_v1 = vmul.f32 %v4707_v14, %v7051_v5  ;;  %v2635_v2 = vrot.slane %v6017_v57, %v6145_v20  ;;  %v2639_v5 = vrot.slane %v6039_v17, %v6145_v20  ;;  %v2643_v57 = vrot.slane %v6074_v60, %v6145_v20 }
 0x2a1   :  { %1845 = vadd.xlane.f32.xlu1 %v1844_v46  ;;  %1932 = vadd.xlane.f32.xlu0 %v1931_v32  ;;  %v6133_v45 = vpop.xlane.xlu1 %2852  ;;  %v2216_v46 = vsel %vm155_vm1, %v2208_v26, 0.0  ;;  %v7065_v32 = vld [vmem:[#allocation23_spill] sm:$0xff]  ;;  %v2291_v60 = vmul.f32 %v6124_v25, %v7055_v47 }
 0x2a2   :  { %7062 = vst [vmem:[#allocation27_spill] sm:$0xff] %v6133_v45  ;;  %v1916_v3 = vmul.f32 %v5918_v35, %v7065_v32  ;;  %v2190_v45 = vmul.f32 1.442695, %v2179_v8  ;;  %v2631_v8 = vrot.slane %v6022_v11, %v6145_v20  ;;  %v2801_v11 = vrot.slane %v6090_v16, %v6145_v20 }
 0x2a3   :  { %v2210_v17 = vmul.f32 %v6156_v1, %v7054_v28  ;;  %v2797_v16 = vrot.slane %v6062_v27, %v6145_v20  ;;  %v2805_v28 = vrot.slane %v6092_v30, %v6145_v20 }
 0x2a4   :  { %4708 = vpow2.f32 %v2190_v45  ;;  %v2660_v45 = vsel %vm1893_vm8, %v2635_v2, %v2631_v8 }
 0x2a5   :  { %2012 = vadd.xlane.f32.xlu1 %v2011_v48  ;;  %2092 = vadd.xlane.f32.xlu0 %v2091_v34  ;;  %v1998_v48 = vmul.f32 %v6081_v13, %v5698_v63  ;;  %v7066_v34 = vld [vmem:[#allocation26_spill] sm:$0xff]  ;;  %v2222_v8 = vsel %vm155_vm1, %v2210_v17, 0.0 }
 0x2a6   :  { %v6151_v4 = vpop.xlane.xlu1 %2980  ;;  %v2080_v26 = vmul.f32 %v6051_v23, %v7066_v34 }
 0x2a7   :  { %v6141_v0 = vpop.xlane.xlu0 %2772  ;;  %v2014_v23 = vsel %vm155_vm1, %v1998_v48, 0.0 }
 0x2a8   :  { %v2094_v14 = vsel %vm155_vm1, %v2080_v26, 0.0  ;;  %v2292_v26 = vmul.f32 %v6131_v36, %v7056_v53  ;;  %v2809_v27 = vrot.slane %v6141_v0, %v6145_v20 }
 0x2a9   :  { %2217 = vadd.xlane.f32.xlu1 %v2216_v46  ;;  %2220 = vadd.xlane.f32.xlu0 %v2219_v50  ;;  %v1847_v46 = vsel %vm155_vm1, %v7067_v56, 0.0  ;;  %v1934_v50 = vsel %vm155_vm1, %v1916_v3, 0.0  ;;  %v2647_v3 = vrot.slane %v2610_v7, %v6145_v20  ;;  %v2172_v56 = vmul.f32 %v4440_v22, %v4440_v22 }
 0x2aa   :  { %v2826_v22 = vsel %vm1893_vm8, %v2801_v11, %v2797_v16 }
 0x2ab   :  { %v6160_v43 = vpop.xlane.xlu0 %2977  ;;  %v2180_v30 = vmul.f32 -80.0, %v2172_v56  ;;  %v2827_v11 = vsel %vm1895_vm9, %v2805_v28, %v2826_v22 }
 0x2ac   :  { %v2828_v0 = vsel %vm1897_vm10, %v2809_v27, %v2827_v11  ;;  %v3011_v17 = vrot.slane %v6160_v43, %v6145_v20 }
 0x2ad   :  { %1848 = vadd.xlane.f32.xlu1 %v1847_v46  ;;  %1935 = vadd.xlane.f32.xlu0 %v1934_v50  ;;  %v6178_v15 = vpop.xlane.xlu1 %2695  ;;  %v2661_v46 = vsel %vm1895_vm9, %v2639_v5, %v2660_v45  ;;  %v2299_v50 = vsel %vm155_vm1, %v2291_v60, 0.0  ;;  %v2302_v45 = vsel %vm155_vm1, %v2292_v26, 0.0 }
 0x2ae   :  { %v2662_v48 = vsel %vm1897_vm10, %v2643_v57, %v2661_v46  ;;  %v1999_v46 = vmul.f32 %v5918_v35, %v5751_v19 }
 0x2af   :  { %v2663_v2 = vsel %vm1899_vm11, %v2647_v3, %v2662_v48  ;;  %v4709_v3 = vpop.eup %4708  ;;  %v3015_v48 = vrot.slane %v6151_v4, %v6145_v20 }
 0x2b0   :  { %v6220_v16 = vmul.f32 %v4709_v3, %v7053_v21  ;;  %v2017_v21 = vsel %vm155_vm1, %v1999_v46, 0.0  ;;  %v7070_v46 = vld [vmem:[#allocation25_spill] sm:$0xff] }
 0x2b1   :  { %2015 = vadd.xlane.f32.xlu1 %v2014_v23  ;;  %2095 = vadd.xlane.f32.xlu0 %v2094_v14  ;;  %v6204_v53 = vpop.xlane.xlu1 %2855  ;;  %v7068_v14 = vld [vmem:[#allocation17_spill] sm:$0xff]  ;;  %v3040_v26 = vsel %vm1893_vm8, %v3015_v48, %v3011_v17 }
 0x2b2   :  { %v2613_v7 = vpop.xlane.xlu0 %2612  ;;  %v1850_v60 = vsel %vm155_vm1, %v7068_v14, 0.0  ;;  %v2211_v4 = vmul.f32 %v6220_v16, %v5542_v38  ;;  %v2374_v38 = vmul.f32 %v6124_v25, %v5473_v12 }
 0x2b3   :  { %v2651_v47 = vrot.slane %v2613_v7, %v6145_v20  ;;  %v2192_v7 = vmul.f32 1.442695, %v2180_v30  ;;  %v2293_v30 = vmul.f32 %v6156_v1, %v5507_v54 }
 0x2b4   :  { %v2225_v11 = vsel %vm155_vm1, %v2211_v4, 0.0  ;;  %v2376_v4 = vmul.f32 %v6156_v1, %v5551_v6 }
 0x2b5   :  { %v6202_v5 = vsel %vm1901_vm12, %v2651_v47, %v2663_v2  ;;  %2223 = vadd.xlane.f32.xlu1 %v2222_v8  ;;  %2300 = vadd.xlane.f32.xlu0 %v2299_v50  ;;  %v2081_v47 = vmul.f32 %v6081_v13, %v5763_v51  ;;  %v3061_v22 = vpop.xlane.xlu1 %3060  ;;  %v7069_v2 = vld [vmem:[#allocation19_spill] sm:$0xff]  ;;  %4710 = vpow2.f32 %v2192_v7  ;;  %v2305_v3 = vsel %vm155_vm1, %v2293_v30, 0.0 }
 0x2b6   :  { %v2776_v57 = vpop.xlane.xlu0 %2775  ;;  %v1937_v35 = vsel %vm155_vm1, %v7069_v2, 0.0  ;;  %v3094_v50 = vrot.slane %v3061_v22, %v6145_v20  ;;  %v1940_v7 = vsel %vm155_vm1, %v7070_v46, 0.0  ;;  %v2458_v30 = vmul.f32 %v6131_v36, %v5562_v10 }
 0x2b7   :  { %v2813_v23 = vrot.slane %v2776_v57, %v6145_v20  ;;  %v2097_v57 = vsel %vm155_vm1, %v2081_v47, 0.0  ;;  %v7072_v47 = vld [vmem:[#allocation24_spill] sm:$0xff]  ;;  %v2377_v46 = vmul.f32 %v6220_v16, %v5634_v61 }
 0x2b8   :  { %v2100_v22 = vsel %vm155_vm1, %v7072_v47, 0.0 }
 0x2b9   :  { %v6215_v56 = vsel %vm1899_vm11, %v2813_v23, %v2828_v0  ;;  %2303 = vadd.xlane.f32.xlu1 %v2302_v45  ;;  %1851 = vadd.xlane.f32.xlu0 %v1850_v60  ;;  %v2375_v0 = vmul.f32 %v6131_v36, %v5549_v9  ;;  %v2382_v45 = vsel %vm155_vm1, %v2374_v38, 0.0  ;;  %v7074_v36 = vld [vmem:[#allocation22_spill] sm:$0xff] }
 0x2ba   :  { %v2984_v28 = vpop.xlane.xlu0 %2983 }
 0x2bb   :  { %v3019_v43 = vrot.slane %v2984_v28, %v6145_v20  ;;  %v2385_v60 = vsel %vm155_vm1, %v2375_v0, 0.0  ;;  %v7071_v28 = vld [vmem:[#allocation18_spill] sm:$0xff] }
 0x2bd   :  { %v6232_v27 = vsel %vm1895_vm9, %v3019_v43, %v3040_v26  ;;  %1938 = vadd.xlane.f32.xlu1 %v1937_v35  ;;  %2018 = vadd.xlane.f32.xlu0 %v2017_v21  ;;  %v2020_v43 = vsel %vm155_vm1, %v7071_v28, 0.0 }
 0x2be   :  { %v3064_v8 = vpop.xlane.xlu0 %3063 }
 0x2bf   :  { %v3098_v13 = vrot.slane %v3064_v8, %v6145_v20  ;;  %v4711_v14 = vpop.eup %4710 }
 0x2c0   :  { %v6257_v12 = vmul.f32 %v4711_v14, %v5515_v52  ;;  %v2294_v52 = vmul.f32 %v6220_v16, %v7058_v55 }
 0x2c1   :  { %v6243_v23 = vsel %vm1893_vm8, %v3098_v13, %v3094_v50  ;;  %2098 = vadd.xlane.f32.xlu1 %v2097_v57  ;;  %2226 = vadd.xlane.f32.xlu0 %v2225_v11  ;;  %v2388_v13 = vsel %vm155_vm1, %v2376_v4, 0.0 }
 0x2c2   :  { %v2212_v26 = vmul.f32 %v6257_v12, %v5613_v18  ;;  %v2308_v8 = vsel %vm155_vm1, %v2294_v52, 0.0  ;;  %v2457_v18 = vmul.f32 %v6124_v25, %v5570_v49  ;;  %v2468_v49 = vsel %vm155_vm1, %v2458_v30, 0.0  ;;  %v7073_v25 = vld [vmem:[#allocation14_spill] sm:$0xff] }
 0x2c3   :  { %v2023_v38 = vsel %vm155_vm1, %v7073_v25, 0.0  ;;  %v2295_v14 = vmul.f32 %v6257_v12, %v5596_v31  ;;  %v2296_v52 = vmul.f32 %v5972_v59, %v7065_v32  ;;  %v7076_v32 = vld [vmem:[#allocation34_spill] sm:$0xff] }
 0x2c4   :  { %v2228_v21 = vsel %vm155_vm1, %v2212_v26, 0.0  ;;  %v2465_v57 = vsel %vm155_vm1, %v2457_v18, 0.0  ;;  %v2391_v26 = vsel %vm155_vm1, %v2377_v46, 0.0 }
 0x2c5   :  { %2306 = vadd.xlane.f32.xlu1 %v2305_v3  ;;  %v6251_v54 = vpop.xlane.xlu1 %2615  ;;  %2383 = vadd.xlane.f32.xlu0 %v2382_v45  ;;  %v6253_v17 = vpop.xlane.xlu0 %2698  ;;  %v2213_v3 = vmul.f32 %v5972_v59, %v5685_v58  ;;  %v2103_v45 = vsel %vm155_vm1, %v7074_v36, 0.0  ;;  %v2311_v28 = vsel %vm155_vm1, %v2295_v14, 0.0  ;;  %v2314_v18 = vsel %vm155_vm1, %v2296_v52, 0.0 }
 0x2c9   :  { %2386 = vadd.xlane.f32.xlu1 %v2385_v60  ;;  %v6261_v48 = vpop.xlane.xlu1 %2778  ;;  %1941 = vadd.xlane.f32.xlu0 %v1940_v7  ;;  %v6263_v9 = vpop.xlane.xlu0 %2858  ;;  %v2231_v60 = vsel %vm155_vm1, %v2213_v3, 0.0  ;;  %v2461_v3 = vmul.f32 %v6257_v12, %v5763_v51  ;;  %v2317_v51 = vsel %vm155_vm1, %v5991_v41, 0.0  ;;  %v7079_v41 = vld [vmem:[#allocation20_spill] sm:$0xff] }
 0x2ca   :  { %v6384_v52 = vsel %vm155_vm1, %v7079_v41, 0.0 }
 0x2cd   :  { %2021 = vadd.xlane.f32.xlu1 %v2020_v43  ;;  %v6273_v2 = vpop.xlane.xlu1 %2986  ;;  %2101 = vadd.xlane.f32.xlu0 %v2100_v22  ;;  %v6275_v35 = vpop.xlane.xlu0 %3066  ;;  %v2459_v43 = vmul.f32 %v6156_v1, %v5600_v37  ;;  %v2106_v22 = vsel %vm155_vm1, %v5969_v39, 0.0  ;;  %v2378_v1 = vmul.f32 %v6257_v12, %v5698_v63  ;;  %v2460_v39 = vmul.f32 %v6220_v16, %v7066_v34  ;;  %v7078_v16 = vld [vmem:[#allocation6_spill] sm:$0xff] }
 0x2ce   :  { %vm263_vm13 = vweird.f32 %v7078_v16 }
 0x2cf   :  { %v2471_v61 = vsel %vm155_vm1, %v2459_v43, 0.0  ;;  %v2394_v34 = vsel %vm155_vm1, %v2378_v1, 0.0  ;;  %v273_v36 = vsel %vm263_vm13, nan, %v6020_v42  ;;  %v6374_v42 = vsel %vm155_vm1, %v5996_v40, 0.0  ;;  %v7080_v40 = vld [vmem:[#allocation10_spill] sm:$0xff] }
 0x2d0   :  { %v274_v12 = vmul.f32 0.5, %v273_v36  ;;  %v2400_v1 = vsel %vm155_vm1, %v7080_v40, 0.0  ;;  %vm3322_vm13 = vcmask 97280  }
 0x2d1   :  { %2229 = vadd.xlane.f32.xlu1 %v2228_v21  ;;  %v6283_v50 = vpop.xlane.xlu1 %3143  ;;  %2309 = vadd.xlane.f32.xlu0 %v2308_v8  ;;  %v6285_v55 = vpop.xlane.xlu0 %3146  ;;  %v2234_v8 = vsel %vm155_vm1, %v5975_v29, 0.0  ;;  %v2379_v29 = vmul.f32 %v5972_v59, %v5751_v19  ;;  %v2237_v19 = vsel %vm155_vm1, %v5984_v24, 0.0 }
 0x2d3   :  { %v2397_v59 = vsel %vm155_vm1, %v2379_v29, 0.0  ;;  %v7082_v29 = vld [vmem:[#allocation13_spill] sm:$0xff] }
 0x2d5   :  { %2389 = vadd.xlane.f32.xlu1 %v2388_v13  ;;  %2466 = vadd.xlane.f32.xlu0 %v2465_v57  ;;  %v6345_v57 = vld [vmem:[#allocation2] sm:$0xff] }
 0x2d6   :  { %v6291_v6 = vpop.xlane.xlu1 %2618  ;;  %v6293_v11 = vpop.xlane.xlu0 %2701  ;;  %v4408_v63 = vadd.f32 -0.09, %v6345_v57  ;;  %v4410_v43 = vadd.f32 -0.20714286, %v6345_v57  ;;  %vm169_vm2 = vcmp.lt.f32.partialorder %v6345_v57, 0.52 }
 0x2d8   :  { %v279_v14 = vmul.f32 %v4408_v63, %v4408_v63 }
 0x2d9   :  { %2469 = vadd.xlane.f32.xlu1 %v2468_v49  ;;  %2024 = vadd.xlane.f32.xlu0 %v2023_v38  ;;  %v2474_v38 = vsel %vm155_vm1, %v2460_v39, 0.0 }
 0x2da   :  { %v6300_v0 = vpop.xlane.xlu1 %2781  ;;  %v6302_v10 = vpop.xlane.xlu0 %2861 }
 0x2dd   :  { %2104 = vadd.xlane.f32.xlu1 %v2103_v45  ;;  %2232 = vadd.xlane.f32.xlu0 %v2231_v60  ;;  %v4409_v45 = vadd.f32 -0.14857143, %v6345_v57 }
 0x2de   :  { %v6311_v58 = vpop.xlane.xlu1 %2989  ;;  %v6313_v7 = vpop.xlane.xlu0 %3069 }
 0x2df   :  { %v289_v24 = vmul.f32 %v4409_v45, %v4409_v45  ;;  %v2726_v45 = vrot.slane %v6100_v62, %v6145_v20 }
 0x2e1   :  { %2312 = vadd.xlane.f32.xlu1 %v2311_v28  ;;  %2392 = vadd.xlane.f32.xlu0 %v2391_v26  ;;  %v2320_v28 = vsel %vm155_vm1, %v5988_v33, 0.0  ;;  %v2477_v26 = vsel %vm155_vm1, %v2461_v3, 0.0  ;;  %v2718_v33 = vrot.slane %v6059_v44, %v6145_v20  ;;  %v2403_v44 = vsel %vm155_vm1, %v7082_v29, 0.0  ;;  %v7084_v3 = vld [vmem:[#allocation8_spill] sm:$0xff] }
 0x2e2   :  { %v6319_v31 = vpop.xlane.xlu1 %3149  ;;  %v6321_v47 = vpop.xlane.xlu0 %3226  ;;  %v2714_v36 = vrot.slane %v7084_v3, %v6145_v20  ;;  %v290_v40 = vmul.f32 -160.0, %v289_v24  ;;  %v7088_v24 = vld [vmem:[#allocation27_spill] sm:$0xff] }
 0x2e5   :  { %2472 = vadd.xlane.f32.xlu1 %v2471_v61  ;;  %2107 = vadd.xlane.f32.xlu0 %v2106_v22  ;;  %v4411_v61 = vadd.f32 -0.2657143, %v6345_v57  ;;  %v4413_v22 = vadd.f32 -0.38285714, %v6345_v57 }
 0x2e6   :  { %v6328_v21 = vpop.xlane.xlu1 %3229  ;;  %v6330_v37 = vpop.xlane.xlu0 %2784 }
 0x2e7   :  { %v6413_v29 = vmul.f32 %v4413_v22, %v4413_v22  ;;  %v2734_v22 = vrot.slane %v6178_v15, %v6145_v20  ;;  %v2817_v15 = vrot.slane %v6261_v48, %v6145_v20 }
 0x2e9   :  { %2235 = vadd.xlane.f32.xlu1 %v2234_v8  ;;  %2315 = vadd.xlane.f32.xlu0 %v2314_v18  ;;  %v280_v8 = vmul.f32 -160.0, %v279_v14  ;;  %v7081_v18 = vld [vmem:[#allocation11_spill] sm:$0xff]  ;;  %v6407_v14 = vadd.f32 0.5, %v274_v12 }
 0x2ea   :  { %v6348_v49 = vpop.xlane.xlu1 %2864  ;;  %v6350_v25 = vpop.xlane.xlu0 %2992  ;;  %v2722_v39 = vrot.slane %v7081_v18, %v6145_v20  ;;  %v6411_v18 = vmul.f32 %v4411_v61, %v4411_v61  ;;  %v2888_v61 = vrot.slane %v7088_v24, %v6145_v20  ;;  %v3027_v24 = vrot.slane %v6311_v58, %v6145_v20 }
 0x2eb   :  { %v6334_v4 = vpop.f32.mrb[2].mxu0  ;;  %v6418_v62 = vmul.f32 1.442695, %v280_v8  ;;  %v2738_v8 = vrot.slane %v6253_v17, %v6145_v20 }
 0x2ec   :  { %7075 = vst [vmem:[#allocation32_spill] sm:$0xff] %v6334_v4  ;;  %v6343_v13 = vsub.f32 %v7076_v32, %v6334_v4  ;;  %v4516_v30 = vpop.f32.mrb[3].mxu0  ;;  %v7086_v4 = vld [vmem:[#allocation29_spill] sm:$0xff] }
 0x2ed   :  { %2395 = vadd.xlane.f32.xlu1 %v2394_v34  ;;  %2475 = vadd.xlane.f32.xlu0 %v2474_v38  ;;  %v7083_v34 = vld [vmem:[#allocation15_spill] sm:$0xff]  ;;  %v6401_v38 = vadd.f32 -0.44142857, %v6345_v57  ;;  %4712 = vpow2.f32 %v6418_v62 }
 0x2ee   :  { %7077 = vst [vmem:[#allocation31_spill] sm:$0xff] %v6343_v13  ;;  %v6361_v60 = vpop.xlane.xlu1 %3072  ;;  %v6366_v46 = vpop.xlane.xlu0 %3152  ;;  %v6398_v16 = vsel %vm155_vm1, %v7083_v34, 0.0  ;;  %v2743_v34 = vsel %vm1893_vm8, %v2718_v33, %v2714_v36  ;;  %v2730_v13 = vrot.slane %v7086_v4, %v6145_v20 }
 0x2ef   :  { %v2744_v12 = vsel %vm1895_vm9, %v2722_v39, %v2743_v34 }
 0x2f0   :  { %v2745_v4 = vsel %vm1897_vm10, %v2726_v45, %v2744_v12  ;;  %v2896_v45 = vrot.slane %v6263_v9, %v6145_v20 }
 0x2f1   :  { %2238 = vadd.xlane.f32.xlu1 %v2237_v19  ;;  %2318 = vadd.xlane.f32.xlu0 %v2317_v51  ;;  %v299_v19 = vmul.f32 %v4410_v43, %v4410_v43  ;;  %v7085_v51 = vld [vmem:[#allocation12_spill] sm:$0xff]  ;;  %v2746_v34 = vsel %vm1899_vm11, %v2730_v13, %v2745_v4 }
 0x2f2   :  { %v6390_v30 = vpop.xlane.xlu1 %3232  ;;  %v6392_v63 = vpop.xlane.xlu0 %2867  ;;  %v2880_v41 = vrot.slane %v7085_v51, %v6145_v20  ;;  %v7087_v43 = vld [vmem:[#allocation16_spill] sm:$0xff]  ;;  %v3023_v51 = vrot.slane %v6273_v2, %v6145_v20  ;;  %v2742_v2 = vrot.slane %v6293_v11, %v6145_v20 }
 0x2f3   :  { %v2884_v3 = vrot.slane %v7087_v43, %v6145_v20  ;;  %v6450_v17 = vmul.f32 -160.0, %v299_v19  ;;  %v2830_v19 = vsel %vm1901_vm12, %v2817_v15, %v6215_v56  ;;  %v2900_v43 = vrot.slane %v6302_v10, %v6145_v20 }
 0x2f4   :  { %v3042_v11 = vsel %vm1897_vm10, %v3023_v51, %v6232_v27  ;;  %v6479_v56 = vmul.f32 1.442695, %v290_v40  ;;  %v2821_v27 = vrot.slane %v6300_v0, %v6145_v20  ;;  %v3106_v10 = vrot.slane %v6313_v7, %v6145_v20 }
 0x2f5   :  { %2398 = vadd.xlane.f32.xlu1 %v2397_v59  ;;  %2478 = vadd.xlane.f32.xlu0 %v2477_v26  ;;  %v2892_v59 = vrot.slane %v6204_v53, %v6145_v20  ;;  %v2655_v26 = vrot.slane %v6251_v54, %v6145_v20  ;;  %v2909_v39 = vsel %vm1893_vm8, %v2884_v3, %v2880_v41 }
 0x2f6   :  { %v6427_v33 = vpop.xlane.xlu1 %2995  ;;  %v6429_v36 = vpop.xlane.xlu0 %3075  ;;  %v2659_v53 = vrot.slane %v6291_v6, %v6145_v20  ;;  %v3102_v54 = vrot.slane %v6275_v35, %v6145_v20  ;;  %v2910_v48 = vsel %vm1895_vm9, %v2888_v61, %v2909_v39  ;;  %v2747_v41 = vsel %vm1901_vm12, %v2734_v22, %v2746_v34 }
 0x2f7   :  { %v2911_v6 = vsel %vm1897_vm10, %v2892_v59, %v2910_v48  ;;  %v3181_v35 = vrot.slane %v6285_v55, %v6145_v20  ;;  %v3177_v3 = vrot.slane %v6283_v50, %v6145_v20  ;;  %v3260_v40 = vrot.slane %v6321_v47, %v6145_v20 }
 0x2f8   :  { %v2912_v12 = vsel %vm1899_vm11, %v2896_v45, %v2911_v6  ;;  %v3124_v55 = vsel %vm1895_vm9, %v3102_v54, %v6243_v23  ;;  %v2825_v0 = vrot.slane %v6330_v37, %v6145_v20  ;;  %v2904_v7 = vrot.slane %v6348_v49, %v6145_v20 }
 0x2f9   :  { %2321 = vadd.xlane.f32.xlu1 %v2320_v28  ;;  %2401 = vadd.xlane.f32.xlu0 %v2400_v1  ;;  %v2665_v28 = vsel %vm1903_vm14, %v2655_v26, %v6202_v5  ;;  %v2748_v1 = vsel %vm1903_vm14, %v2738_v8, %v2747_v41  ;;  %v2913_v58 = vsel %vm1901_vm12, %v2900_v43, %v2912_v12  ;;  %4714 = vpow2.f32 %v6479_v56 }
 0x2fa   :  { %v6456_v9 = vpop.xlane.xlu1 %3155  ;;  %v6458_v13 = vpop.xlane.xlu0 %3235  ;;  %v2666_v5 = vsel %vm1905_vm15, %v2659_v53, %v2665_v28  ;;  %v2749_v23 = vsel %vm1905_vm15, %v2742_v2, %v2748_v1  ;;  %v3110_v22 = vrot.slane %v6361_v60, %v6145_v20  ;;  %v2908_v47 = vrot.slane %v6392_v63, %v6145_v20 }
 0x2fb   :  { %v2668_v4 = vsel %vm155_vm1, %v2666_v5, 0.0  ;;  %v3114_v37 = vrot.slane %v6429_v36, %v6145_v20  ;;  %v2751_v49 = vsel %vm155_vm1, %v2749_v23, 0.0  ;;  %v3043_v60 = vsel %vm1899_vm11, %v3027_v24, %v3042_v11 }
 0x2fc   :  { %v3125_v59 = vsel %vm1897_vm10, %v3106_v10, %v3124_v55  ;;  %v3035_v51 = vrot.slane %v6427_v33, %v6145_v20  ;;  %v3189_v45 = vrot.slane %v6366_v46, %v6145_v20  ;;  %v2914_v34 = vsel %vm1903_vm14, %v2904_v7, %v2913_v58 }
 0x2fd   :  { %2481 = vadd.xlane.f32.xlu1 %v6374_v42  ;;  %2404 = vadd.xlane.f32.xlu0 %v2403_v44  ;;  %v3206_v42 = vsel %vm1893_vm8, %v3181_v35, %v3177_v3  ;;  %v3185_v44 = vrot.slane %v6319_v31, %v6145_v20  ;;  %v3264_v31 = vrot.slane %v6328_v21, %v6145_v20  ;;  %v301_v10 = vmul.f32 1.442695, %v6450_v17 }
 0x2fe   :  { %v2999_v50 = vpop.xlane.xlu1 %2998  ;;  %v3079_v61 = vpop.xlane.xlu0 %3078  ;;  %v2831_v21 = vsel %vm1903_vm14, %v2821_v27, %v2830_v19  ;;  %v3126_v15 = vsel %vm1899_vm11, %v3110_v22, %v3125_v59  ;;  %v3268_v48 = vrot.slane %v6390_v30, %v6145_v20  ;;  %v3193_v33 = vrot.slane %v6456_v9, %v6145_v20 }
 0x2ff   :  { %v3118_v8 = vrot.slane %v3079_v61, %v6145_v20  ;;  %v3207_v63 = vsel %vm1895_vm9, %v3185_v44, %v3206_v42  ;;  %v3289_v36 = vsel %vm1893_vm8, %v3264_v31, %v3260_v40  ;;  %v3039_v53 = vrot.slane %v2999_v50, %v6145_v20  ;;  %v4713_v31 = vpop.eup %4712 }
 0x300   :  { %v3127_v54 = vsel %vm1901_vm12, %v3114_v37, %v3126_v15  ;;  %v3272_v1 = vrot.slane %v6458_v13, %v6145_v20  ;;  %v3208_v30 = vsel %vm1897_vm10, %v3189_v45, %v3207_v63  ;;  %v276_v13 = vsel %vm169_vm2, %v6407_v14, 0.0 }
 0x301   :  { %2484 = vadd.xlane.f32.xlu1 %v6384_v52  ;;  %2487 = vadd.xlane.f32.xlu0 %v6398_v16  ;;  %v3031_v52 = vrot.slane %v6350_v25, %v6145_v20  ;;  %v2832_v16 = vsel %vm1905_vm15, %v2825_v0, %v2831_v21  ;;  %v2915_v25 = vsel %vm1905_vm15, %v2908_v47, %v2914_v34  ;;  %v310_v50 = vmul.f32 -160.0, %v6411_v18 }
 0x302   :  { %v3159_v26 = vpop.xlane.xlu1 %3158  ;;  %v3239_v39 = vpop.xlane.xlu0 %3238  ;;  %v2834_v46 = vsel %vm155_vm1, %v2832_v16, 0.0  ;;  %v3128_v6 = vsel %vm1903_vm14, %v3118_v8, %v3127_v54  ;;  %v2917_v11 = vsel %vm155_vm1, %v2915_v25, 0.0  ;;  %v3290_v55 = vsel %vm1895_vm9, %v3268_v48, %v3289_v36 }
 0x303   :  { %v3044_v35 = vsel %vm1901_vm12, %v3031_v52, %v3043_v60  ;;  %v3197_v28 = vrot.slane %v3159_v26, %v6145_v20  ;;  %v3276_v12 = vrot.slane %v3239_v39, %v6145_v20  ;;  %v3209_v5 = vsel %vm1899_vm11, %v3193_v33, %v3208_v30 }
 0x304   :  { %v3045_v19 = vsel %vm1903_vm14, %v3035_v51, %v3044_v35  ;;  %v3291_v23 = vsel %vm1897_vm10, %v3272_v1, %v3290_v55  ;;  %v339_v60 = vmul.f32 %v6401_v38, %v6401_v38  ;;  %4716 = vpow2.f32 %v301_v10  ;;  %v4715_v51 = vpop.eup %4714 }
 0x305   :  { %2669 = vadd.xlane.f32.xlu1 %v2668_v4  ;;  %2752 = vadd.xlane.f32.xlu0 %v2751_v49  ;;  %v3046_v43 = vsel %vm1905_vm15, %v3039_v53, %v3045_v19  ;;  %v3210_v61 = vsel %vm1901_vm12, %v3197_v28, %v3209_v5  ;;  %v3292_v17 = vsel %vm1899_vm11, %v3276_v12, %v3291_v23  ;;  %v7089_v4 = vld [vmem:[#allocation9_spill] sm:$0xff]  ;;  %v330_v49 = vmul.f32 -160.0, %v6413_v29  ;;  %v3300_v19 = vld [vmem:[%s6916_s1] sm:$0xff]  ;;  %s4744_s1 = smov 16  }
 0x306   :  { %v3082_v41 = vpop.xlane.xlu1 %3081  ;;  %v3162_v2 = vpop.xlane.xlu0 %3161  ;;  %v3048_v44 = vsel %vm155_vm1, %v3046_v43, 0.0  ;;  %v6567_v56 = vmul.f32 %v7089_v4, %v276_v13  ;;  %v311_v26 = vmul.f32 1.442695, %v310_v50  ;;  %v4415_v8 = vadd.f32 -0.5, %v6345_v57 }
 0x307   :  { %v3122_v62 = vrot.slane %v3082_v41, %v6145_v20  ;;  %v3201_v9 = vrot.slane %v3162_v2, %v6145_v20  ;;  %v331_v38 = vmul.f32 1.442695, %v330_v49  ;;  %v340_v16 = vmul.f32 -160.0, %v339_v60 }
 0x308   :  { %v283_v52 = vmul.f32 %v4713_v31, %v6567_v56  ;;  %4718 = vpow2.f32 %v311_v26  ;;  %v349_v15 = vmul.f32 %v4415_v8, %v4415_v8  ;;  %v293_v54 = vmul.f32 %v4715_v51, %v6567_v56 }
 0x309   :  { %2835 = vadd.xlane.f32.xlu1 %v2834_v46  ;;  %2918 = vadd.xlane.f32.xlu0 %v2917_v11  ;;  %v3129_v3 = vsel %vm1905_vm15, %v3122_v62, %v3128_v6  ;;  %v3211_v0 = vsel %vm1903_vm14, %v3201_v9, %v3210_v61  ;;  %4720 = vpow2.f32 %v331_v38  ;;  %v341_v25 = vmul.f32 1.442695, %v340_v16 }
 0x30a   :  { %v3242_v27 = vpop.xlane.xlu1 %3241  ;;  %v3165_v24 = vpop.xlane.xlu0 %3164  ;;  %v3131_v40 = vsel %vm155_vm1, %v3129_v3, 0.0  ;;  %v284_v53 = vsel %vm155_vm1, %v283_v52, 0.0  ;;  %v350_v48 = vmul.f32 -160.0, %v349_v15  ;;  %v294_v2 = vsel %vm155_vm1, %v293_v54, 0.0 }
 0x30b   :  { %v3205_v42 = vrot.slane %v3165_v24, %v6145_v20  ;;  %v3280_v14 = vrot.slane %v3242_v27, %v6145_v20  ;;  %4722 = vpow2.f32 %v341_v25  ;;  %v4412_v24 = vadd.f32 -0.32428572, %v6345_v57 }
 0x30c   :  { %v351_v35 = vmul.f32 1.442695, %v350_v48  ;;  %vm3328_vm2 = vcmask 121856  }
 0x30d   :  { %3049 = vadd.xlane.f32.xlu1 %v3048_v44  ;;  %3132 = vadd.xlane.f32.xlu0 %v3131_v40  ;;  %v3212_v18 = vsel %vm1905_vm15, %v3205_v42, %v3211_v0  ;;  %v3293_v59 = vsel %vm1901_vm12, %v3280_v14, %v3292_v17  ;;  %v319_v14 = vmul.f32 %v4412_v24, %v4412_v24 }
 0x30e   :  { %v3245_v58 = vpop.xlane.xlu1 %3244  ;;  %v3248_v7 = vpop.xlane.xlu0 %3247  ;;  %v3214_v22 = vsel %vm155_vm1, %v3212_v18, 0.0  ;;  %4724 = vpow2.f32 %v351_v35 }
 0x30f   :  { %v3284_v47 = vrot.slane %v3245_v58, %v6145_v20  ;;  %v3288_v37 = vrot.slane %v3248_v7, %v6145_v20  ;;  %v4717_v33 = vpop.eup %4716  ;;  %v320_v7 = vmul.f32 -160.0, %v319_v14 }
 0x310   :  { %v303_v6 = vmul.f32 %v4717_v33, %v6567_v56 }
 0x311   :  { %3215 = vadd.xlane.f32.xlu1 %v3214_v22  ;;  %v3294_v21 = vsel %vm1903_vm14, %v3284_v47, %v3293_v59  ;;  %v321_v47 = vmul.f32 1.442695, %v320_v7 }
 0x312   :  { %v6577_v39 = vpop.xlane.xlu1 %1830  ;;  %v6579_v63 = vpop.xlane.xlu0 %1833  ;;  %v3295_v36 = vsel %vm1905_vm15, %v3288_v37, %v3294_v21  ;;  %v304_v30 = vsel %vm155_vm1, %v303_v6, 0.0 }
 0x313   :  { %v3297_v29 = vsel %vm155_vm1, %v3295_v36, 0.0  ;;  %v4719_v28 = vpop.eup %4718  ;;  %4726 = vpow2.f32 %v321_v47  ;;  %v1868_v36 = vrot.slane %v6579_v63, %v6145_v20  ;;  %v1864_v38 = vrot.slane %v6577_v39, %v6145_v20 }
 0x314   :  { %3298 = vadd.xlane.f32.xlu0 %v3297_v29  ;;  %v313_v9 = vmul.f32 %v4719_v28, %v6567_v56  ;;  %v4721_v11 = vpop.eup %4720 }
 0x315   :  { %v333_v13 = vmul.f32 %v4721_v11, %v6567_v56  ;;  %v4723_v55 = vpop.eup %4722  ;;  %v1894_v15 = vsel %vm1893_vm8, %v1868_v36, %v1864_v38 }
 0x316   :  { %v6584_v45 = vpop.xlane.xlu1 %1836  ;;  %v6586_v34 = vpop.xlane.xlu0 %1920  ;;  %v314_v3 = vsel %vm155_vm1, %v313_v9, 0.0  ;;  %v343_v50 = vmul.f32 %v4723_v55, %v6567_v56 }
 0x317   :  { %v334_v10 = vsel %vm155_vm1, %v333_v13, 0.0  ;;  %v1872_v54 = vrot.slane %v6584_v45, %v6145_v20  ;;  %v1954_v13 = vrot.slane %v6586_v34, %v6145_v20 }
 0x318   :  { %285 = vadd.xlane.f32.xlu0 %v284_v53  ;;  %v4725_v61 = vpop.eup %4724  ;;  %v344_v0 = vsel %vm155_vm1, %v343_v50, 0.0 }
 0x319   :  { %v353_v17 = vmul.f32 %v4725_v61, %v6567_v56  ;;  %v1896_v39 = vsel %vm1895_vm9, %v1872_v54, %v1894_v15 }
 0x31a   :  { %v6590_v41 = vpop.xlane.xlu1 %1923  ;;  %v6592_v46 = vpop.xlane.xlu0 %1839 }
 0x31b   :  { %v354_v22 = vsel %vm155_vm1, %v353_v17, 0.0  ;;  %v1876_v51 = vrot.slane %v6592_v46, %v6145_v20 }
 0x31c   :  { %295 = vadd.xlane.f32.xlu0 %v294_v2 }
 0x31d   :  { %v4727_v16 = vpop.eup %4726  ;;  %v1898_v6 = vsel %vm1897_vm10, %v1876_v51, %v1896_v39 }
 0x31e   :  { %v6596_v1 = vpop.xlane.xlu1 %1926  ;;  %v6598_v62 = vpop.xlane.xlu0 %2003  ;;  %v323_v53 = vmul.f32 %v4727_v16, %v6567_v56 }
 0x31f   :  { %v1962_v50 = vrot.slane %v6596_v1, %v6145_v20 }
 0x320   :  { %305 = vadd.xlane.f32.xlu0 %v304_v30  ;;  %v324_v46 = vsel %vm155_vm1, %v323_v53, 0.0 }
 0x322   :  { %v6605_v12 = vpop.xlane.xlu1 %2006  ;;  %3331 = vrot.lane.b32.xlu1 %v3300_v19, %s4743_s14  ;;  %v1843_v43 = vpop.xlane.xlu0 %1842 }
 0x323   :  { %v1880_v63 = vrot.slane %v1843_v43, %v6145_v20  ;;  %v2041_v36 = vrot.slane %v6605_v12, %v6145_v20 }
 0x324   :  { %315 = vadd.xlane.f32.xlu0 %v314_v3 }
 0x325   :  { %v1900_v56 = vsel %vm1899_vm11, %v1880_v63, %v1898_v6 }
 0x326   :  { %v6609_v5 = vpop.xlane.xlu1 %1929  ;;  %v6611_v27 = vpop.xlane.xlu0 %2009 }
 0x328   :  { %335 = vadd.xlane.f32.xlu0 %v334_v10  ;;  %v1958_v10 = vrot.slane %v6590_v41, %v6145_v20 }
 0x32a   :  { %v2087_v23 = vpop.xlane.xlu1 %2086  ;;  %v2090_v42 = vpop.xlane.xlu0 %2089  ;;  %v1983_v61 = vsel %vm1893_vm8, %v1958_v10, %v1954_v13 }
 0x32b   :  { %v2120_v44 = vrot.slane %v2087_v23, %v6145_v20  ;;  %v2124_v40 = vrot.slane %v2090_v42, %v6145_v20  ;;  %v1966_v23 = vrot.slane %v6609_v5, %v6145_v20 }
 0x32c   :  { %345 = vadd.xlane.f32.xlu0 %v344_v0 }
 0x32d   :  { %v6621_v57 = vsel %vm1893_vm8, %v2124_v40, %v2120_v44  ;;  %v1984_v40 = vsel %vm1895_vm9, %v1962_v50, %v1983_v61 }
 0x32e   :  { %v1846_v18 = vpop.xlane.xlu1 %1845  ;;  %v1933_v58 = vpop.xlane.xlu0 %1932  ;;  %v1985_v0 = vsel %vm1897_vm10, %v1966_v23, %v1984_v40 }
 0x32f   :  { %v1884_v33 = vrot.slane %v1846_v18, %v6145_v20  ;;  %v1970_v42 = vrot.slane %v1933_v58, %v6145_v20 }
 0x330   :  { %355 = vadd.xlane.f32.xlu0 %v354_v22 }
 0x331   :  { %v1902_v28 = vsel %vm1901_vm12, %v1884_v33, %v1900_v56  ;;  %v1986_v1 = vsel %vm1899_vm11, %v1970_v42, %v1985_v0 }
 0x332   :  { %v6624_v4 = vpop.xlane.xlu1 %2012  ;;  %v6626_v31 = vpop.xlane.xlu0 %2092 }
 0x333   :  { %v2049_v38 = vrot.slane %v6624_v4, %v6145_v20 }
 0x336   :  { %v2218_v37 = vpop.xlane.xlu1 %2217  ;;  %v2221_v49 = vpop.xlane.xlu0 %2220 }
 0x337   :  { %v2251_v60 = vrot.slane %v2218_v37, %v6145_v20  ;;  %v2255_v59 = vrot.slane %v2221_v49, %v6145_v20 }
 0x339   :  { %v6631_v26 = vsel %vm1893_vm8, %v2255_v59, %v2251_v60 }
 0x33a   :  { %v1849_v8 = vpop.xlane.xlu1 %1848  ;;  %v1936_v21 = vpop.xlane.xlu0 %1935 }
 0x33b   :  { %v1888_v2 = vrot.slane %v1849_v8, %v6145_v20  ;;  %v1974_v34 = vrot.slane %v1936_v21, %v6145_v20  ;;  %v2037_v8 = vrot.slane %v6598_v62, %v6145_v20  ;;  %v2045_v21 = vrot.slane %v6611_v27, %v6145_v20 }
 0x33d   :  { %v1904_v19 = vsel %vm1903_vm14, %v1888_v2, %v1902_v28  ;;  %v1987_v5 = vsel %vm1901_vm12, %v1974_v34, %v1986_v1  ;;  %v2066_v53 = vsel %vm1893_vm8, %v2041_v36, %v2037_v8  ;;  %v2128_v28 = vrot.slane %v6626_v31, %v6145_v20 }
 0x33e   :  { %v6635_v29 = vpop.xlane.xlu1 %2015  ;;  %v6637_v52 = vpop.xlane.xlu0 %2095  ;;  %v2067_v54 = vsel %vm1895_vm9, %v2045_v21, %v2066_v53 }
 0x33f   :  { %v2053_v16 = vrot.slane %v6635_v29, %v6145_v20  ;;  %v2068_v12 = vsel %vm1897_vm10, %v2049_v38, %v2067_v54 }
 0x341   :  { %v2069_v63 = vsel %vm1899_vm11, %v2053_v16, %v2068_v12 }
 0x342   :  { %v6648_v25 = vpop.xlane.xlu1 %2223  ;;  %v6650_v48 = vpop.xlane.xlu0 %2300 }
 0x346   :  { %v6658_v35 = vpop.xlane.xlu1 %2303  ;;  %325 = vadd.xlane.f32.xlu1 %v324_v46  ;;  %v1852_v45 = vpop.xlane.xlu0 %1851 }
 0x347   :  { %v1892_v30 = vrot.slane %v1852_v45, %v6145_v20  ;;  %v2338_v8 = vrot.slane %v6658_v35, %v6145_v20 }
 0x349   :  { %v1906_v9 = vsel %vm1905_vm15, %v1892_v30, %v1904_v19  ;;  %v2132_v30 = vrot.slane %v6637_v52, %v6145_v20 }
 0x34a   :  { %v1939_v11 = vpop.xlane.xlu1 %1938  ;;  %v2019_v43 = vpop.xlane.xlu0 %2018  ;;  %v1908_v3 = vsel %vm155_vm1, %v1906_v9, 0.0 }
 0x34b   :  { %1909 = vadd.xlane.f32.xlu0 %v1908_v3  ;;  %v1978_v41 = vrot.slane %v1939_v11, %v6145_v20  ;;  %v2057_v62 = vrot.slane %v2019_v43, %v6145_v20  ;;  %v2150_v3 = vsel %vm1895_vm9, %v2128_v28, %v6621_v57 }
 0x34c   :  { %v2151_v10 = vsel %vm1897_vm10, %v2132_v30, %v2150_v3 }
 0x34d   :  { %v1988_v7 = vsel %vm1903_vm14, %v1978_v41, %v1987_v5  ;;  %v2070_v29 = vsel %vm1901_vm12, %v2057_v62, %v2069_v63  ;;  %v2259_v41 = vrot.slane %v6648_v25, %v6145_v20 }
 0x34e   :  { %v2099_v55 = vpop.xlane.xlu1 %2098  ;;  %v6667_v24 = vpop.xlane.xlu0 %2226 }
 0x34f   :  { %v2136_v19 = vrot.slane %v2099_v55, %v6145_v20  ;;  %v2263_v0 = vrot.slane %v6667_v24, %v6145_v20 }
 0x351   :  { %v2152_v50 = vsel %vm1899_vm11, %v2136_v19, %v2151_v10 }
 0x352   :  { %v6677_v14 = vpop.xlane.xlu1 %2306  ;;  %v6679_v44 = vpop.xlane.xlu0 %2383 }
 0x353   :  { %v2342_v25 = vrot.slane %v6677_v14, %v6145_v20  ;;  %v2417_v12 = vrot.slane %v6679_v44, %v6145_v20 }
 0x356   :  { %v6686_v17 = vpop.xlane.xlu1 %2386  ;;  %v1942_v18 = vpop.xlane.xlu0 %1941 }
 0x357   :  { %v1982_v58 = vrot.slane %v1942_v18, %v6145_v20 }
 0x359   :  { %v1989_v22 = vsel %vm1905_vm15, %v1982_v58, %v1988_v7  ;;  %v2281_v7 = vsel %vm1895_vm9, %v2259_v41, %v6631_v26 }
 0x35a   :  { %v2022_v47 = vpop.xlane.xlu1 %2021  ;;  %v2102_v37 = vpop.xlane.xlu0 %2101  ;;  %v1991_v49 = vsel %vm155_vm1, %v1989_v22, 0.0 }
 0x35b   :  { %1992 = vadd.xlane.f32.xlu0 %v1991_v49  ;;  %v2061_v27 = vrot.slane %v2022_v47, %v6145_v20  ;;  %v2140_v43 = vrot.slane %v2102_v37, %v6145_v20  ;;  %v2334_v47 = vrot.slane %v6650_v48, %v6145_v20  ;;  %v2282_v37 = vsel %vm1897_vm10, %v2263_v0, %v2281_v7 }
 0x35d   :  { %v2071_v2 = vsel %vm1903_vm14, %v2061_v27, %v2070_v29  ;;  %v2153_v52 = vsel %vm1901_vm12, %v2140_v43, %v2152_v50  ;;  %v2363_v14 = vsel %vm1893_vm8, %v2338_v8, %v2334_v47 }
 0x35e   :  { %v2230_v60 = vpop.xlane.xlu1 %2229  ;;  %v6693_v59 = vpop.xlane.xlu0 %2309  ;;  %v2364_v62 = vsel %vm1895_vm9, %v2342_v25, %v2363_v14 }
 0x35f   :  { %v2267_v1 = vrot.slane %v2230_v60, %v6145_v20  ;;  %v2346_v26 = vrot.slane %v6693_v59, %v6145_v20 }
 0x361   :  { %v2283_v24 = vsel %vm1899_vm11, %v2267_v1, %v2282_v37  ;;  %v2365_v63 = vsel %vm1897_vm10, %v2346_v26, %v2364_v62 }
 0x362   :  { %v6705_v15 = vpop.xlane.xlu1 %2389  ;;  %v6707_v51 = vpop.xlane.xlu0 %2466 }
 0x366   :  { %v6715_v4 = vpop.xlane.xlu1 %2469  ;;  %v2025_v33 = vpop.xlane.xlu0 %2024 }
 0x367   :  { %v2065_v39 = vrot.slane %v2025_v33, %v6145_v20  ;;  %v2425_v33 = vrot.slane %v6705_v15, %v6145_v20 }
 0x369   :  { %v2072_v6 = vsel %vm1905_vm15, %v2065_v39, %v2071_v2  ;;  %v2421_v39 = vrot.slane %v6686_v17, %v6145_v20 }
 0x36a   :  { %v2105_v46 = vpop.xlane.xlu1 %2104  ;;  %v2233_v56 = vpop.xlane.xlu0 %2232  ;;  %v2074_v45 = vsel %vm155_vm1, %v2072_v6, 0.0 }
 0x36b   :  { %2075 = vadd.xlane.f32.xlu0 %v2074_v45  ;;  %v2144_v13 = vrot.slane %v2105_v46, %v6145_v20  ;;  %v2271_v58 = vrot.slane %v2233_v56, %v6145_v20  ;;  %v2500_v46 = vrot.slane %v6707_v51, %v6145_v20  ;;  %v2446_v15 = vsel %vm1893_vm8, %v2421_v39, %v2417_v12 }
 0x36c   :  { %v2504_v51 = vrot.slane %v6715_v4, %v6145_v20 }
 0x36d   :  { %v2154_v23 = vsel %vm1903_vm14, %v2144_v13, %v2153_v52  ;;  %v2284_v21 = vsel %vm1901_vm12, %v2271_v58, %v2283_v24 }
 0x36e   :  { %v2313_v9 = vpop.xlane.xlu1 %2312  ;;  %v6727_v11 = vpop.xlane.xlu0 %2392  ;;  %v2529_v50 = vsel %vm1893_vm8, %v2504_v51, %v2500_v46  ;;  %vm3311_vm8 = vcmask 48128  }
 0x36f   :  { %v2350_v48 = vrot.slane %v2313_v9, %v6145_v20  ;;  %v2429_v2 = vrot.slane %v6727_v11, %v6145_v20  ;;  %v2447_v9 = vsel %vm1895_vm9, %v2425_v33, %v2446_v15 }
 0x371   :  { %v2366_v29 = vsel %vm1899_vm11, %v2350_v48, %v2365_v63  ;;  %v2448_v3 = vsel %vm1897_vm10, %v2429_v2, %v2447_v9 }
 0x372   :  { %v6735_v31 = vpop.xlane.xlu1 %2472  ;;  %v2108_v61 = vpop.xlane.xlu0 %2107 }
 0x373   :  { %v2148_v55 = vrot.slane %v2108_v61, %v6145_v20  ;;  %v2508_v30 = vrot.slane %v6735_v31, %v6145_v20 }
 0x375   :  { %v2155_v42 = vsel %vm1905_vm15, %v2148_v55, %v2154_v23  ;;  %v2530_v4 = vsel %vm1895_vm9, %v2508_v30, %v2529_v50  ;;  %vm3313_vm9 = vcmask 56320  }
 0x376   :  { %v2236_v34 = vpop.xlane.xlu1 %2235  ;;  %v2316_v40 = vpop.xlane.xlu0 %2315  ;;  %v2157_v57 = vsel %vm155_vm1, %v2155_v42, 0.0 }
 0x377   :  { %2158 = vadd.xlane.f32.xlu0 %v2157_v57  ;;  %v2275_v22 = vrot.slane %v2236_v34, %v6145_v20  ;;  %v2354_v16 = vrot.slane %v2316_v40, %v6145_v20 }
 0x379   :  { %v2285_v38 = vsel %vm1903_vm14, %v2275_v22, %v2284_v21  ;;  %v2367_v6 = vsel %vm1901_vm12, %v2354_v16, %v2366_v29 }
 0x37a   :  { %v2396_v18 = vpop.xlane.xlu1 %2395  ;;  %v2476_v5 = vpop.xlane.xlu0 %2475 }
 0x37b   :  { %v2433_v44 = vrot.slane %v2396_v18, %v6145_v20  ;;  %v2512_v11 = vrot.slane %v2476_v5, %v6145_v20 }
 0x37d   :  { %v2449_v31 = vsel %vm1899_vm11, %v2433_v44, %v2448_v3  ;;  %v2531_v34 = vsel %vm1897_vm10, %v2512_v11, %v2530_v4  ;;  %vm3316_vm10 = vcmask 72704  }
 0x37e   :  { %v2239_v49 = vpop.xlane.xlu1 %2238  ;;  %v2319_v60 = vpop.xlane.xlu0 %2318 }
 0x37f   :  { %v2279_v36 = vrot.slane %v2239_v49, %v6145_v20  ;;  %v2358_v59 = vrot.slane %v2319_v60, %v6145_v20 }
 0x381   :  { %v2286_v53 = vsel %vm1905_vm15, %v2279_v36, %v2285_v38  ;;  %v2368_v45 = vsel %vm1903_vm14, %v2358_v59, %v2367_v6 }
 0x382   :  { %v2399_v35 = vpop.xlane.xlu1 %2398  ;;  %v2288_v54 = vsel %vm155_vm1, %v2286_v53, 0.0  ;;  %v2479_v27 = vpop.xlane.xlu0 %2478 }
 0x383   :  { %2289 = vadd.xlane.f32.xlu0 %v2288_v54  ;;  %v2437_v17 = vrot.slane %v2399_v35, %v6145_v20  ;;  %v2516_v13 = vrot.slane %v2479_v27, %v6145_v20 }
 0x385   :  { %v2450_v23 = vsel %vm1901_vm12, %v2437_v17, %v2449_v31  ;;  %v2532_v41 = vsel %vm1899_vm11, %v2516_v13, %v2531_v34  ;;  %vm3318_vm11 = vcmask 80896  }
 0x386   :  { %v2322_v56 = vpop.xlane.xlu1 %2321  ;;  %v2402_v28 = vpop.xlane.xlu0 %2401 }
 0x387   :  { %v2362_v19 = vrot.slane %v2322_v56, %v6145_v20  ;;  %v2441_v43 = vrot.slane %v2402_v28, %v6145_v20 }
 0x389   :  { %v2369_v10 = vsel %vm1905_vm15, %v2362_v19, %v2368_v45  ;;  %v2451_v57 = vsel %vm1903_vm14, %v2441_v43, %v2450_v23 }
 0x38a   :  { %v2482_v61 = vpop.xlane.xlu1 %2481  ;;  %v2371_v52 = vsel %vm155_vm1, %v2369_v10, 0.0  ;;  %v2405_v55 = vpop.xlane.xlu0 %2404 }
 0x38b   :  { %2372 = vadd.xlane.f32.xlu0 %v2371_v52  ;;  %v2445_v42 = vrot.slane %v2405_v55, %v6145_v20  ;;  %v2520_v40 = vrot.slane %v2482_v61, %v6145_v20 }
 0x38d   :  { %v2452_v0 = vsel %vm1905_vm15, %v2445_v42, %v2451_v57  ;;  %v2533_v22 = vsel %vm1901_vm12, %v2520_v40, %v2532_v41  ;;  %vm3320_vm12 = vcmask 89088  }
 0x38e   :  { %v2485_v1 = vpop.xlane.xlu1 %2484  ;;  %v2488_v18 = vpop.xlane.xlu0 %2487  ;;  %v2454_v5 = vsel %vm155_vm1, %v2452_v0, 0.0 }
 0x38f   :  { %v2524_v58 = vrot.slane %v2485_v1, %v6145_v20  ;;  %v2528_v7 = vrot.slane %v2488_v18, %v6145_v20  ;;  %2455 = vadd.xlane.f32.xlu1 %v2454_v5 }
 0x391   :  { %v2534_v47 = vsel %vm1903_vm14, %v2524_v58, %v2533_v22  ;;  %vm3324_vm14 = vcmask 105472   ;;  %v7090_v58 = vld [vmem:[#allocation7_spill] sm:$0xff] }
 0x392   :  { %v2670_v37 = vpop.xlane.xlu1 %2669  ;;  %v2753_v25 = vpop.xlane.xlu0 %2752  ;;  %v2535_v24 = vsel %vm1905_vm15, %v2528_v7, %v2534_v47  ;;  %vm3326_vm15 = vcmask 113664   ;;  %v3443_v7 = vsub.f32 %v7090_v58, %v7076_v32  ;;  %v7091_v47 = vmov 0.0   ;;  %v7093_v32 = vld [vmem:[#allocation32_spill] sm:$0xff] }
 0x393   :  { %v2537_v49 = vsel %vm155_vm1, %v2535_v24, 0.0  ;;  %v3334_v8 = vsel %vm3301_vm3, %v2670_v37, %v2753_v25  ;;  %v7092_v37 = vld [vmem:[#allocation31_spill] sm:$0xff] }
 0x394   :  { %2538 = vadd.xlane.f32.xlu0 %v2537_v49 }
 0x396   :  { %v2836_v60 = vpop.xlane.xlu1 %2835  ;;  %v2919_v26 = vpop.xlane.xlu0 %2918 }
 0x397   :  { %v3335_v20 = vsel %vm3303_vm4, %v3334_v8, %v2836_v60 }
 0x398   :  { %v3336_v36 = vsel %vm3305_vm5, %v3335_v20, %v2919_v26 }
 0x39a   :  { %v3050_v21 = vpop.xlane.xlu1 %3049  ;;  %v3133_v48 = vpop.xlane.xlu0 %3132 }
 0x39b   :  { %v3337_v38 = vsel %vm3307_vm6, %v3336_v36, %v3050_v21 }
 0x39c   :  { %v3338_v14 = vsel %vm3309_vm7, %v3337_v38, %v3133_v48 }
 0x39e   :  { %v3216_v16 = vpop.xlane.xlu1 %3215 }
 0x39f   :  { %v3339_v53 = vsel %vm3311_vm8, %v3338_v14, %v3216_v16 }
 0x3a1   :  { %v3299_v62 = vpop.xlane.xlu0 %3298 }
 0x3a2   :  { %v3340_v35 = vsel %vm3313_vm9, %v3339_v53, %v3299_v62  ;;  %v3332_v54 = vpop.permute.xlu1 %3331 }
 0x3a3   :  { %v3341_v59 = vsel %vm155_vm1, %v3340_v35, %v3332_v54 }
 0x3a4   :  { %3343 = vrot.lane.b32.xlu1 %v3341_v59, %s4744_s1 }
 0x3a5   :  { %v286_v27 = vpop.xlane.xlu0 %285 }
 0x3a6   :  { %v287_v33 = vmul.f32 0.25, %v286_v27 }
 0x3a9   :  { %v296_v12 = vpop.xlane.xlu0 %295 }
 0x3aa   :  { %v297_v63 = vmul.f32 0.25, %v296_v12 }
 0x3ac   :  { %v3302_v2 = vsel %vm3301_vm3, %v287_v33, %v297_v63  ;;  %vm3346_vm3 = vcmask 130048  }
 0x3ad   :  { %v306_v29 = vpop.xlane.xlu0 %305 }
 0x3ae   :  { %v307_v39 = vmul.f32 0.25, %v306_v29 }
 0x3b0   :  { %v3304_v6 = vsel %vm3303_vm4, %v3302_v2, %v307_v39 }
 0x3b1   :  { %v316_v46 = vpop.xlane.xlu0 %315 }
 0x3b2   :  { %v317_v44 = vmul.f32 0.25, %v316_v46 }
 0x3b4   :  { %v3306_v56 = vsel %vm3305_vm5, %v3304_v6, %v317_v44 }
 0x3b5   :  { %v336_v45 = vpop.xlane.xlu0 %335 }
 0x3b6   :  { %v337_v19 = vmul.f32 0.25, %v336_v45 }
 0x3b9   :  { %v346_v28 = vpop.xlane.xlu0 %345 }
 0x3ba   :  { %v347_v9 = vmul.f32 0.25, %v346_v28 }
 0x3bd   :  { %v356_v30 = vpop.xlane.xlu0 %355 }
 0x3be   :  { %v357_v11 = vmul.f32 0.25, %v356_v30 }
 0x3d3   :  { %v326_v15 = vpop.xlane.xlu1 %325 }
 0x3d4   :  { %v327_v17 = vmul.f32 0.25, %v326_v15 }
 0x3d6   :  { %v3308_v51 = vsel %vm3307_vm6, %v3306_v56, %v327_v17 }
 0x3d7   :  { %v3310_v43 = vsel %vm3309_vm7, %v3308_v51, %v337_v19 }
 0x3d8   :  { %v3312_v3 = vsel %vm3311_vm8, %v3310_v43, %v347_v9  ;;  %v1910_v10 = vpop.xlane.xlu0 %1909 }
 0x3d9   :  { %v3314_v13 = vsel %vm3313_vm9, %v3312_v3, %v357_v11 }
 0x3da   :  { %v3315_v55 = vsel %vm155_vm1, %v3314_v13, %v1910_v10 }
 0x3e8   :  { %v1993_v50 = vpop.xlane.xlu0 %1992 }
 0x3e9   :  { %v3317_v4 = vsel %vm3316_vm10, %v3315_v55, %v1993_v50 }
 0x3f8   :  { %v2076_v31 = vpop.xlane.xlu0 %2075 }
 0x3f9   :  { %v3319_v42 = vsel %vm3318_vm11, %v3317_v4, %v2076_v31 }
 0x404   :  { %v2159_v61 = vpop.xlane.xlu0 %2158 }
 0x405   :  { %v3321_v40 = vsel %vm3320_vm12, %v3319_v42, %v2159_v61 }
 0x410   :  { %v2290_v52 = vpop.xlane.xlu0 %2289 }
 0x411   :  { %v3323_v57 = vsel %vm3322_vm13, %v3321_v40, %v2290_v52 }
 0x418   :  { %v2373_v34 = vpop.xlane.xlu0 %2372 }
 0x419   :  { %v3325_v41 = vsel %vm3324_vm14, %v3323_v57, %v2373_v34 }
 0x41c   :  { %v2456_v23 = vpop.xlane.xlu1 %2455 }
 0x41d   :  { %v3327_v1 = vsel %vm3326_vm15, %v3325_v41, %v2456_v23 }
 0x420   :  { %v3344_v0 = vpop.permute.xlu1 %3343 }
 0x421   :  { %v2539_v18 = vpop.xlane.xlu0 %2538 }
 0x422   :  { %v3329_v5 = vsel %vm3328_vm2, %v3327_v1, %v2539_v18 }
 0x423   :  { %v3347_v22 = vsel %vm3346_vm3, %v3329_v5, %v3344_v0 }
 0x424   :  { %3369 = vst [vmem:[%s6917_s2] sm:$0xff] %v3347_v22  ;;  %4508 = vmatpush3.msra.mxu1 %v3347_v22 }
 0x425   :  { %4510 = vmatmul.mubr.msk.f32.vlgmr.msra.gmra.mrb[0].mxu1 %vm155_vm1, %v3443_v7  ;;  %4517 = vmatprep.subr.mxu1 %v7091_v47 }
 0x426   :  { %4518 = vmatpush3.msra.mxu1 %v3347_v22  ;;  %4519 = vmatprep.mubr.msk.f32.mxu1 %vm4735_vm0, %v7091_v47 }
 0x427   :  { %4527 = vmatprep.subr.mxu1 %v7091_v47 }
 0x429   :  { %4520 = vmatmul.mubr.msk.f32.vlgmr.msra.gmra.mrb[2].mxu1 %vm155_vm1, %v7092_v37 }
 0x42a   :  { %4528 = vmatpush3.msra.mxu1 %v7093_v32  ;;  %4529 = vmatprep.mubr.msk.f32.mxu1 %vm4735_vm0, %v7091_v47 }
 0x42b   :  { %4537 = vmatprep.subr.mxu1 %v7091_v47 }
 0x42d   :  { %4530 = vmatmul.mubr.msk.f32.vlgmr.msra.gmra.mrb[4].mxu1 %vm155_vm1, %v7093_v32 }
 0x42e   :  { %4539 = vmatprep.mubr.msk.f32.mxu1 %vm4735_vm0, %v7091_v47 }
 0x4f8   :  { %v3513_v25 = vpop.f32.mrb[0].mxu1 }
 0x4f9   :  { %v3517_v24 = vand.u32 2147483647, %v3513_v25  ;;  %v4511_v49 = vpop.f32.mrb[1].mxu1 }
 0x4fb   :  { %3518 = vst [vmem:[%s6917_s2 + $0x8] sm:$0xff] %v3517_v24  ;;  %4523 = vmatpush3.msra.mxu0 %v3517_v24  ;;  %4538 = vmatpush3.msra.mxu1 %v3517_v24 }
 0x4fc   :  { %v3662_v60 = vpop.f32.mrb[2].mxu1  ;;  %4525 = vmatmul.mubr.msk.f32.vlgmr.msra.gmra.mrb[4].mxu0 %vm155_vm1, %v7092_v37  ;;  %4532 = vmatprep.subr.mxu0 %v7091_v47 }
 0x4fd   :  { %v3666_v8 = vand.u32 2147483647, %v3662_v60  ;;  %v4521_v26 = vpop.f32.mrb[3].mxu1  ;;  %4533 = vmatpush3.msra.mxu0 %v3347_v22  ;;  %4534 = vmatprep.mubr.msk.f32.mxu0 %vm4735_vm0, %v7091_v47 }
 0x4fe   :  { %4542 = vmatprep.subr.mxu0 %v7091_v47  ;;  %4547 = vmatprep.subr.mxu1 %v7091_v47 }
 0x4ff   :  { %3667 = vst [vmem:[%s6917_s2 + $0x10] sm:$0xff] %v3666_v8 }
 0x500   :  { %v3809_v20 = vpop.f32.mrb[4].mxu1 }
 0x501   :  { %v3813_v21 = vsub.f32 %v7093_v32, %v3809_v20  ;;  %v4531_v36 = vpop.f32.mrb[5].mxu1 }
 0x503   :  { %4535 = vmatmul.mubr.msk.f32.vlgmr.msra.gmra.mrb[6].mxu0 %vm155_vm1, %v3813_v21  ;;  %4540 = vmatmul.mubr.msk.f32.vlgmr.msra.gmra.mrb[6].mxu1 %vm155_vm1, %v3813_v21 }
 0x504   :  { %4543 = vmatpush3.msra.mxu0 %v3666_v8  ;;  %4548 = vmatpush3.msra.mxu1 %v3809_v20 }
 0x505   :  { %4544 = vmatprep.mubr.msk.f32.mxu0 %vm4735_vm0, %v7091_v47  ;;  %4549 = vmatprep.mubr.msk.f32.mxu1 %vm4735_vm0, %v7091_v47 }
 0x506   :  { %4552 = vmatprep.subr.mxu0 %v7091_v47  ;;  %4557 = vmatprep.subr.mxu1 %v7091_v47 }
 0x507   :  { %4545 = vmatmul.mubr.msk.f32.vlgmr.msra.gmra.mrb[8].mxu0 %vm155_vm1, %v3813_v21  ;;  %4550 = vmatmul.mubr.msk.f32.vlgmr.msra.gmra.mrb[8].mxu1 %vm155_vm1, %v3809_v20 }
 0x508   :  { %4553 = vmatpush3.msra.mxu0 %v3347_v22  ;;  %4558 = vmatpush3.msra.mxu1 %v3517_v24 }
 0x509   :  { %4554 = vmatprep.mubr.msk.f32.mxu0 %vm4735_vm0, %v7091_v47  ;;  %4559 = vmatprep.mubr.msk.f32.mxu1 %vm4735_vm0, %v7091_v47 }
 0x50a   :  { %4562 = vmatprep.subr.mxu0 %v7091_v47  ;;  %4567 = vmatprep.subr.mxu1 %v7091_v47 }
 0x5cf   :  { %v3734_v48 = vpop.f32.mrb[4].mxu0 }
 0x5d0   :  { %v3738_v38 = vand.u32 2147483647, %v3734_v48  ;;  %v4526_v14 = vpop.f32.mrb[5].mxu0 }
 0x5d2   :  { %3739 = vst [vmem:[%s6917_s2 + $0x28] sm:$0xff] %v3738_v38 }
 0x5d6   :  { %v3883_v16 = vpop.f32.mrb[6].mxu0  ;;  %v3955_v53 = vpop.f32.mrb[6].mxu1 }
 0x5d7   :  { %v3887_v62 = vand.u32 2147483647, %v3883_v16  ;;  %v3959_v35 = vand.u32 2147483647, %v3955_v53  ;;  %v4536_v54 = vpop.f32.mrb[7].mxu0  ;;  %v4541_v59 = vpop.f32.mrb[7].mxu1 }
 0x5d9   :  { %3888 = vst [vmem:[%s6917_s2 + $0x18] sm:$0xff] %v3887_v62  ;;  %3960 = vst [vmem:[%s6917_s2 + $0x30] sm:$0xff] %v3959_v35 }
 0x5da   :  { %v4027_v27 = vpop.f32.mrb[8].mxu0  ;;  %v4102_v12 = vpop.f32.mrb[8].mxu1 }
 0x5db   :  { %v4031_v63 = vand.u32 2147483647, %v4027_v27  ;;  %v4106_v33 = vsub.f32 %v3809_v20, %v4102_v12  ;;  %v4546_v29 = vpop.f32.mrb[9].mxu0  ;;  %v4551_v39 = vpop.f32.mrb[9].mxu1 }
 0x5dd   :  { %4032 = vst [vmem:[%s6917_s2 + $0x38] sm:$0xff] %v4031_v63  ;;  %4555 = vmatmul.mubr.msk.f32.vlgmr.msra.gmra.mrb[10].mxu0 %vm155_vm1, %v4106_v33  ;;  %4560 = vmatmul.mubr.msk.f32.vlgmr.msra.gmra.mrb[10].mxu1 %vm155_vm1, %v4106_v33 }
 0x5de   :  { %4563 = vmatpush3.msra.mxu0 %v3666_v8  ;;  %4568 = vmatpush3.msra.mxu1 %v3887_v62 }
 0x5df   :  { %4564 = vmatprep.mubr.msk.f32.mxu0 %vm4735_vm0, %v7091_v47  ;;  %4569 = vmatprep.mubr.msk.f32.mxu1 %vm4735_vm0, %v7091_v47 }
 0x5e1   :  { %4565 = vmatmul.mubr.msk.f32.vlgmr.msra.gmra.mrb[12].mxu0 %vm155_vm1, %v4106_v33  ;;  %4570 = vmatmul.mubr.msk.f32.vlgmr.msra.gmra.mrb[12].mxu1 %vm155_vm1, %v4106_v33 }
 0x6b0   :  { %v4176_v2 = vpop.f32.mrb[10].mxu0  ;;  %v4248_v6 = vpop.f32.mrb[10].mxu1 }
 0x6b1   :  { %v4180_v46 = vand.u32 2147483647, %v4176_v2  ;;  %v4252_v44 = vand.u32 2147483647, %v4248_v6  ;;  %v4556_v56 = vpop.f32.mrb[11].mxu0  ;;  %v4561_v45 = vpop.f32.mrb[11].mxu1 }
 0x6b3   :  { %4181 = vst [vmem:[%s6917_s2 + $0x20] sm:$0xff] %v4180_v46  ;;  %4253 = vst [vmem:[%s6917_s2 + $0x40] sm:$0xff] %v4252_v44 }
 0x6b4   :  { %v4320_v28 = vpop.f32.mrb[12].mxu0  ;;  %v4392_v15 = vpop.f32.mrb[12].mxu1 }
 0x6b5   :  { %v4324_v30 = vand.u32 2147483647, %v4320_v28  ;;  %v4396_v17 = vand.u32 2147483647, %v4392_v15  ;;  %v4566_v19 = vpop.f32.mrb[13].mxu0  ;;  %v4571_v9 = vpop.f32.mrb[13].mxu1 }
 0x6b7   :  { %4325 = vst [vmem:[%s6917_s2 + $0x48] sm:$0xff] %v4324_v30  ;;  %4397 = vst [vmem:[%s6917_s2 + $0x50] sm:$0xff] %v4396_v17 }

</bundles_post_ra>
